<compile_context>
chip_gen: v7x
topology: tpu7x:2x2x1
jax: 0.10.0
libtpu: 0.0.40
codegen_flags: <defaults>
</compile_context>

<pallas_src>
import jax
import jax.numpy as jnp
from jax import lax
from jax.experimental import pallas as pl
from jax.experimental.pallas import tpu as pltpu

LANES = 128

_CPARAMS = pltpu.CompilerParams(
    dimension_semantics=("parallel",),      # shard row/batch tiles across TCs (v7x)
    vmem_limit_bytes=32 * 1024 * 1024,      # blocks here are << this; safe on v7x too
)


# ----------------------------------------------------------------------------
# Pallas kernels
# ----------------------------------------------------------------------------
def _conv_pool_relu_kernel(p_ref, w_ref, b_ref, o_ref):
    """conv1 + 2x2 maxpool + relu.
    p_ref: (4, TILE, P) bf16 -- the 4 conv positions of each pool window.
    w_ref: (P, 128) bf16 (output channels zero-padded), b_ref: (1, 128) f32.
    o_ref: (TILE, 128) bf16, lane-dense, rows ordered (b, ph, pw)."""
    w = w_ref[...]
    acc = jnp.dot(p_ref[0], w, preferred_element_type=jnp.float32)
    for k in range(1, 4):
        acc = jnp.maximum(acc, jnp.dot(p_ref[k], w, preferred_element_type=jnp.float32))
    o_ref[...] = jnp.maximum(acc + b_ref[...], 0.0).astype(o_ref.dtype)


def _conv2_mlp_kernel(g2_ref, w2_ref, b2_ref, fw1_ref, fb1_ref, fw2_ref, fb2_ref, o_ref):
    """Fused conv2 + maxpool + relu + fc1 + relu + fc2 + log_softmax.
    g2_ref : (16, TB, 1024) bf16 conv2 patches; dim0 = pooled position s=ph*4+pw,
             lane = (dy*2+dx)*256 + K with K=(kh*5+kw)*10+ci zero-padded 250->256.
    w2_ref : (256, 128) bf16, b2_ref: (1,128) f32.
    fw1_ref: (2048, 128) bf16 (rows ordered s*128+c), fb1_ref: (1,128) f32.
    fw2_ref: (128, 128) bf16, fb2_ref: (1,128) f32 (padded class lanes = -1e30).
    o_ref  : (TB, 128) f32 log-probabilities (classes in lanes 0..C-1)."""
    w2 = w2_ref[...]
    b2 = b2_ref[...]
    parts = []
    for s in range(16):                              # pooled spatial positions, unrolled
        row = g2_ref[s]                              # (TB, 1024): 4 pool sub-positions
        acc = jnp.dot(row[:, 0:256], w2, preferred_element_type=jnp.float32)
        for k in range(1, 4):                        # max over the 2x2 pool window
            acc = jnp.maximum(
                acc, jnp.dot(row[:, k * 256:(k + 1) * 256], w2,
                             preferred_element_type=jnp.float32))
        parts.append(jnp.maximum(acc + b2, 0.0).astype(jnp.bfloat16))
    a2 = jnp.concatenate(parts, axis=-1)             # (TB, 2048): lane = s*128 + c
    h = jnp.dot(a2, fw1_ref[...], preferred_element_type=jnp.float32) + fb1_ref[...]
    h = jnp.maximum(h, 0.0).astype(jnp.bfloat16)
    # TODO(synk): training-mode Dropout2d / F.dropout masks not implemented
    #             (inference identity); would need pltpu.prng_* in-kernel.
    logits = jnp.dot(h, fw2_ref[...], preferred_element_type=jnp.float32) + fb2_ref[...]
    m = jnp.max(logits, axis=-1, keepdims=True)
    z = logits - m
    o_ref[...] = z - jnp.log(jnp.sum(jnp.exp(z), axis=-1, keepdims=True))


# ----------------------------------------------------------------------------
# Tiling heuristics
# ----------------------------------------------------------------------------
def _row_tile(rows, cap=2048):
    """Row tile: multiple of 8, >=2 grid steps when possible, capped for VMEM.
    On v6e/v5e (128 MiB VMEM, single TC) `cap` can be raised to 4096+."""
    half = -(-rows // 2)
    return max(8, min(cap, ((half + 7) // 8) * 8))


def _batch_tile(b):
    """Batch tile for the fused tail kernel: block's second-to-last dim must be a
    multiple of 8 or equal the full batch dim."""
    if b <= 8:
        return b                                  # tiny batch: single full block
    half = -(-b // 2)                             # aim for >=2 grid steps (v7x)
    return max(8, min(64, (half // 8) * 8))


# ----------------------------------------------------------------------------
# pallas_call wrappers
# ----------------------------------------------------------------------------
def conv_pool_relu(patches4, w, b, *, row_cap=2048):
    """patches4: (4, R, P) bf16 -> (R, 128) bf16 (conv1+pool+relu, channels-last)."""
    _, r, p = patches4.shape
    tile = _row_tile(r, row_cap)
    return pl.pallas_call(
        _conv_pool_relu_kernel,
        out_shape=jax.ShapeDtypeStruct((r, LANES), jnp.bfloat16),
        grid=(pl.cdiv(r, tile),),
        in_specs=[
            pl.BlockSpec((4, tile, p), lambda i: (0, i, 0)),
            pl.BlockSpec((p, LANES), lambda i: (0, 0)),       # resident weights
            pl.BlockSpec((1, LANES), lambda i: (0, 0)),       # resident bias
        ],
        out_specs=pl.BlockSpec((tile, LANES), lambda i: (i, 0)),
        compiler_params=_CPARAMS,
    )(patches4, w, b)


def conv2_mlp(g2, w2p, b2p, fw1p, fb1p, fw2p, fb2p):
    """g2: (16, B, 1024) bf16 -> (B, 128) f32 log-softmax (fused conv2+MLP tail)."""
    _, b, kdim = g2.shape
    tb = _batch_tile(b)
    return pl.pallas_call(
        _conv2_mlp_kernel,
        out_shape=jax.ShapeDtypeStruct((b, LANES), jnp.float32),
        grid=(pl.cdiv(b, tb),),
        in_specs=[
            pl.BlockSpec((16, tb, kdim), lambda i: (0, i, 0)),
            pl.BlockSpec((256, LANES), lambda i: (0, 0)),     # resident conv2 weight
            pl.BlockSpec((1, LANES), lambda i: (0, 0)),
            pl.BlockSpec((16 * LANES, LANES), lambda i: (0, 0)),  # resident fc1 weight
            pl.BlockSpec((1, LANES), lambda i: (0, 0)),
            pl.BlockSpec((LANES, LANES), lambda i: (0, 0)),   # resident fc2 weight
            pl.BlockSpec((1, LANES), lambda i: (0, 0)),
        ],
        out_specs=pl.BlockSpec((tb, LANES), lambda i: (i, 0)),
        compiler_params=_CPARAMS,
    )(g2, w2p, b2p, fw1p, fb1p, fw2p, fb2p)


# ----------------------------------------------------------------------------
# Plain-JAX glue: patch building (pure indexing / reshape, channels-last)
# ----------------------------------------------------------------------------
def im2col(x, k):
    """x: (B, C, H, W) -> (B, Ho, Wo, C*k*k); reduction order (C, kh, kw)."""
    b, c, h, w = x.shape
    ho, wo = h - k + 1, w - k + 1
    cols = [x[:, :, kh:kh + ho, kw:kw + wo] for kh in range(k) for kw in range(k)]
    p = jnp.stack(cols, axis=2)                   # (B, C, k*k, Ho, Wo)
    p = p.transpose(0, 3, 4, 1, 2)                # (B, Ho, Wo, C, k*k)
    return p.reshape(b, ho, wo, c * k * k)


def pool_group4(p):
    """(B, Ho, Wo, P) -> (4, B*(Ho//2)*(Wo//2), P); leading dim = 2x2 pool sub-pos."""
    b, ho, wo, pp = p.shape
    p = p.reshape(b, ho // 2, 2, wo // 2, 2, pp)
    p = p.transpose(2, 4, 0, 1, 3, 5)             # (dy, dx, B, ph, pw, P)
    return p.reshape(4, b * (ho // 2) * (wo // 2), pp)


def conv2_patches(y1c):
    """y1c: (B, 12, 12, 10) bf16 channels-last conv1 activations.
    -> (16, B, 1024): dim0 = pooled pos s=ph*4+pw, lane = (dy*2+dx)*256 + K,
    K = (kh*5+kw)*10 + ci zero-padded 250 -> 256 (aligned MXU K feed)."""
    b, hh, ww, c = y1c.shape
    ho = hh - 4                                   # 8
    cols = [y1c[:, kh:kh + ho, kw:kw + ho, :] for kh in range(5) for kw in range(5)]
    p = jnp.stack(cols, axis=3)                   # (B, 8, 8, 25, C)
    p = p.reshape(b, ho, ho, 25 * c)
    p = jnp.pad(p, ((0, 0), (0, 0), (0, 0), (0, 256 - 25 * c)))
    p = p.reshape(b, ho // 2, 2, ho // 2, 2, 256)  # (b, ph, dy, pw, dx, K)
    p = p.transpose(1, 3, 0, 2, 4, 5)              # (ph, pw, b, dy, dx, K)
    return p.reshape((ho // 2) * (ho // 2), b, 4 * 256)


# ----------------------------------------------------------------------------
# Parameter preparation (run ONCE, outside the jitted forward)
# ----------------------------------------------------------------------------
def prepare_params(params):
    w1, b1, w2, b2, fw1, fb1, fw2, fb2 = params
    c1, c2 = w1.shape[0], w2.shape[0]             # 10, 20
    hid, ncls = fw1.shape[1], fw2.shape[1]        # 50, num_classes
    p1 = w1.shape[1] * w1.shape[2] * w1.shape[3]

    # conv1 weight: rows in (cin, kh, kw) order matching im2col; lanes padded to 128
    w1p = jnp.zeros((p1, LANES), jnp.float32).at[:, :c1].set(
        w1.reshape(c1, p1).T).astype(jnp.bfloat16)
    b1p = jnp.zeros((1, LANES), jnp.float32).at[0, :c1].set(b1)

    # conv2 weight: rows in (kh, kw, cin) order (channels-last patches), K 250->256
    w2_r = jnp.transpose(w2, (2, 3, 1, 0)).reshape(25 * c1, c2)   # (250, 20)
    w2p = jnp.zeros((256, LANES), jnp.float32).at[:25 * c1, :c2].set(w2_r).astype(jnp.bfloat16)
    b2p = jnp.zeros((1, LANES), jnp.float32).at[0, :c2].set(b2)

    # fc1: PyTorch flat index = c*16 + s ; kernel lane index = s*128 + c
    fw1_r = jnp.transpose(fw1.reshape(c2, 16, hid), (1, 0, 2))    # (16, c2, hid)
    fw1p = (jnp.zeros((16, LANES, LANES), jnp.float32)
            .at[:, :c2, :hid].set(fw1_r)
            .reshape(16 * LANES, LANES).astype(jnp.bfloat16))
    fb1p = jnp.zeros((1, LANES), jnp.float32).at[0, :hid].set(fb1)
    fw2p = jnp.zeros((LANES, LANES), jnp.float32).at[:hid, :ncls].set(fw2).astype(jnp.bfloat16)
    # padded class lanes -> -1e30 so they vanish in the (f32) softmax
    fb2p = jnp.full((1, LANES), -1e30, jnp.float32).at[0, :ncls].set(fb2)
    return (w1p, b1p, w2p, b2p, fw1p, fb1p, fw2p, fb2p)


# ----------------------------------------------------------------------------
# Full forward pass (inference mode: dropout = identity)
# ----------------------------------------------------------------------------
def _cnn_mnist_forward(x, w1p, b1p, w2p, b2p, fw1p, fb1p, fw2p, fb2p, *, c1, num_classes):
    B = x.shape[0]
    xb = x.astype(jnp.bfloat16)

    # conv1 -> maxpool2 -> relu  (output channels lane-padded to 128, channels-last)
    g1 = pool_group4(im2col(xb, 5))                   # (4, B*144, Cin*25)
    y1 = conv_pool_relu(g1, w1p, b1p)                 # (B*144, 128) bf16
    h1 = (x.shape[2] - 4) // 2                        # 12
    y1 = y1.reshape(B, h1, h1, LANES)                 # free reshape, NO transpose

    # conv2 patches (channels-last, (kh,kw,cin) order) -> fused conv2+pool+relu+MLP
    g2 = conv2_patches(y1[..., :c1])                  # (16, B, 1024) bf16
    out = conv2_mlp(g2, w2p, b2p, fw1p, fb1p, fw2p, fb2p)   # (B, 128) f32 log-probs
    return out[:, :num_classes]


cnn_mnist_forward = jax.jit(_cnn_mnist_forward, static_argnames=("c1", "num_classes"))


# ----------------------------------------------------------------------------
# Pure-JAX f32 reference (correctness check)
# ----------------------------------------------------------------------------
def reference_forward(x, params):
    w1, b1, w2, b2, fw1, fb1, fw2, fb2 = params
    dn = ("NCHW", "OIHW", "NCHW")

    def maxpool2(y):
        b, c, h, w = y.shape
        return y.reshape(b, c, h // 2, 2, w // 2, 2).max(axis=(3, 5))

    y = lax.conv_general_dilated(x, w1, (1, 1), "VALID", dimension_numbers=dn)
    y = jnp.maximum(maxpool2(y + b1[None, :, None, None]), 0.0)
    y = lax.conv_general_dilated(y, w2, (1, 1), "VALID", dimension_numbers=dn)
    y = jnp.maximum(maxpool2(y + b2[None, :, None, None]), 0.0)
    flat = y.reshape(y.shape[0], -1)
    h = jnp.maximum(flat @ fw1 + fb1, 0.0)
    logits = h @ fw2 + fb2
    return jax.nn.log_softmax(logits, axis=1)


# ----------------------------------------------------------------------------
if __name__ == "__main__":
    num_channels, num_classes, B = 1, 10, 2   # MNIST: 28x28 -> 320-dim fc1 input

    key = jax.random.PRNGKey(0)
    ks = jax.random.split(key, 9)
    x = jax.random.normal(ks[0], (B, num_channels, 28, 28), jnp.float32)

    # Deterministic synthetic parameters (same shapes as the PyTorch module;
    # fc weights stored as (in, out)).
    w1 = 0.10 * jax.random.normal(ks[1], (10, num_channels, 5, 5), jnp.float32)
    b1 = 0.10 * jax.random.normal(ks[2], (10,), jnp.float32)
    w2 = 0.05 * jax.random.normal(ks[3], (20, 10, 5, 5), jnp.float32)
    b2 = 0.10 * jax.random.normal(ks[4], (20,), jnp.float32)
    fw1 = 0.05 * jax.random.normal(ks[5], (320, 50), jnp.float32)
    fb1 = 0.10 * jax.random.normal(ks[6], (50,), jnp.float32)
    fw2 = 0.10 * jax.random.normal(ks[7], (50, num_classes), jnp.float32)
    fb2 = 0.10 * jax.random.normal(ks[8], (num_classes,), jnp.float32)
    params = (w1, b1, w2, b2, fw1, fb1, fw2, fb2)

    # Weight padding / permutation runs once, outside the jitted per-call forward.
    prep = jax.tree_util.tree_map(jax.block_until_ready, prepare_params(params))

    out = jax.block_until_ready(
        cnn_mnist_forward(x, *prep, c1=int(w1.shape[0]), num_classes=num_classes))
    ref = jax.block_until_ready(reference_forward(x, params))

    assert out.shape == (B, num_classes), out.shape
    max_err = float(jnp.max(jnp.abs(out - ref)))
    # bf16 MXU inputs -> looser tolerance than the f32 reference
    assert jnp.allclose(out, ref, atol=3e-2, rtol=3e-2), max_err
    print("KERNEL_OK")
</pallas_src>

<mosaic_0001>
module attributes {stable_mosaic.version = 11 : i64} {
  func.func @_conv_pool_relu_kernel(%arg0: i32, %arg1: memref<4x144x25xbf16, #tpu.memory_space<vmem>>, %arg2: memref<25x128xbf16, #tpu.memory_space<vmem>>, %arg3: memref<1x128xf32, #tpu.memory_space<vmem>>, %arg4: memref<144x128xbf16, #tpu.memory_space<vmem>>) attributes {dimension_semantics = [#tpu.dimension_semantics<parallel>], iteration_bounds = array<i64: 2>, scalar_prefetch = 0 : i64, scratch_operands = 0 : i64, tpu.core_type = #tpu.core_type<tc>, window_params = [{transform_indices = @transform_0, window_bounds = array<i64: 4, 144, 25>}, {pipeline_mode = #tpu.pipeline_mode<synchronous>, transform_indices = @transform_1, window_bounds = array<i64: 25, 128>}, {pipeline_mode = #tpu.pipeline_mode<synchronous>, transform_indices = @transform_2, window_bounds = array<i64: 1, 128>}, {transform_indices = @transform_3, window_bounds = array<i64: 144, 128>}]} {
    %c0 = arith.constant 0 : index
    %c0_0 = arith.constant 0 : index
    %0 = vector.load %arg2[%c0, %c0_0] : memref<25x128xbf16, #tpu.memory_space<vmem>>, vector<25x128xbf16>
    %c0_1 = arith.constant 0 : index
    %c0_2 = arith.constant 0 : index
    %c0_3 = arith.constant 0 : index
    %1 = vector.load %arg1[%c0_1, %c0_2, %c0_3] : memref<4x144x25xbf16, #tpu.memory_space<vmem>>, vector<1x144x25xbf16>
    %2 = vector.shape_cast %1 : vector<1x144x25xbf16> to vector<144x25xbf16>
    %cst = arith.constant dense<0.000000e+00> : vector<144x128xf32>
    %3 = tpu.matmul %2, %0, %cst {dimension_numbers = #tpu.dot_dimension_numbers<[1], [0], [0], [1], [0, 0, 1, 1], [], []>} : vector<144x25xbf16>, vector<25x128xbf16>, vector<144x128xf32> -> vector<144x128xf32>
    %c1 = arith.constant 1 : index
    %c0_4 = arith.constant 0 : index
    %c0_5 = arith.constant 0 : index
    %4 = vector.load %arg1[%c1, %c0_4, %c0_5] : memref<4x144x25xbf16, #tpu.memory_space<vmem>>, vector<1x144x25xbf16>
    %5 = vector.shape_cast %4 : vector<1x144x25xbf16> to vector<144x25xbf16>
    %cst_6 = arith.constant dense<0.000000e+00> : vector<144x128xf32>
    %6 = tpu.matmul %5, %0, %cst_6 {dimension_numbers = #tpu.dot_dimension_numbers<[1], [0], [0], [1], [0, 0, 1, 1], [], []>} : vector<144x25xbf16>, vector<25x128xbf16>, vector<144x128xf32> -> vector<144x128xf32>
    %7 = arith.maximumf %3, %6 : vector<144x128xf32>
    %c2 = arith.constant 2 : index
    %c0_7 = arith.constant 0 : index
    %c0_8 = arith.constant 0 : index
    %8 = vector.load %arg1[%c2, %c0_7, %c0_8] : memref<4x144x25xbf16, #tpu.memory_space<vmem>>, vector<1x144x25xbf16>
    %9 = vector.shape_cast %8 : vector<1x144x25xbf16> to vector<144x25xbf16>
    %cst_9 = arith.constant dense<0.000000e+00> : vector<144x128xf32>
    %10 = tpu.matmul %9, %0, %cst_9 {dimension_numbers = #tpu.dot_dimension_numbers<[1], [0], [0], [1], [0, 0, 1, 1], [], []>} : vector<144x25xbf16>, vector<25x128xbf16>, vector<144x128xf32> -> vector<144x128xf32>
    %11 = arith.maximumf %7, %10 : vector<144x128xf32>
    %c3 = arith.constant 3 : index
    %c0_10 = arith.constant 0 : index
    %c0_11 = arith.constant 0 : index
    %12 = vector.load %arg1[%c3, %c0_10, %c0_11] : memref<4x144x25xbf16, #tpu.memory_space<vmem>>, vector<1x144x25xbf16>
    %13 = vector.shape_cast %12 : vector<1x144x25xbf16> to vector<144x25xbf16>
    %cst_12 = arith.constant dense<0.000000e+00> : vector<144x128xf32>
    %14 = tpu.matmul %13, %0, %cst_12 {dimension_numbers = #tpu.dot_dimension_numbers<[1], [0], [0], [1], [0, 0, 1, 1], [], []>} : vector<144x25xbf16>, vector<25x128xbf16>, vector<144x128xf32> -> vector<144x128xf32>
    %15 = arith.maximumf %11, %14 : vector<144x128xf32>
    %c0_13 = arith.constant 0 : index
    %c0_14 = arith.constant 0 : index
    %16 = vector.load %arg3[%c0_13, %c0_14] : memref<1x128xf32, #tpu.memory_space<vmem>>, vector<1x128xf32>
    %17 = vector.broadcast %16 : vector<1x128xf32> to vector<144x128xf32>
    %18 = arith.addf %15, %17 : vector<144x128xf32>
    %cst_15 = arith.constant 0.000000e+00 : f32
    %19 = vector.broadcast %cst_15 : f32 to vector<144x128xf32>
    %20 = arith.maximumf %18, %19 : vector<144x128xf32>
    %21 = arith.truncf %20 : vector<144x128xf32> to vector<144x128xbf16>
    %c0_16 = arith.constant 0 : index
    %c0_17 = arith.constant 0 : index
    %22 = vector.load %arg4[%c0_16, %c0_17] : memref<144x128xbf16, #tpu.memory_space<vmem>>, vector<144x128xbf16>
    tpu.vector_store %arg4[%c0_16, %c0_17], %21 {strides = array<i32>} : memref<144x128xbf16, #tpu.memory_space<vmem>>, vector<144x128xbf16>,
    return
  }
  func.func @transform_0(%arg0: i32) -> (i32, i32, i32) {
    %c0_i32 = arith.constant 0 : i32
    %c0_i32_0 = arith.constant 0 : i32
    %c0_i32_1 = arith.constant 0 : i32
    return %c0_i32, %arg0, %c0_i32_0 : i32, i32, i32
  }
  func.func @transform_1(%arg0: i32) -> (i32, i32) {
    %c0_i32 = arith.constant 0 : i32
    %c0_i32_0 = arith.constant 0 : i32
    %c0_i32_1 = arith.constant 0 : i32
    return %c0_i32, %c0_i32_0 : i32, i32
  }
  func.func @transform_2(%arg0: i32) -> (i32, i32) {
    %c0_i32 = arith.constant 0 : i32
    %c0_i32_0 = arith.constant 0 : i32
    %c0_i32_1 = arith.constant 0 : i32
    return %c0_i32, %c0_i32_0 : i32, i32
  }
  func.func @transform_3(%arg0: i32) -> (i32, i32) {
    %c0_i32 = arith.constant 0 : i32
    %c0_i32_0 = arith.constant 0 : i32
    return %arg0, %c0_i32 : i32, i32
  }
}

module attributes {stable_mosaic.version = 11 : i64} {
  func.func @_conv2_mlp_kernel(%arg0: i32, %arg1: memref<16x2x1024xbf16, #tpu.memory_space<vmem>>, %arg2: memref<256x128xbf16, #tpu.memory_space<vmem>>, %arg3: memref<1x128xf32, #tpu.memory_space<vmem>>, %arg4: memref<2048x128xbf16, #tpu.memory_space<vmem>>, %arg5: memref<1x128xf32, #tpu.memory_space<vmem>>, %arg6: memref<128x128xbf16, #tpu.memory_space<vmem>>, %arg7: memref<1x128xf32, #tpu.memory_space<vmem>>, %arg8: memref<2x128xf32, #tpu.memory_space<vmem>>) attributes {dimension_semantics = [#tpu.dimension_semantics<parallel>], iteration_bounds = array<i64: 1>, scalar_prefetch = 0 : i64, scratch_operands = 0 : i64, tpu.core_type = #tpu.core_type<tc>, window_params = [{transform_indices = @transform_0, window_bounds = array<i64: 16, 2, 1024>}, {pipeline_mode = #tpu.pipeline_mode<synchronous>, transform_indices = @transform_1, window_bounds = array<i64: 256, 128>}, {pipeline_mode = #tpu.pipeline_mode<synchronous>, transform_indices = @transform_2, window_bounds = array<i64: 1, 128>}, {pipeline_mode = #tpu.pipeline_mode<synchronous>, transform_indices = @transform_3, window_bounds = array<i64: 2048, 128>}, {pipeline_mode = #tpu.pipeline_mode<synchronous>, transform_indices = @transform_4, window_bounds = array<i64: 1, 128>}, {pipeline_mode = #tpu.pipeline_mode<synchronous>, transform_indices = @transform_5, window_bounds = array<i64: 128, 128>}, {pipeline_mode = #tpu.pipeline_mode<synchronous>, transform_indices = @transform_6, window_bounds = array<i64: 1, 128>}, {transform_indices = @transform_7, window_bounds = array<i64: 2, 128>}]} {
    %c0 = arith.constant 0 : index
    %c0_0 = arith.constant 0 : index
    %0 = vector.load %arg2[%c0, %c0_0] : memref<256x128xbf16, #tpu.memory_space<vmem>>, vector<256x128xbf16>
    %c0_1 = arith.constant 0 : index
    %c0_2 = arith.constant 0 : index
    %1 = vector.load %arg3[%c0_1, %c0_2] : memref<1x128xf32, #tpu.memory_space<vmem>>, vector<1x128xf32>
    %c0_3 = arith.constant 0 : index
    %c0_4 = arith.constant 0 : index
    %c0_5 = arith.constant 0 : index
    %2 = vector.load %arg1[%c0_3, %c0_4, %c0_5] : memref<16x2x1024xbf16, #tpu.memory_space<vmem>>, vector<1x2x1024xbf16>
    %3 = vector.shape_cast %2 : vector<1x2x1024xbf16> to vector<2x1024xbf16>
    %4 = vector.extract_strided_slice %3 {offsets = [0, 0], sizes = [2, 256], strides = [1, 1]} : vector<2x1024xbf16> to vector<2x256xbf16>
    %cst = arith.constant dense<0.000000e+00> : vector<2x128xf32>
    %5 = tpu.matmul %4, %0, %cst {dimension_numbers = #tpu.dot_dimension_numbers<[1], [0], [0], [1], [0, 0, 1, 1], [], []>} : vector<2x256xbf16>, vector<256x128xbf16>, vector<2x128xf32> -> vector<2x128xf32>
    %6 = vector.extract_strided_slice %3 {offsets = [0, 256], sizes = [2, 256], strides = [1, 1]} : vector<2x1024xbf16> to vector<2x256xbf16>
    %cst_6 = arith.constant dense<0.000000e+00> : vector<2x128xf32>
    %7 = tpu.matmul %6, %0, %cst_6 {dimension_numbers = #tpu.dot_dimension_numbers<[1], [0], [0], [1], [0, 0, 1, 1], [], []>} : vector<2x256xbf16>, vector<256x128xbf16>, vector<2x128xf32> -> vector<2x128xf32>
    %8 = arith.maximumf %5, %7 : vector<2x128xf32>
    %9 = vector.extract_strided_slice %3 {offsets = [0, 512], sizes = [2, 256], strides = [1, 1]} : vector<2x1024xbf16> to vector<2x256xbf16>
    %cst_7 = arith.constant dense<0.000000e+00> : vector<2x128xf32>
    %10 = tpu.matmul %9, %0, %cst_7 {dimension_numbers = #tpu.dot_dimension_numbers<[1], [0], [0], [1], [0, 0, 1, 1], [], []>} : vector<2x256xbf16>, vector<256x128xbf16>, vector<2x128xf32> -> vector<2x128xf32>
    %11 = arith.maximumf %8, %10 : vector<2x128xf32>
    %12 = vector.extract_strided_slice %3 {offsets = [0, 768], sizes = [2, 256], strides = [1, 1]} : vector<2x1024xbf16> to vector<2x256xbf16>
    %cst_8 = arith.constant dense<0.000000e+00> : vector<2x128xf32>
    %13 = tpu.matmul %12, %0, %cst_8 {dimension_numbers = #tpu.dot_dimension_numbers<[1], [0], [0], [1], [0, 0, 1, 1], [], []>} : vector<2x256xbf16>, vector<256x128xbf16>, vector<2x128xf32> -> vector<2x128xf32>
    %14 = arith.maximumf %11, %13 : vector<2x128xf32>
    %15 = vector.broadcast %1 : vector<1x128xf32> to vector<2x128xf32>
    %16 = arith.addf %14, %15 : vector<2x128xf32>
    %cst_9 = arith.constant 0.000000e+00 : f32
    %17 = vector.broadcast %cst_9 : f32 to vector<2x128xf32>
    %18 = arith.maximumf %16, %17 : vector<2x128xf32>
    %19 = arith.truncf %18 : vector<2x128xf32> to vector<2x128xbf16>
    %c1 = arith.constant 1 : index
    %c0_10 = arith.constant 0 : index
    %c0_11 = arith.constant 0 : index
    %20 = vector.load %arg1[%c1, %c0_10, %c0_11] : memref<16x2x1024xbf16, #tpu.memory_space<vmem>>, vector<1x2x1024xbf16>
    %21 = vector.shape_cast %20 : vector<1x2x1024xbf16> to vector<2x1024xbf16>
    %22 = vector.extract_strided_slice %21 {offsets = [0, 0], sizes = [2, 256], strides = [1, 1]} : vector<2x1024xbf16> to vector<2x256xbf16>
    %cst_12 = arith.constant dense<0.000000e+00> : vector<2x128xf32>
    %23 = tpu.matmul %22, %0, %cst_12 {dimension_numbers = #tpu.dot_dimension_numbers<[1], [0], [0], [1], [0, 0, 1, 1], [], []>} : vector<2x256xbf16>, vector<256x128xbf16>, vector<2x128xf32> -> vector<2x128xf32>
    %24 = vector.extract_strided_slice %21 {offsets = [0, 256], sizes = [2, 256], strides = [1, 1]} : vector<2x1024xbf16> to vector<2x256xbf16>
    %cst_13 = arith.constant dense<0.000000e+00> : vector<2x128xf32>
    %25 = tpu.matmul %24, %0, %cst_13 {dimension_numbers = #tpu.dot_dimension_numbers<[1], [0], [0], [1], [0, 0, 1, 1], [], []>} : vector<2x256xbf16>, vector<256x128xbf16>, vector<2x128xf32> -> vector<2x128xf32>
    %26 = arith.maximumf %23, %25 : vector<2x128xf32>
    %27 = vector.extract_strided_slice %21 {offsets = [0, 512], sizes = [2, 256], strides = [1, 1]} : vector<2x1024xbf16> to vector<2x256xbf16>
    %cst_14 = arith.constant dense<0.000000e+00> : vector<2x128xf32>
    %28 = tpu.matmul %27, %0, %cst_14 {dimension_numbers = #tpu.dot_dimension_numbers<[1], [0], [0], [1], [0, 0, 1, 1], [], []>} : vector<2x256xbf16>, vector<256x128xbf16>, vector<2x128xf32> -> vector<2x128xf32>
    %29 = arith.maximumf %26, %28 : vector<2x128xf32>
    %30 = vector.extract_strided_slice %21 {offsets = [0, 768], sizes = [2, 256], strides = [1, 1]} : vector<2x1024xbf16> to vector<2x256xbf16>
    %cst_15 = arith.constant dense<0.000000e+00> : vector<2x128xf32>
    %31 = tpu.matmul %30, %0, %cst_15 {dimension_numbers = #tpu.dot_dimension_numbers<[1], [0], [0], [1], [0, 0, 1, 1], [], []>} : vector<2x256xbf16>, vector<256x128xbf16>, vector<2x128xf32> -> vector<2x128xf32>
    %32 = arith.maximumf %29, %31 : vector<2x128xf32>
    %33 = vector.broadcast %1 : vector<1x128xf32> to vector<2x128xf32>
    %34 = arith.addf %32, %33 : vector<2x128xf32>
    %cst_16 = arith.constant 0.000000e+00 : f32
    %35 = vector.broadcast %cst_16 : f32 to vector<2x128xf32>
    %36 = arith.maximumf %34, %35 : vector<2x128xf32>
    %37 = arith.truncf %36 : vector<2x128xf32> to vector<2x128xbf16>
    %c2 = arith.constant 2 : index
    %c0_17 = arith.constant 0 : index
    %c0_18 = arith.constant 0 : index
    %38 = vector.load %arg1[%c2, %c0_17, %c0_18] : memref<16x2x1024xbf16, #tpu.memory_space<vmem>>, vector<1x2x1024xbf16>
    %39 = vector.shape_cast %38 : vector<1x2x1024xbf16> to vector<2x1024xbf16>
    %40 = vector.extract_strided_slice %39 {offsets = [0, 0], sizes = [2, 256], strides = [1, 1]} : vector<2x1024xbf16> to vector<2x256xbf16>
    %cst_19 = arith.constant dense<0.000000e+00> : vector<2x128xf32>
    %41 = tpu.matmul %40, %0, %cst_19 {dimension_numbers = #tpu.dot_dimension_numbers<[1], [0], [0], [1], [0, 0, 1, 1], [], []>} : vector<2x256xbf16>, vector<256x128xbf16>, vector<2x128xf32> -> vector<2x128xf32>
    %42 = vector.extract_strided_slice %39 {offsets = [0, 256], sizes = [2, 256], strides = [1, 1]} : vector<2x1024xbf16> to vector<2x256xbf16>
    %cst_20 = arith.constant dense<0.000000e+00> : vector<2x128xf32>
    %43 = tpu.matmul %42, %0, %cst_20 {dimension_numbers = #tpu.dot_dimension_numbers<[1], [0], [0], [1], [0, 0, 1, 1], [], []>} : vector<2x256xbf16>, vector<256x128xbf16>, vector<2x128xf32> -> vector<2x128xf32>
    %44 = arith.maximumf %41, %43 : vector<2x128xf32>
    %45 = vector.extract_strided_slice %39 {offsets = [0, 512], sizes = [2, 256], strides = [1, 1]} : vector<2x1024xbf16> to vector<2x256xbf16>
    %cst_21 = arith.constant dense<0.000000e+00> : vector<2x128xf32>
    %46 = tpu.matmul %45, %0, %cst_21 {dimension_numbers = #tpu.dot_dimension_numbers<[1], [0], [0], [1], [0, 0, 1, 1], [], []>} : vector<2x256xbf16>, vector<256x128xbf16>, vector<2x128xf32> -> vector<2x128xf32>
    %47 = arith.maximumf %44, %46 : vector<2x128xf32>
    %48 = vector.extract_strided_slice %39 {offsets = [0, 768], sizes = [2, 256], strides = [1, 1]} : vector<2x1024xbf16> to vector<2x256xbf16>
    %cst_22 = arith.constant dense<0.000000e+00> : vector<2x128xf32>
    %49 = tpu.matmul %48, %0, %cst_22 {dimension_numbers = #tpu.dot_dimension_numbers<[1], [0], [0], [1], [0, 0, 1, 1], [], []>} : vector<2x256xbf16>, vector<256x128xbf16>, vector<2x128xf32> -> vector<2x128xf32>
    %50 = arith.maximumf %47, %49 : vector<2x128xf32>
    %51 = vector.broadcast %1 : vector<1x128xf32> to vector<2x128xf32>
    %52 = arith.addf %50, %51 : vector<2x128xf32>
    %cst_23 = arith.constant 0.000000e+00 : f32
    %53 = vector.broadcast %cst_23 : f32 to vector<2x128xf32>
    %54 = arith.maximumf %52, %53 : vector<2x128xf32>
    %55 = arith.truncf %54 : vector<2x128xf32> to vector<2x128xbf16>
    %c3 = arith.constant 3 : index
    %c0_24 = arith.constant 0 : index
    %c0_25 = arith.constant 0 : index
    %56 = vector.load %arg1[%c3, %c0_24, %c0_25] : memref<16x2x1024xbf16, #tpu.memory_space<vmem>>, vector<1x2x1024xbf16>
    %57 = vector.shape_cast %56 : vector<1x2x1024xbf16> to vector<2x1024xbf16>
    %58 = vector.extract_strided_slice %57 {offsets = [0, 0], sizes = [2, 256], strides = [1, 1]} : vector<2x1024xbf16> to vector<2x256xbf16>
    %cst_26 = arith.constant dense<0.000000e+00> : vector<2x128xf32>
    %59 = tpu.matmul %58, %0, %cst_26 {dimension_numbers = #tpu.dot_dimension_numbers<[1], [0], [0], [1], [0, 0, 1, 1], [], []>} : vector<2x256xbf16>, vector<256x128xbf16>, vector<2x128xf32> -> vector<2x128xf32>
    %60 = vector.extract_strided_slice %57 {offsets = [0, 256], sizes = [2, 256], strides = [1, 1]} : vector<2x1024xbf16> to vector<2x256xbf16>
    %cst_27 = arith.constant dense<0.000000e+00> : vector<2x128xf32>
    %61 = tpu.matmul %60, %0, %cst_27 {dimension_numbers = #tpu.dot_dimension_numbers<[1], [0], [0], [1], [0, 0, 1, 1], [], []>} : vector<2x256xbf16>, vector<256x128xbf16>, vector<2x128xf32> -> vector<2x128xf32>
    %62 = arith.maximumf %59, %61 : vector<2x128xf32>
    %63 = vector.extract_strided_slice %57 {offsets = [0, 512], sizes = [2, 256], strides = [1, 1]} : vector<2x1024xbf16> to vector<2x256xbf16>
    %cst_28 = arith.constant dense<0.000000e+00> : vector<2x128xf32>
    %64 = tpu.matmul %63, %0, %cst_28 {dimension_numbers = #tpu.dot_dimension_numbers<[1], [0], [0], [1], [0, 0, 1, 1], [], []>} : vector<2x256xbf16>, vector<256x128xbf16>, vector<2x128xf32> -> vector<2x128xf32>
    %65 = arith.maximumf %62, %64 : vector<2x128xf32>
    %66 = vector.extract_strided_slice %57 {offsets = [0, 768], sizes = [2, 256], strides = [1, 1]} : vector<2x1024xbf16> to vector<2x256xbf16>
    %cst_29 = arith.constant dense<0.000000e+00> : vector<2x128xf32>
    %67 = tpu.matmul %66, %0, %cst_29 {dimension_numbers = #tpu.dot_dimension_numbers<[1], [0], [0], [1], [0, 0, 1, 1], [], []>} : vector<2x256xbf16>, vector<256x128xbf16>, vector<2x128xf32> -> vector<2x128xf32>
    %68 = arith.maximumf %65, %67 : vector<2x128xf32>
    %69 = vector.broadcast %1 : vector<1x128xf32> to vector<2x128xf32>
    %70 = arith.addf %68, %69 : vector<2x128xf32>
    %cst_30 = arith.constant 0.000000e+00 : f32
    %71 = vector.broadcast %cst_30 : f32 to vector<2x128xf32>
    %72 = arith.maximumf %70, %71 : vector<2x128xf32>
    %73 = arith.truncf %72 : vector<2x128xf32> to vector<2x128xbf16>
    %c4 = arith.constant 4 : index
    %c0_31 = arith.constant 0 : index
    %c0_32 = arith.constant 0 : index
    %74 = vector.load %arg1[%c4, %c0_31, %c0_32] : memref<16x2x1024xbf16, #tpu.memory_space<vmem>>, vector<1x2x1024xbf16>
    %75 = vector.shape_cast %74 : vector<1x2x1024xbf16> to vector<2x1024xbf16>
    %76 = vector.extract_strided_slice %75 {offsets = [0, 0], sizes = [2, 256], strides = [1, 1]} : vector<2x1024xbf16> to vector<2x256xbf16>
    %cst_33 = arith.constant dense<0.000000e+00> : vector<2x128xf32>
    %77 = tpu.matmul %76, %0, %cst_33 {dimension_numbers = #tpu.dot_dimension_numbers<[1], [0], [0], [1], [0, 0, 1, 1], [], []>} : vector<2x256xbf16>, vector<256x128xbf16>, vector<2x128xf32> -> vector<2x128xf32>
    %78 = vector.extract_strided_slice %75 {offsets = [0, 256], sizes = [2, 256], strides = [1, 1]} : vector<2x1024xbf16> to vector<2x256xbf16>
    %cst_34 = arith.constant dense<0.000000e+00> : vector<2x128xf32>
    %79 = tpu.matmul %78, %0, %cst_34 {dimension_numbers = #tpu.dot_dimension_numbers<[1], [0], [0], [1], [0, 0, 1, 1], [], []>} : vector<2x256xbf16>, vector<256x128xbf16>, vector<2x128xf32> -> vector<2x128xf32>
    %80 = arith.maximumf %77, %79 : vector<2x128xf32>
    %81 = vector.extract_strided_slice %75 {offsets = [0, 512], sizes = [2, 256], strides = [1, 1]} : vector<2x1024xbf16> to vector<2x256xbf16>
    %cst_35 = arith.constant dense<0.000000e+00> : vector<2x128xf32>
    %82 = tpu.matmul %81, %0, %cst_35 {dimension_numbers = #tpu.dot_dimension_numbers<[1], [0], [0], [1], [0, 0, 1, 1], [], []>} : vector<2x256xbf16>, vector<256x128xbf16>, vector<2x128xf32> -> vector<2x128xf32>
    %83 = arith.maximumf %80, %82 : vector<2x128xf32>
    %84 = vector.extract_strided_slice %75 {offsets = [0, 768], sizes = [2, 256], strides = [1, 1]} : vector<2x1024xbf16> to vector<2x256xbf16>
    %cst_36 = arith.constant dense<0.000000e+00> : vector<2x128xf32>
    %85 = tpu.matmul %84, %0, %cst_36 {dimension_numbers = #tpu.dot_dimension_numbers<[1], [0], [0], [1], [0, 0, 1, 1], [], []>} : vector<2x256xbf16>, vector<256x128xbf16>, vector<2x128xf32> -> vector<2x128xf32>
    %86 = arith.maximumf %83, %85 : vector<2x128xf32>
    %87 = vector.broadcast %1 : vector<1x128xf32> to vector<2x128xf32>
    %88 = arith.addf %86, %87 : vector<2x128xf32>
    %cst_37 = arith.constant 0.000000e+00 : f32
    %89 = vector.broadcast %cst_37 : f32 to vector<2x128xf32>
    %90 = arith.maximumf %88, %89 : vector<2x128xf32>
    %91 = arith.truncf %90 : vector<2x128xf32> to vector<2x128xbf16>
    %c5 = arith.constant 5 : index
    %c0_38 = arith.constant 0 : index
    %c0_39 = arith.constant 0 : index
    %92 = vector.load %arg1[%c5, %c0_38, %c0_39] : memref<16x2x1024xbf16, #tpu.memory_space<vmem>>, vector<1x2x1024xbf16>
    %93 = vector.shape_cast %92 : vector<1x2x1024xbf16> to vector<2x1024xbf16>
    %94 = vector.extract_strided_slice %93 {offsets = [0, 0], sizes = [2, 256], strides = [1, 1]} : vector<2x1024xbf16> to vector<2x256xbf16>
    %cst_40 = arith.constant dense<0.000000e+00> : vector<2x128xf32>
    %95 = tpu.matmul %94, %0, %cst_40 {dimension_numbers = #tpu.dot_dimension_numbers<[1], [0], [0], [1], [0, 0, 1, 1], [], []>} : vector<2x256xbf16>, vector<256x128xbf16>, vector<2x128xf32> -> vector<2x128xf32>
    %96 = vector.extract_strided_slice %93 {offsets = [0, 256], sizes = [2, 256], strides = [1, 1]} : vector<2x1024xbf16> to vector<2x256xbf16>
    %cst_41 = arith.constant dense<0.000000e+00> : vector<2x128xf32>
    %97 = tpu.matmul %96, %0, %cst_41 {dimension_numbers = #tpu.dot_dimension_numbers<[1], [0], [0], [1], [0, 0, 1, 1], [], []>} : vector<2x256xbf16>, vector<256x128xbf16>, vector<2x128xf32> -> vector<2x128xf32>
    %98 = arith.maximumf %95, %97 : vector<2x128xf32>
    %99 = vector.extract_strided_slice %93 {offsets = [0, 512], sizes = [2, 256], strides = [1, 1]} : vector<2x1024xbf16> to vector<2x256xbf16>
    %cst_42 = arith.constant dense<0.000000e+00> : vector<2x128xf32>
    %100 = tpu.matmul %99, %0, %cst_42 {dimension_numbers = #tpu.dot_dimension_numbers<[1], [0], [0], [1], [0, 0, 1, 1], [], []>} : vector<2x256xbf16>, vector<256x128xbf16>, vector<2x128xf32> -> vector<2x128xf32>
    %101 = arith.maximumf %98, %100 : vector<2x128xf32>
    %102 = vector.extract_strided_slice %93 {offsets = [0, 768], sizes = [2, 256], strides = [1, 1]} : vector<2x1024xbf16> to vector<2x256xbf16>
    %cst_43 = arith.constant dense<0.000000e+00> : vector<2x128xf32>
    %103 = tpu.matmul %102, %0, %cst_43 {dimension_numbers = #tpu.dot_dimension_numbers<[1], [0], [0], [1], [0, 0, 1, 1], [], []>} : vector<2x256xbf16>, vector<256x128xbf16>, vector<2x128xf32> -> vector<2x128xf32>
    %104 = arith.maximumf %101, %103 : vector<2x128xf32>
    %105 = vector.broadcast %1 : vector<1x128xf32> to vector<2x128xf32>
    %106 = arith.addf %104, %105 : vector<2x128xf32>
    %cst_44 = arith.constant 0.000000e+00 : f32
    %107 = vector.broadcast %cst_44 : f32 to vector<2x128xf32>
    %108 = arith.maximumf %106, %107 : vector<2x128xf32>
    %109 = arith.truncf %108 : vector<2x128xf32> to vector<2x128xbf16>
    %c6 = arith.constant 6 : index
    %c0_45 = arith.constant 0 : index
    %c0_46 = arith.constant 0 : index
    %110 = vector.load %arg1[%c6, %c0_45, %c0_46] : memref<16x2x1024xbf16, #tpu.memory_space<vmem>>, vector<1x2x1024xbf16>
    %111 = vector.shape_cast %110 : vector<1x2x1024xbf16> to vector<2x1024xbf16>
    %112 = vector.extract_strided_slice %111 {offsets = [0, 0], sizes = [2, 256], strides = [1, 1]} : vector<2x1024xbf16> to vector<2x256xbf16>
    %cst_47 = arith.constant dense<0.000000e+00> : vector<2x128xf32>
    %113 = tpu.matmul %112, %0, %cst_47 {dimension_numbers = #tpu.dot_dimension_numbers<[1], [0], [0], [1], [0, 0, 1, 1], [], []>} : vector<2x256xbf16>, vector<256x128xbf16>, vector<2x128xf32> -> vector<2x128xf32>
    %114 = vector.extract_strided_slice %111 {offsets = [0, 256], sizes = [2, 256], strides = [1, 1]} : vector<2x1024xbf16> to vector<2x256xbf16>
    %cst_48 = arith.constant dense<0.000000e+00> : vector<2x128xf32>
    %115 = tpu.matmul %114, %0, %cst_48 {dimension_numbers = #tpu.dot_dimension_numbers<[1], [0], [0], [1], [0, 0, 1, 1], [], []>} : vector<2x256xbf16>, vector<256x128xbf16>, vector<2x128xf32> -> vector<2x128xf32>
    %116 = arith.maximumf %113, %115 : vector<2x128xf32>
    %117 = vector.extract_strided_slice %111 {offsets = [0, 512], sizes = [2, 256], strides = [1, 1]} : vector<2x1024xbf16> to vector<2x256xbf16>
    %cst_49 = arith.constant dense<0.000000e+00> : vector<2x128xf32>
    %118 = tpu.matmul %117, %0, %cst_49 {dimension_numbers = #tpu.dot_dimension_numbers<[1], [0], [0], [1], [0, 0, 1, 1], [], []>} : vector<2x256xbf16>, vector<256x128xbf16>, vector<2x128xf32> -> vector<2x128xf32>
    %119 = arith.maximumf %116, %118 : vector<2x128xf32>
    %120 = vector.extract_strided_slice %111 {offsets = [0, 768], sizes = [2, 256], strides = [1, 1]} : vector<2x1024xbf16> to vector<2x256xbf16>
    %cst_50 = arith.constant dense<0.000000e+00> : vector<2x128xf32>
    %121 = tpu.matmul %120, %0, %cst_50 {dimension_numbers = #tpu.dot_dimension_numbers<[1], [0], [0], [1], [0, 0, 1, 1], [], []>} : vector<2x256xbf16>, vector<256x128xbf16>, vector<2x128xf32> -> vector<2x128xf32>
    %122 = arith.maximumf %119, %121 : vector<2x128xf32>
    %123 = vector.broadcast %1 : vector<1x128xf32> to vector<2x128xf32>
    %124 = arith.addf %122, %123 : vector<2x128xf32>
    %cst_51 = arith.constant 0.000000e+00 : f32
    %125 = vector.broadcast %cst_51 : f32 to vector<2x128xf32>
    %126 = arith.maximumf %124, %125 : vector<2x128xf32>
    %127 = arith.truncf %126 : vector<2x128xf32> to vector<2x128xbf16>
    %c7 = arith.constant 7 : index
    %c0_52 = arith.constant 0 : index
    %c0_53 = arith.constant 0 : index
    %128 = vector.load %arg1[%c7, %c0_52, %c0_53] : memref<16x2x1024xbf16, #tpu.memory_space<vmem>>, vector<1x2x1024xbf16>
    %129 = vector.shape_cast %128 : vector<1x2x1024xbf16> to vector<2x1024xbf16>
    %130 = vector.extract_strided_slice %129 {offsets = [0, 0], sizes = [2, 256], strides = [1, 1]} : vector<2x1024xbf16> to vector<2x256xbf16>
    %cst_54 = arith.constant dense<0.000000e+00> : vector<2x128xf32>
    %131 = tpu.matmul %130, %0, %cst_54 {dimension_numbers = #tpu.dot_dimension_numbers<[1], [0], [0], [1], [0, 0, 1, 1], [], []>} : vector<2x256xbf16>, vector<256x128xbf16>, vector<2x128xf32> -> vector<2x128xf32>
    %132 = vector.extract_strided_slice %129 {offsets = [0, 256], sizes = [2, 256], strides = [1, 1]} : vector<2x1024xbf16> to vector<2x256xbf16>
    %cst_55 = arith.constant dense<0.000000e+00> : vector<2x128xf32>
    %133 = tpu.matmul %132, %0, %cst_55 {dimension_numbers = #tpu.dot_dimension_numbers<[1], [0], [0], [1], [0, 0, 1, 1], [], []>} : vector<2x256xbf16>, vector<256x128xbf16>, vector<2x128xf32> -> vector<2x128xf32>
    %134 = arith.maximumf %131, %133 : vector<2x128xf32>
    %135 = vector.extract_strided_slice %129 {offsets = [0, 512], sizes = [2, 256], strides = [1, 1]} : vector<2x1024xbf16> to vector<2x256xbf16>
    %cst_56 = arith.constant dense<0.000000e+00> : vector<2x128xf32>
    %136 = tpu.matmul %135, %0, %cst_56 {dimension_numbers = #tpu.dot_dimension_numbers<[1], [0], [0], [1], [0, 0, 1, 1], [], []>} : vector<2x256xbf16>, vector<256x128xbf16>, vector<2x128xf32> -> vector<2x128xf32>
    %137 = arith.maximumf %134, %136 : vector<2x128xf32>
    %138 = vector.extract_strided_slice %129 {offsets = [0, 768], sizes = [2, 256], strides = [1, 1]} : vector<2x1024xbf16> to vector<2x256xbf16>
    %cst_57 = arith.constant dense<0.000000e+00> : vector<2x128xf32>
    %139 = tpu.matmul %138, %0, %cst_57 {dimension_numbers = #tpu.dot_dimension_numbers<[1], [0], [0], [1], [0, 0, 1, 1], [], []>} : vector<2x256xbf16>, vector<256x128xbf16>, vector<2x128xf32> -> vector<2x128xf32>
    %140 = arith.maximumf %137, %139 : vector<2x128xf32>
    %141 = vector.broadcast %1 : vector<1x128xf32> to vector<2x128xf32>
    %142 = arith.addf %140, %141 : vector<2x128xf32>
    %cst_58 = arith.constant 0.000000e+00 : f32
    %143 = vector.broadcast %cst_58 : f32 to vector<2x128xf32>
    %144 = arith.maximumf %142, %143 : vector<2x128xf32>
    %145 = arith.truncf %144 : vector<2x128xf32> to vector<2x128xbf16>
    %c8 = arith.constant 8 : index
    %c0_59 = arith.constant 0 : index
    %c0_60 = arith.constant 0 : index
    %146 = vector.load %arg1[%c8, %c0_59, %c0_60] : memref<16x2x1024xbf16, #tpu.memory_space<vmem>>, vector<1x2x1024xbf16>
    %147 = vector.shape_cast %146 : vector<1x2x1024xbf16> to vector<2x1024xbf16>
    %148 = vector.extract_strided_slice %147 {offsets = [0, 0], sizes = [2, 256], strides = [1, 1]} : vector<2x1024xbf16> to vector<2x256xbf16>
    %cst_61 = arith.constant dense<0.000000e+00> : vector<2x128xf32>
    %149 = tpu.matmul %148, %0, %cst_61 {dimension_numbers = #tpu.dot_dimension_numbers<[1], [0], [0], [1], [0, 0, 1, 1], [], []>} : vector<2x256xbf16>, vector<256x128xbf16>, vector<2x128xf32> -> vector<2x128xf32>
    %150 = vector.extract_strided_slice %147 {offsets = [0, 256], sizes = [2, 256], strides = [1, 1]} : vector<2x1024xbf16> to vector<2x256xbf16>
    %cst_62 = arith.constant dense<0.000000e+00> : vector<2x128xf32>
    %151 = tpu.matmul %150, %0, %cst_62 {dimension_numbers = #tpu.dot_dimension_numbers<[1], [0], [0], [1], [0, 0, 1, 1], [], []>} : vector<2x256xbf16>, vector<256x128xbf16>, vector<2x128xf32> -> vector<2x128xf32>
    %152 = arith.maximumf %149, %151 : vector<2x128xf32>
    %153 = vector.extract_strided_slice %147 {offsets = [0, 512], sizes = [2, 256], strides = [1, 1]} : vector<2x1024xbf16> to vector<2x256xbf16>
    %cst_63 = arith.constant dense<0.000000e+00> : vector<2x128xf32>
    %154 = tpu.matmul %153, %0, %cst_63 {dimension_numbers = #tpu.dot_dimension_numbers<[1], [0], [0], [1], [0, 0, 1, 1], [], []>} : vector<2x256xbf16>, vector<256x128xbf16>, vector<2x128xf32> -> vector<2x128xf32>
    %155 = arith.maximumf %152, %154 : vector<2x128xf32>
    %156 = vector.extract_strided_slice %147 {offsets = [0, 768], sizes = [2, 256], strides = [1, 1]} : vector<2x1024xbf16> to vector<2x256xbf16>
    %cst_64 = arith.constant dense<0.000000e+00> : vector<2x128xf32>
    %157 = tpu.matmul %156, %0, %cst_64 {dimension_numbers = #tpu.dot_dimension_numbers<[1], [0], [0], [1], [0, 0, 1, 1], [], []>} : vector<2x256xbf16>, vector<256x128xbf16>, vector<2x128xf32> -> vector<2x128xf32>
    %158 = arith.maximumf %155, %157 : vector<2x128xf32>
    %159 = vector.broadcast %1 : vector<1x128xf32> to vector<2x128xf32>
    %160 = arith.addf %158, %159 : vector<2x128xf32>
    %cst_65 = arith.constant 0.000000e+00 : f32
    %161 = vector.broadcast %cst_65 : f32 to vector<2x128xf32>
    %162 = arith.maximumf %160, %161 : vector<2x128xf32>
    %163 = arith.truncf %162 : vector<2x128xf32> to vector<2x128xbf16>
    %c9 = arith.constant 9 : index
    %c0_66 = arith.constant 0 : index
    %c0_67 = arith.constant 0 : index
    %164 = vector.load %arg1[%c9, %c0_66, %c0_67] : memref<16x2x1024xbf16, #tpu.memory_space<vmem>>, vector<1x2x1024xbf16>
    %165 = vector.shape_cast %164 : vector<1x2x1024xbf16> to vector<2x1024xbf16>
    %166 = vector.extract_strided_slice %165 {offsets = [0, 0], sizes = [2, 256], strides = [1, 1]} : vector<2x1024xbf16> to vector<2x256xbf16>
    %cst_68 = arith.constant dense<0.000000e+00> : vector<2x128xf32>
    %167 = tpu.matmul %166, %0, %cst_68 {dimension_numbers = #tpu.dot_dimension_numbers<[1], [0], [0], [1], [0, 0, 1, 1], [], []>} : vector<2x256xbf16>, vector<256x128xbf16>, vector<2x128xf32> -> vector<2x128xf32>
    %168 = vector.extract_strided_slice %165 {offsets = [0, 256], sizes = [2, 256], strides = [1, 1]} : vector<2x1024xbf16> to vector<2x256xbf16>
    %cst_69 = arith.constant dense<0.000000e+00> : vector<2x128xf32>
    %169 = tpu.matmul %168, %0, %cst_69 {dimension_numbers = #tpu.dot_dimension_numbers<[1], [0], [0], [1], [0, 0, 1, 1], [], []>} : vector<2x256xbf16>, vector<256x128xbf16>, vector<2x128xf32> -> vector<2x128xf32>
    %170 = arith.maximumf %167, %169 : vector<2x128xf32>
    %171 = vector.extract_strided_slice %165 {offsets = [0, 512], sizes = [2, 256], strides = [1, 1]} : vector<2x1024xbf16> to vector<2x256xbf16>
    %cst_70 = arith.constant dense<0.000000e+00> : vector<2x128xf32>
    %172 = tpu.matmul %171, %0, %cst_70 {dimension_numbers = #tpu.dot_dimension_numbers<[1], [0], [0], [1], [0, 0, 1, 1], [], []>} : vector<2x256xbf16>, vector<256x128xbf16>, vector<2x128xf32> -> vector<2x128xf32>
    %173 = arith.maximumf %170, %172 : vector<2x128xf32>
    %174 = vector.extract_strided_slice %165 {offsets = [0, 768], sizes = [2, 256], strides = [1, 1]} : vector<2x1024xbf16> to vector<2x256xbf16>
    %cst_71 = arith.constant dense<0.000000e+00> : vector<2x128xf32>
    %175 = tpu.matmul %174, %0, %cst_71 {dimension_numbers = #tpu.dot_dimension_numbers<[1], [0], [0], [1], [0, 0, 1, 1], [], []>} : vector<2x256xbf16>, vector<256x128xbf16>, vector<2x128xf32> -> vector<2x128xf32>
    %176 = arith.maximumf %173, %175 : vector<2x128xf32>
    %177 = vector.broadcast %1 : vector<1x128xf32> to vector<2x128xf32>
    %178 = arith.addf %176, %177 : vector<2x128xf32>
    %cst_72 = arith.constant 0.000000e+00 : f32
    %179 = vector.broadcast %cst_72 : f32 to vector<2x128xf32>
    %180 = arith.maximumf %178, %179 : vector<2x128xf32>
    %181 = arith.truncf %180 : vector<2x128xf32> to vector<2x128xbf16>
    %c10 = arith.constant 10 : index
    %c0_73 = arith.constant 0 : index
    %c0_74 = arith.constant 0 : index
    %182 = vector.load %arg1[%c10, %c0_73, %c0_74] : memref<16x2x1024xbf16, #tpu.memory_space<vmem>>, vector<1x2x1024xbf16>
    %183 = vector.shape_cast %182 : vector<1x2x1024xbf16> to vector<2x1024xbf16>
    %184 = vector.extract_strided_slice %183 {offsets = [0, 0], sizes = [2, 256], strides = [1, 1]} : vector<2x1024xbf16> to vector<2x256xbf16>
    %cst_75 = arith.constant dense<0.000000e+00> : vector<2x128xf32>
    %185 = tpu.matmul %184, %0, %cst_75 {dimension_numbers = #tpu.dot_dimension_numbers<[1], [0], [0], [1], [0, 0, 1, 1], [], []>} : vector<2x256xbf16>, vector<256x128xbf16>, vector<2x128xf32> -> vector<2x128xf32>
    %186 = vector.extract_strided_slice %183 {offsets = [0, 256], sizes = [2, 256], strides = [1, 1]} : vector<2x1024xbf16> to vector<2x256xbf16>
    %cst_76 = arith.constant dense<0.000000e+00> : vector<2x128xf32>
    %187 = tpu.matmul %186, %0, %cst_76 {dimension_numbers = #tpu.dot_dimension_numbers<[1], [0], [0], [1], [0, 0, 1, 1], [], []>} : vector<2x256xbf16>, vector<256x128xbf16>, vector<2x128xf32> -> vector<2x128xf32>
    %188 = arith.maximumf %185, %187 : vector<2x128xf32>
    %189 = vector.extract_strided_slice %183 {offsets = [0, 512], sizes = [2, 256], strides = [1, 1]} : vector<2x1024xbf16> to vector<2x256xbf16>
    %cst_77 = arith.constant dense<0.000000e+00> : vector<2x128xf32>
    %190 = tpu.matmul %189, %0, %cst_77 {dimension_numbers = #tpu.dot_dimension_numbers<[1], [0], [0], [1], [0, 0, 1, 1], [], []>} : vector<2x256xbf16>, vector<256x128xbf16>, vector<2x128xf32> -> vector<2x128xf32>
    %191 = arith.maximumf %188, %190 : vector<2x128xf32>
    %192 = vector.extract_strided_slice %183 {offsets = [0, 768], sizes = [2, 256], strides = [1, 1]} : vector<2x1024xbf16> to vector<2x256xbf16>
    %cst_78 = arith.constant dense<0.000000e+00> : vector<2x128xf32>
    %193 = tpu.matmul %192, %0, %cst_78 {dimension_numbers = #tpu.dot_dimension_numbers<[1], [0], [0], [1], [0, 0, 1, 1], [], []>} : vector<2x256xbf16>, vector<256x128xbf16>, vector<2x128xf32> -> vector<2x128xf32>
    %194 = arith.maximumf %191, %193 : vector<2x128xf32>
    %195 = vector.broadcast %1 : vector<1x128xf32> to vector<2x128xf32>
    %196 = arith.addf %194, %195 : vector<2x128xf32>
    %cst_79 = arith.constant 0.000000e+00 : f32
    %197 = vector.broadcast %cst_79 : f32 to vector<2x128xf32>
    %198 = arith.maximumf %196, %197 : vector<2x128xf32>
    %199 = arith.truncf %198 : vector<2x128xf32> to vector<2x128xbf16>
    %c11 = arith.constant 11 : index
    %c0_80 = arith.constant 0 : index
    %c0_81 = arith.constant 0 : index
    %200 = vector.load %arg1[%c11, %c0_80, %c0_81] : memref<16x2x1024xbf16, #tpu.memory_space<vmem>>, vector<1x2x1024xbf16>
    %201 = vector.shape_cast %200 : vector<1x2x1024xbf16> to vector<2x1024xbf16>
    %202 = vector.extract_strided_slice %201 {offsets = [0, 0], sizes = [2, 256], strides = [1, 1]} : vector<2x1024xbf16> to vector<2x256xbf16>
    %cst_82 = arith.constant dense<0.000000e+00> : vector<2x128xf32>
    %203 = tpu.matmul %202, %0, %cst_82 {dimension_numbers = #tpu.dot_dimension_numbers<[1], [0], [0], [1], [0, 0, 1, 1], [], []>} : vector<2x256xbf16>, vector<256x128xbf16>, vector<2x128xf32> -> vector<2x128xf32>
    %204 = vector.extract_strided_slice %201 {offsets = [0, 256], sizes = [2, 256], strides = [1, 1]} : vector<2x1024xbf16> to vector<2x256xbf16>
    %cst_83 = arith.constant dense<0.000000e+00> : vector<2x128xf32>
    %205 = tpu.matmul %204, %0, %cst_83 {dimension_numbers = #tpu.dot_dimension_numbers<[1], [0], [0], [1], [0, 0, 1, 1], [], []>} : vector<2x256xbf16>, vector<256x128xbf16>, vector<2x128xf32> -> vector<2x128xf32>
    %206 = arith.maximumf %203, %205 : vector<2x128xf32>
    %207 = vector.extract_strided_slice %201 {offsets = [0, 512], sizes = [2, 256], strides = [1, 1]} : vector<2x1024xbf16> to vector<2x256xbf16>
    %cst_84 = arith.constant dense<0.000000e+00> : vector<2x128xf32>
    %208 = tpu.matmul %207, %0, %cst_84 {dimension_numbers = #tpu.dot_dimension_numbers<[1], [0], [0], [1], [0, 0, 1, 1], [], []>} : vector<2x256xbf16>, vector<256x128xbf16>, vector<2x128xf32> -> vector<2x128xf32>
    %209 = arith.maximumf %206, %208 : vector<2x128xf32>
    %210 = vector.extract_strided_slice %201 {offsets = [0, 768], sizes = [2, 256], strides = [1, 1]} : vector<2x1024xbf16> to vector<2x256xbf16>
    %cst_85 = arith.constant dense<0.000000e+00> : vector<2x128xf32>
    %211 = tpu.matmul %210, %0, %cst_85 {dimension_numbers = #tpu.dot_dimension_numbers<[1], [0], [0], [1], [0, 0, 1, 1], [], []>} : vector<2x256xbf16>, vector<256x128xbf16>, vector<2x128xf32> -> vector<2x128xf32>
    %212 = arith.maximumf %209, %211 : vector<2x128xf32>
    %213 = vector.broadcast %1 : vector<1x128xf32> to vector<2x128xf32>
    %214 = arith.addf %212, %213 : vector<2x128xf32>
    %cst_86 = arith.constant 0.000000e+00 : f32
    %215 = vector.broadcast %cst_86 : f32 to vector<2x128xf32>
    %216 = arith.maximumf %214, %215 : vector<2x128xf32>
    %217 = arith.truncf %216 : vector<2x128xf32> to vector<2x128xbf16>
    %c12 = arith.constant 12 : index
    %c0_87 = arith.constant 0 : index
    %c0_88 = arith.constant 0 : index
    %218 = vector.load %arg1[%c12, %c0_87, %c0_88] : memref<16x2x1024xbf16, #tpu.memory_space<vmem>>, vector<1x2x1024xbf16>
    %219 = vector.shape_cast %218 : vector<1x2x1024xbf16> to vector<2x1024xbf16>
    %220 = vector.extract_strided_slice %219 {offsets = [0, 0], sizes = [2, 256], strides = [1, 1]} : vector<2x1024xbf16> to vector<2x256xbf16>
    %cst_89 = arith.constant dense<0.000000e+00> : vector<2x128xf32>
    %221 = tpu.matmul %220, %0, %cst_89 {dimension_numbers = #tpu.dot_dimension_numbers<[1], [0], [0], [1], [0, 0, 1, 1], [], []>} : vector<2x256xbf16>, vector<256x128xbf16>, vector<2x128xf32> -> vector<2x128xf32>
    %222 = vector.extract_strided_slice %219 {offsets = [0, 256], sizes = [2, 256], strides = [1, 1]} : vector<2x1024xbf16> to vector<2x256xbf16>
    %cst_90 = arith.constant dense<0.000000e+00> : vector<2x128xf32>
    %223 = tpu.matmul %222, %0, %cst_90 {dimension_numbers = #tpu.dot_dimension_numbers<[1], [0], [0], [1], [0, 0, 1, 1], [], []>} : vector<2x256xbf16>, vector<256x128xbf16>, vector<2x128xf32> -> vector<2x128xf32>
    %224 = arith.maximumf %221, %223 : vector<2x128xf32>
    %225 = vector.extract_strided_slice %219 {offsets = [0, 512], sizes = [2, 256], strides = [1, 1]} : vector<2x1024xbf16> to vector<2x256xbf16>
    %cst_91 = arith.constant dense<0.000000e+00> : vector<2x128xf32>
    %226 = tpu.matmul %225, %0, %cst_91 {dimension_numbers = #tpu.dot_dimension_numbers<[1], [0], [0], [1], [0, 0, 1, 1], [], []>} : vector<2x256xbf16>, vector<256x128xbf16>, vector<2x128xf32> -> vector<2x128xf32>
    %227 = arith.maximumf %224, %226 : vector<2x128xf32>
    %228 = vector.extract_strided_slice %219 {offsets = [0, 768], sizes = [2, 256], strides = [1, 1]} : vector<2x1024xbf16> to vector<2x256xbf16>
    %cst_92 = arith.constant dense<0.000000e+00> : vector<2x128xf32>
    %229 = tpu.matmul %228, %0, %cst_92 {dimension_numbers = #tpu.dot_dimension_numbers<[1], [0], [0], [1], [0, 0, 1, 1], [], []>} : vector<2x256xbf16>, vector<256x128xbf16>, vector<2x128xf32> -> vector<2x128xf32>
    %230 = arith.maximumf %227, %229 : vector<2x128xf32>
    %231 = vector.broadcast %1 : vector<1x128xf32> to vector<2x128xf32>
    %232 = arith.addf %230, %231 : vector<2x128xf32>
    %cst_93 = arith.constant 0.000000e+00 : f32
    %233 = vector.broadcast %cst_93 : f32 to vector<2x128xf32>
    %234 = arith.maximumf %232, %233 : vector<2x128xf32>
    %235 = arith.truncf %234 : vector<2x128xf32> to vector<2x128xbf16>
    %c13 = arith.constant 13 : index
    %c0_94 = arith.constant 0 : index
    %c0_95 = arith.constant 0 : index
    %236 = vector.load %arg1[%c13, %c0_94, %c0_95] : memref<16x2x1024xbf16, #tpu.memory_space<vmem>>, vector<1x2x1024xbf16>
    %237 = vector.shape_cast %236 : vector<1x2x1024xbf16> to vector<2x1024xbf16>
    %238 = vector.extract_strided_slice %237 {offsets = [0, 0], sizes = [2, 256], strides = [1, 1]} : vector<2x1024xbf16> to vector<2x256xbf16>
    %cst_96 = arith.constant dense<0.000000e+00> : vector<2x128xf32>
    %239 = tpu.matmul %238, %0, %cst_96 {dimension_numbers = #tpu.dot_dimension_numbers<[1], [0], [0], [1], [0, 0, 1, 1], [], []>} : vector<2x256xbf16>, vector<256x128xbf16>, vector<2x128xf32> -> vector<2x128xf32>
    %240 = vector.extract_strided_slice %237 {offsets = [0, 256], sizes = [2, 256], strides = [1, 1]} : vector<2x1024xbf16> to vector<2x256xbf16>
    %cst_97 = arith.constant dense<0.000000e+00> : vector<2x128xf32>
    %241 = tpu.matmul %240, %0, %cst_97 {dimension_numbers = #tpu.dot_dimension_numbers<[1], [0], [0], [1], [0, 0, 1, 1], [], []>} : vector<2x256xbf16>, vector<256x128xbf16>, vector<2x128xf32> -> vector<2x128xf32>
    %242 = arith.maximumf %239, %241 : vector<2x128xf32>
    %243 = vector.extract_strided_slice %237 {offsets = [0, 512], sizes = [2, 256], strides = [1, 1]} : vector<2x1024xbf16> to vector<2x256xbf16>
    %cst_98 = arith.constant dense<0.000000e+00> : vector<2x128xf32>
    %244 = tpu.matmul %243, %0, %cst_98 {dimension_numbers = #tpu.dot_dimension_numbers<[1], [0], [0], [1], [0, 0, 1, 1], [], []>} : vector<2x256xbf16>, vector<256x128xbf16>, vector<2x128xf32> -> vector<2x128xf32>
    %245 = arith.maximumf %242, %244 : vector<2x128xf32>
    %246 = vector.extract_strided_slice %237 {offsets = [0, 768], sizes = [2, 256], strides = [1, 1]} : vector<2x1024xbf16> to vector<2x256xbf16>
    %cst_99 = arith.constant dense<0.000000e+00> : vector<2x128xf32>
    %247 = tpu.matmul %246, %0, %cst_99 {dimension_numbers = #tpu.dot_dimension_numbers<[1], [0], [0], [1], [0, 0, 1, 1], [], []>} : vector<2x256xbf16>, vector<256x128xbf16>, vector<2x128xf32> -> vector<2x128xf32>
    %248 = arith.maximumf %245, %247 : vector<2x128xf32>
    %249 = vector.broadcast %1 : vector<1x128xf32> to vector<2x128xf32>
    %250 = arith.addf %248, %249 : vector<2x128xf32>
    %cst_100 = arith.constant 0.000000e+00 : f32
    %251 = vector.broadcast %cst_100 : f32 to vector<2x128xf32>
    %252 = arith.maximumf %250, %251 : vector<2x128xf32>
    %253 = arith.truncf %252 : vector<2x128xf32> to vector<2x128xbf16>
    %c14 = arith.constant 14 : index
    %c0_101 = arith.constant 0 : index
    %c0_102 = arith.constant 0 : index
    %254 = vector.load %arg1[%c14, %c0_101, %c0_102] : memref<16x2x1024xbf16, #tpu.memory_space<vmem>>, vector<1x2x1024xbf16>
    %255 = vector.shape_cast %254 : vector<1x2x1024xbf16> to vector<2x1024xbf16>
    %256 = vector.extract_strided_slice %255 {offsets = [0, 0], sizes = [2, 256], strides = [1, 1]} : vector<2x1024xbf16> to vector<2x256xbf16>
    %cst_103 = arith.constant dense<0.000000e+00> : vector<2x128xf32>
    %257 = tpu.matmul %256, %0, %cst_103 {dimension_numbers = #tpu.dot_dimension_numbers<[1], [0], [0], [1], [0, 0, 1, 1], [], []>} : vector<2x256xbf16>, vector<256x128xbf16>, vector<2x128xf32> -> vector<2x128xf32>
    %258 = vector.extract_strided_slice %255 {offsets = [0, 256], sizes = [2, 256], strides = [1, 1]} : vector<2x1024xbf16> to vector<2x256xbf16>
    %cst_104 = arith.constant dense<0.000000e+00> : vector<2x128xf32>
    %259 = tpu.matmul %258, %0, %cst_104 {dimension_numbers = #tpu.dot_dimension_numbers<[1], [0], [0], [1], [0, 0, 1, 1], [], []>} : vector<2x256xbf16>, vector<256x128xbf16>, vector<2x128xf32> -> vector<2x128xf32>
    %260 = arith.maximumf %257, %259 : vector<2x128xf32>
    %261 = vector.extract_strided_slice %255 {offsets = [0, 512], sizes = [2, 256], strides = [1, 1]} : vector<2x1024xbf16> to vector<2x256xbf16>
    %cst_105 = arith.constant dense<0.000000e+00> : vector<2x128xf32>
    %262 = tpu.matmul %261, %0, %cst_105 {dimension_numbers = #tpu.dot_dimension_numbers<[1], [0], [0], [1], [0, 0, 1, 1], [], []>} : vector<2x256xbf16>, vector<256x128xbf16>, vector<2x128xf32> -> vector<2x128xf32>
    %263 = arith.maximumf %260, %262 : vector<2x128xf32>
    %264 = vector.extract_strided_slice %255 {offsets = [0, 768], sizes = [2, 256], strides = [1, 1]} : vector<2x1024xbf16> to vector<2x256xbf16>
    %cst_106 = arith.constant dense<0.000000e+00> : vector<2x128xf32>
    %265 = tpu.matmul %264, %0, %cst_106 {dimension_numbers = #tpu.dot_dimension_numbers<[1], [0], [0], [1], [0, 0, 1, 1], [], []>} : vector<2x256xbf16>, vector<256x128xbf16>, vector<2x128xf32> -> vector<2x128xf32>
    %266 = arith.maximumf %263, %265 : vector<2x128xf32>
    %267 = vector.broadcast %1 : vector<1x128xf32> to vector<2x128xf32>
    %268 = arith.addf %266, %267 : vector<2x128xf32>
    %cst_107 = arith.constant 0.000000e+00 : f32
    %269 = vector.broadcast %cst_107 : f32 to vector<2x128xf32>
    %270 = arith.maximumf %268, %269 : vector<2x128xf32>
    %271 = arith.truncf %270 : vector<2x128xf32> to vector<2x128xbf16>
    %c15 = arith.constant 15 : index
    %c0_108 = arith.constant 0 : index
    %c0_109 = arith.constant 0 : index
    %272 = vector.load %arg1[%c15, %c0_108, %c0_109] : memref<16x2x1024xbf16, #tpu.memory_space<vmem>>, vector<1x2x1024xbf16>
    %273 = vector.shape_cast %272 : vector<1x2x1024xbf16> to vector<2x1024xbf16>
    %274 = vector.extract_strided_slice %273 {offsets = [0, 0], sizes = [2, 256], strides = [1, 1]} : vector<2x1024xbf16> to vector<2x256xbf16>
    %cst_110 = arith.constant dense<0.000000e+00> : vector<2x128xf32>
    %275 = tpu.matmul %274, %0, %cst_110 {dimension_numbers = #tpu.dot_dimension_numbers<[1], [0], [0], [1], [0, 0, 1, 1], [], []>} : vector<2x256xbf16>, vector<256x128xbf16>, vector<2x128xf32> -> vector<2x128xf32>
    %276 = vector.extract_strided_slice %273 {offsets = [0, 256], sizes = [2, 256], strides = [1, 1]} : vector<2x1024xbf16> to vector<2x256xbf16>
    %cst_111 = arith.constant dense<0.000000e+00> : vector<2x128xf32>
    %277 = tpu.matmul %276, %0, %cst_111 {dimension_numbers = #tpu.dot_dimension_numbers<[1], [0], [0], [1], [0, 0, 1, 1], [], []>} : vector<2x256xbf16>, vector<256x128xbf16>, vector<2x128xf32> -> vector<2x128xf32>
    %278 = arith.maximumf %275, %277 : vector<2x128xf32>
    %279 = vector.extract_strided_slice %273 {offsets = [0, 512], sizes = [2, 256], strides = [1, 1]} : vector<2x1024xbf16> to vector<2x256xbf16>
    %cst_112 = arith.constant dense<0.000000e+00> : vector<2x128xf32>
    %280 = tpu.matmul %279, %0, %cst_112 {dimension_numbers = #tpu.dot_dimension_numbers<[1], [0], [0], [1], [0, 0, 1, 1], [], []>} : vector<2x256xbf16>, vector<256x128xbf16>, vector<2x128xf32> -> vector<2x128xf32>
    %281 = arith.maximumf %278, %280 : vector<2x128xf32>
    %282 = vector.extract_strided_slice %273 {offsets = [0, 768], sizes = [2, 256], strides = [1, 1]} : vector<2x1024xbf16> to vector<2x256xbf16>
    %cst_113 = arith.constant dense<0.000000e+00> : vector<2x128xf32>
    %283 = tpu.matmul %282, %0, %cst_113 {dimension_numbers = #tpu.dot_dimension_numbers<[1], [0], [0], [1], [0, 0, 1, 1], [], []>} : vector<2x256xbf16>, vector<256x128xbf16>, vector<2x128xf32> -> vector<2x128xf32>
    %284 = arith.maximumf %281, %283 : vector<2x128xf32>
    %285 = vector.broadcast %1 : vector<1x128xf32> to vector<2x128xf32>
    %286 = arith.addf %284, %285 : vector<2x128xf32>
    %cst_114 = arith.constant 0.000000e+00 : f32
    %287 = vector.broadcast %cst_114 : f32 to vector<2x128xf32>
    %288 = arith.maximumf %286, %287 : vector<2x128xf32>
    %289 = arith.truncf %288 : vector<2x128xf32> to vector<2x128xbf16>
    %290 = tpu.concatenate %19, %37, %55, %73, %91, %109, %127, %145, %163, %181, %199, %217, %235, %253, %271, %289 in 1 : vector<2x128xbf16>, vector<2x128xbf16>, vector<2x128xbf16>, vector<2x128xbf16>, vector<2x128xbf16>, vector<2x128xbf16>, vector<2x128xbf16>, vector<2x128xbf16>, vector<2x128xbf16>, vector<2x128xbf16>, vector<2x128xbf16>, vector<2x128xbf16>, vector<2x128xbf16>, vector<2x128xbf16>, vector<2x128xbf16>, vector<2x128xbf16> -> vector<2x2048xbf16>
    %c0_115 = arith.constant 0 : index
    %c0_116 = arith.constant 0 : index
    %291 = vector.load %arg4[%c0_115, %c0_116] : memref<2048x128xbf16, #tpu.memory_space<vmem>>, vector<2048x128xbf16>
    %cst_117 = arith.constant dense<0.000000e+00> : vector<2x128xf32>
    %292 = tpu.matmul %290, %291, %cst_117 {dimension_numbers = #tpu.dot_dimension_numbers<[1], [0], [0], [1], [0, 0, 1, 1], [], []>} : vector<2x2048xbf16>, vector<2048x128xbf16>, vector<2x128xf32> -> vector<2x128xf32>
    %c0_118 = arith.constant 0 : index
    %c0_119 = arith.constant 0 : index
    %293 = vector.load %arg5[%c0_118, %c0_119] : memref<1x128xf32, #tpu.memory_space<vmem>>, vector<1x128xf32>
    %294 = vector.broadcast %293 : vector<1x128xf32> to vector<2x128xf32>
    %295 = arith.addf %292, %294 : vector<2x128xf32>
    %cst_120 = arith.constant 0.000000e+00 : f32
    %296 = vector.broadcast %cst_120 : f32 to vector<2x128xf32>
    %297 = arith.maximumf %295, %296 : vector<2x128xf32>
    %298 = arith.truncf %297 : vector<2x128xf32> to vector<2x128xbf16>
    %c0_121 = arith.constant 0 : index
    %c0_122 = arith.constant 0 : index
    %299 = vector.load %arg6[%c0_121, %c0_122] : memref<128x128xbf16, #tpu.memory_space<vmem>>, vector<128x128xbf16>
    %cst_123 = arith.constant dense<0.000000e+00> : vector<2x128xf32>
    %300 = tpu.matmul %298, %299, %cst_123 {dimension_numbers = #tpu.dot_dimension_numbers<[1], [0], [0], [1], [0, 0, 1, 1], [], []>} : vector<2x128xbf16>, vector<128x128xbf16>, vector<2x128xf32> -> vector<2x128xf32>
    %c0_124 = arith.constant 0 : index
    %c0_125 = arith.constant 0 : index
    %301 = vector.load %arg7[%c0_124, %c0_125] : memref<1x128xf32, #tpu.memory_space<vmem>>, vector<1x128xf32>
    %302 = vector.broadcast %301 : vector<1x128xf32> to vector<2x128xf32>
    %303 = arith.addf %300, %302 : vector<2x128xf32>
    %cst_126 = arith.constant dense<0xFF800000> : vector<2xf32>
    %304 = vector.multi_reduction <maximumf>, %303, %cst_126 [1] : vector<2x128xf32> to vector<2xf32>
    %305 = vector.shape_cast %304 : vector<2xf32> to vector<2x1xf32>
    %306 = vector.broadcast %305 : vector<2x1xf32> to vector<2x128xf32>
    %307 = arith.subf %303, %306 : vector<2x128xf32>
    %308 = math.exp %307 : vector<2x128xf32>
    %cst_127 = arith.constant dense<0.000000e+00> : vector<2xf32>
    %309 = vector.multi_reduction <add>, %308, %cst_127 [1] : vector<2x128xf32> to vector<2xf32>
    %310 = vector.shape_cast %309 : vector<2xf32> to vector<2x1xf32>
    %311 = math.log %310 : vector<2x1xf32>
    %312 = vector.broadcast %311 : vector<2x1xf32> to vector<2x128xf32>
    %313 = arith.subf %307, %312 : vector<2x128xf32>
    %c0_128 = arith.constant 0 : index
    %c0_129 = arith.constant 0 : index
    %314 = vector.load %arg8[%c0_128, %c0_129] : memref<2x128xf32, #tpu.memory_space<vmem>>, vector<2x128xf32>
    tpu.vector_store %arg8[%c0_128, %c0_129], %313 {strides = array<i32>} : memref<2x128xf32, #tpu.memory_space<vmem>>, vector<2x128xf32>,
    return
  }
  func.func @transform_0(%arg0: i32) -> (i32, i32, i32) {
    %c0_i32 = arith.constant 0 : i32
    %c0_i32_0 = arith.constant 0 : i32
    %c0_i32_1 = arith.constant 0 : i32
    return %c0_i32, %arg0, %c0_i32_0 : i32, i32, i32
  }
  func.func @transform_1(%arg0: i32) -> (i32, i32) {
    %c0_i32 = arith.constant 0 : i32
    %c0_i32_0 = arith.constant 0 : i32
    %c0_i32_1 = arith.constant 0 : i32
    return %c0_i32, %c0_i32_0 : i32, i32
  }
  func.func @transform_2(%arg0: i32) -> (i32, i32) {
    %c0_i32 = arith.constant 0 : i32
    %c0_i32_0 = arith.constant 0 : i32
    %c0_i32_1 = arith.constant 0 : i32
    return %c0_i32, %c0_i32_0 : i32, i32
  }
  func.func @transform_3(%arg0: i32) -> (i32, i32) {
    %c0_i32 = arith.constant 0 : i32
    %c0_i32_0 = arith.constant 0 : i32
    %c0_i32_1 = arith.constant 0 : i32
    return %c0_i32, %c0_i32_0 : i32, i32
  }
  func.func @transform_4(%arg0: i32) -> (i32, i32) {
    %c0_i32 = arith.constant 0 : i32
    %c0_i32_0 = arith.constant 0 : i32
    %c0_i32_1 = arith.constant 0 : i32
    return %c0_i32, %c0_i32_0 : i32, i32
  }
  func.func @transform_5(%arg0: i32) -> (i32, i32) {
    %c0_i32 = arith.constant 0 : i32
    %c0_i32_0 = arith.constant 0 : i32
    %c0_i32_1 = arith.constant 0 : i32
    return %c0_i32, %c0_i32_0 : i32, i32
  }
  func.func @transform_6(%arg0: i32) -> (i32, i32) {
    %c0_i32 = arith.constant 0 : i32
    %c0_i32_0 = arith.constant 0 : i32
    %c0_i32_1 = arith.constant 0 : i32
    return %c0_i32, %c0_i32_0 : i32, i32
  }
  func.func @transform_7(%arg0: i32) -> (i32, i32) {
    %c0_i32 = arith.constant 0 : i32
    %c0_i32_0 = arith.constant 0 : i32
    return %arg0, %c0_i32 : i32, i32
  }
}

</mosaic_0001>

<bundles_post_ra>
// kernel: _cnn_mnist_forward.2
= control target key start
LH: loop header
LB: loop body
LE: loop exit
PB: predicated region body
PF: predicated region fallthrough
CT: control target
= control target key end

     0   :  { %s2101_s12 = smov 0   ;;  %s2103_s13 = smov 0   ;;  %s2585_s0 = inlined_call_operand.vmem [shape: bf16[4,288,25], index: 0, kind: input, shape index: {}]   ;;  %s2586_s1 = inlined_call_operand.vmem [shape: bf16[25,128], index: 1, kind: input, shape index: {}]   ;;  %s2587_s2 = inlined_call_operand.vmem [shape: f32[1,128], index: 2, kind: input, shape index: {}]   ;;  %s2588_s3 = inlined_call_operand.vmem [shape: bf16[288,128], index: 3, kind: output, shape index: {}]  }
   0x1   :  { %s2105_s14 = smov 0  }
   0x2 LB: > { %s1555_s15 = sadd.s32 4294967295, %s2076_s14   ;;  %s2118_s16 = sadd.s32 1, %s2076_s14   ;;  %s2076_s14 = sphi %s2105_s14, %s2594_s14   ;;  %s2072_s13 = sphi %s2103_s13, %s2593_s13   ;;  %s2068_s12 = sphi %s2101_s12, %s2592_s12  }
   0x3   : > { %s17_s17 = ssub.s32 %s2076_s14, %s2118_s16  ;;  %s20_s18 = sadd.s32 1, %s2072_s13 }
   0x4   : > { %p18_p0 = scmp.eq.s32.totalorder %s17_s17, 0  ;;  %p27_p1 = scmp.ne.s32.totalorder %s2072_s13, %s2068_s12 }
   0x5   : > { %p28_p2 = scmp.eq.s32.totalorder %s2076_s14, 0  ;;  %p1558_p4 = scmp.ge.s32.totalorder %s2076_s14, 2 }
   0x6   : > { %s2127_s19 = scalar_select %p18_p0, %s2072_s13, %s20_s18  }
   0x7   : > { %p29_p3 = por %p28_p2, %p27_p1  ;;  %127 = sbr.rel (%p1558_p4) target bundleno = 37 (0x25), region = 24 }
   0xe   : > { %130 = sbr.rel (!%p29_p3) target bundleno = 37 (0x25), region = 28  ;;  %s132_s20 = sand.u32 (%p29_p3), 1, %s2072_s13  }
   0xf   : > { %s1711_s21 = smul.u32 (%p29_p3), 72, %s2076_s14 }
  0x10   : > { %s1987_s22 = smul.u32 (%p29_p3), 288, %s132_s20 }
  0x11   : > { %s2135_s25 = scalar_lea.vmem (%p29_p3), %s2585_s0, %s1711_s21 }
  0x12   : > { %v153_v0 = vld [vmem:[%s2135_s25] sm:$0xff] (%p29_p3)   ;;  %v157_v1 = vld [vmem:[%s2135_s25 + $0x8] sm:$0xff] (%p29_p3)   ;;  %v161_v2 = vld [vmem:[%s2135_s25 + $0x10] sm:$0xff] (%p29_p3)   ;;  %s2140_s26 = scalar_lea.vmem (%p29_p3), [#allocation2], %s1987_s22 }
  0x13   : > { %154 = vst [vmem:[%s2140_s26] sm:$0xff] (%p29_p3), %v153_v0   ;;  %158 = vst [vmem:[%s2140_s26 + $0x8] sm:$0xff] (%p29_p3), %v157_v1   ;;  %v165_v3 = vld [vmem:[%s2135_s25 + $0x18] sm:$0xff] (%p29_p3)   ;;  %v169_v4 = vld [vmem:[%s2135_s25 + $0x20] sm:$0xff] (%p29_p3)  }
  0x14   : > { %162 = vst [vmem:[%s2140_s26 + $0x10] sm:$0xff] (%p29_p3), %v161_v2   ;;  %v173_v5 = vld [vmem:[%s2135_s25 + $0x28] sm:$0xff] (%p29_p3)   ;;  %166 = vst [vmem:[%s2140_s26 + $0x18] sm:$0xff] (%p29_p3), %v165_v3   ;;  %v177_v6 = vld [vmem:[%s2135_s25 + $0x30] sm:$0xff] (%p29_p3)  }
  0x15   : > { %170 = vst [vmem:[%s2140_s26 + $0x20] sm:$0xff] %v169_v4   ;;  %174 = vst [vmem:[%s2140_s26 + $0x28] sm:$0xff] %v173_v5   ;;  %v181_v7 = vld [vmem:[%s2135_s25 + $0x38] sm:$0xff]   ;;  %v185_v8 = vld [vmem:[%s2135_s25 + $0x40] sm:$0xff]  }
  0x16   : > { %178 = vst [vmem:[%s2140_s26 + $0x30] sm:$0xff] %v177_v6   ;;  %182 = vst [vmem:[%s2140_s26 + $0x38] sm:$0xff] %v181_v7   ;;  %v189_v9 = vld [vmem:[%s2135_s25 + $0x90] sm:$0xff]   ;;  %v193_v10 = vld [vmem:[%s2135_s25 + $0x98] sm:$0xff]  }
  0x17   : > { %186 = vst [vmem:[%s2140_s26 + $0x40] sm:$0xff] %v185_v8   ;;  %v197_v11 = vld [vmem:[%s2135_s25 + $0xa0] sm:$0xff]   ;;  %190 = vst [vmem:[%s2140_s26 + $0x48] sm:$0xff] %v189_v9   ;;  %v201_v12 = vld [vmem:[%s2135_s25 + $0xa8] sm:$0xff]  }
  0x18   : > { %194 = vst [vmem:[%s2140_s26 + $0x50] sm:$0xff] %v193_v10   ;;  %198 = vst [vmem:[%s2140_s26 + $0x58] sm:$0xff] %v197_v11   ;;  %v205_v13 = vld [vmem:[%s2135_s25 + $0xb0] sm:$0xff]   ;;  %v209_v14 = vld [vmem:[%s2135_s25 + $0xb8] sm:$0xff]  }
  0x19   : > { %202 = vst [vmem:[%s2140_s26 + $0x60] sm:$0xff] %v201_v12   ;;  %206 = vst [vmem:[%s2140_s26 + $0x68] sm:$0xff] %v205_v13   ;;  %v213_v15 = vld [vmem:[%s2135_s25 + $0xc0] sm:$0xff]   ;;  %v217_v16 = vld [vmem:[%s2135_s25 + $0xc8] sm:$0xff]  }
  0x1a   : > { %210 = vst [vmem:[%s2140_s26 + $0x70] sm:$0xff] %v209_v14   ;;  %v221_v17 = vld [vmem:[%s2135_s25 + $0xd0] sm:$0xff]   ;;  %214 = vst [vmem:[%s2140_s26 + $0x78] sm:$0xff] %v213_v15   ;;  %v225_v18 = vld [vmem:[%s2135_s25 + $0x120] sm:$0xff]  }
  0x1b   : > { %218 = vst [vmem:[%s2140_s26 + $0x80] sm:$0xff] %v217_v16   ;;  %222 = vst [vmem:[%s2140_s26 + $0x88] sm:$0xff] %v221_v17   ;;  %v229_v19 = vld [vmem:[%s2135_s25 + $0x128] sm:$0xff]   ;;  %v233_v20 = vld [vmem:[%s2135_s25 + $0x130] sm:$0xff]  }
  0x1c   : > { %226 = vst [vmem:[%s2140_s26 + $0x90] sm:$0xff] %v225_v18   ;;  %230 = vst [vmem:[%s2140_s26 + $0x98] sm:$0xff] %v229_v19   ;;  %v237_v21 = vld [vmem:[%s2135_s25 + $0x138] sm:$0xff]   ;;  %v241_v22 = vld [vmem:[%s2135_s25 + $0x140] sm:$0xff]  }
  0x1d   : > { %234 = vst [vmem:[%s2140_s26 + $0xa0] sm:$0xff] %v233_v20   ;;  %v245_v23 = vld [vmem:[%s2135_s25 + $0x148] sm:$0xff]   ;;  %238 = vst [vmem:[%s2140_s26 + $0xa8] sm:$0xff] %v237_v21   ;;  %v249_v24 = vld [vmem:[%s2135_s25 + $0x150] sm:$0xff]  }
  0x1e   : > { %242 = vst [vmem:[%s2140_s26 + $0xb0] sm:$0xff] %v241_v22   ;;  %246 = vst [vmem:[%s2140_s26 + $0xb8] sm:$0xff] %v245_v23   ;;  %v253_v25 = vld [vmem:[%s2135_s25 + $0x158] sm:$0xff]   ;;  %v257_v26 = vld [vmem:[%s2135_s25 + $0x160] sm:$0xff]  }
  0x1f   : > { %250 = vst [vmem:[%s2140_s26 + $0xc0] sm:$0xff] %v249_v24   ;;  %254 = vst [vmem:[%s2140_s26 + $0xc8] sm:$0xff] %v253_v25   ;;  %v261_v27 = vld [vmem:[%s2135_s25 + $0x1b0] sm:$0xff]   ;;  %v265_v28 = vld [vmem:[%s2135_s25 + $0x1b8] sm:$0xff]  }
  0x20   : > { %258 = vst [vmem:[%s2140_s26 + $0xd0] sm:$0xff] %v257_v26   ;;  %v269_v29 = vld [vmem:[%s2135_s25 + $0x1c0] sm:$0xff]   ;;  %262 = vst [vmem:[%s2140_s26 + $0xd8] sm:$0xff] %v261_v27   ;;  %v273_v30 = vld [vmem:[%s2135_s25 + $0x1c8] sm:$0xff]  }
  0x21   : > { %266 = vst [vmem:[%s2140_s26 + $0xe0] sm:$0xff] %v265_v28   ;;  %270 = vst [vmem:[%s2140_s26 + $0xe8] sm:$0xff] %v269_v29   ;;  %v277_v31 = vld [vmem:[%s2135_s25 + $0x1d0] sm:$0xff]   ;;  %v281_v32 = vld [vmem:[%s2135_s25 + $0x1d8] sm:$0xff]  }
  0x22   : > { %274 = vst [vmem:[%s2140_s26 + $0xf0] sm:$0xff] %v273_v30   ;;  %278 = vst [vmem:[%s2140_s26 + $0xf8] sm:$0xff] %v277_v31   ;;  %v285_v33 = vld [vmem:[%s2135_s25 + $0x1e0] sm:$0xff]   ;;  %v289_v34 = vld [vmem:[%s2135_s25 + $0x1e8] sm:$0xff]  }
  0x23   : > { %282 = vst [vmem:[%s2140_s26 + $0x100] sm:$0xff] %v281_v32   ;;  %v293_v35 = vld [vmem:[%s2135_s25 + $0x1f0] sm:$0xff]   ;;  %286 = vst [vmem:[%s2140_s26 + $0x108] sm:$0xff] %v285_v33  }
  0x24   : > { %290 = vst [vmem:[%s2140_s26 + $0x110] sm:$0xff] %v289_v34   ;;  %294 = vst [vmem:[%s2140_s26 + $0x118] sm:$0xff] %v293_v35  }
  0x25 PF: > { %p1560_p5 = scmp.ge.s32.totalorder %s2076_s14, 1  ;;  %p462_p6 = scmp.lt.s32.totalorder %s2076_s14, 3 }
  0x27   : > { %p463_p7 = pnand %p1560_p5, %p462_p6 }
  0x28   : > { %v2016_v36 = vld [vmem:[%s2586_s1] sm:$0xff] (!%p463_p7)   ;;  %v2078_v37 = vmov (!%p463_p7), 0.0   ;;  %v2017_v38 = vld [vmem:[%s2586_s1 + $0x8] sm:$0x1f] (!%p463_p7)   ;;  %vm606_vm0 = vcmask (!%p463_p7), 1043456   ;;  %vm607_vm1 = vcmask (!%p463_p7), 1044480  }
  0x29   : > { %466 = sbr.rel (%p463_p7) target bundleno = 410 (0x19a), region = 69  ;;  %1827 = vmatprep.subr.bf16.mxu0 (!%p463_p7), %v2078_v37  ;;  %1867 = vmatprep.subr.bf16.mxu1 (!%p463_p7), %v2078_v37  ;;  %s469_s4 = sand.u32 (!%p463_p7), 1, %s2068_s12   ;;  %v2079_v39 = vmov (!%p463_p7), 65535   ;;  %vm2080_vm2 = vmmov (!%p463_p7), 0   ;;  %vm578_vm3 = vcmask (!%p463_p7), 203776  }
  0x2a   : > { %1828 = vmatpush3.bf16.msra.mxu0 (!%p463_p7), %v2016_v36  ;;  %1868 = vmatpush3.bf16.msra.mxu1 (!%p463_p7), %v2016_v36  ;;  %v608_v40 = vsel (!%p463_p7), %vm606_vm0, 4294967295, %v2079_v39  ;;  %s1988_s5 = smul.u32 (!%p463_p7), 288, %s469_s4 }
  0x2b   : > { %1829 = vmatprep.subr.bf16.mxu0 (!%p463_p7), %v2078_v37  ;;  %1869 = vmatprep.subr.bf16.mxu1 (!%p463_p7), %v2078_v37  ;;  %v609_v41 = vsel (!%p463_p7), %vm607_vm1, %v608_v40, 0  ;;  %s493_s7 = smul.u32 (!%p463_p7), 18, %s1555_s15 }
  0x2c   : > { %1831 = vmatprep.mubr.msk.bf16.mxu0 (!%p463_p7), %vm2080_vm2, %v2078_v37  ;;  %1871 = vmatprep.mubr.msk.bf16.mxu1 (!%p463_p7), %vm2080_vm2, %v2078_v37  ;;  %v611_v42 = vand.u32 (!%p463_p7), %v2017_v38, %v609_v41  ;;  %s2228_s6 = scalar_lea.vmem (!%p463_p7), [#allocation2], %s1988_s5 }
  0x2d   : > { %v2018_v43 = vld [vmem:[%s2228_s6] sm:$0xff] (!%p463_p7)   ;;  %v2019_v44 = vld [vmem:[%s2228_s6 + $0x48] sm:$0xff] (!%p463_p7)   ;;  %v2021_v46 = vld [vmem:[%s2228_s6 + $0x50] sm:$0xff] (!%p463_p7)   ;;  %p494_p8 = scmp.lt.s32.totalorder (!%p463_p7), %s493_s7, 35 }
  0x2e   : > { %1830 = vmatpush3.bf16.msra.mxu0 (!%p463_p7), %v611_v42  ;;  %1870 = vmatpush3.bf16.msra.mxu1 (!%p463_p7), %v611_v42  ;;  %v2020_v45 = vld [vmem:[%s2228_s6 + $0x8] sm:$0xff] (!%p463_p7)   ;;  %v2022_v47 = vld [vmem:[%s2228_s6 + $0x10] sm:$0xff] (!%p463_p7)   ;;  %v2023_v48 = vld [vmem:[%s2228_s6 + $0x58] sm:$0xff] (!%p463_p7)  }
  0x2f   : > { %1907 = vmatprep.subr.bf16.mxu0 (!%p463_p7), %v2078_v37  ;;  %1947 = vmatprep.subr.bf16.mxu1 (!%p463_p7), %v2078_v37  ;;  %v2024_v49 = vld [vmem:[%s2228_s6 + $0x18] sm:$0xff] (!%p463_p7)   ;;  %v2025_v50 = vld [vmem:[%s2228_s6 + $0x60] sm:$0xff] (!%p463_p7)   ;;  %v2027_v52 = vld [vmem:[%s2228_s6 + $0x68] sm:$0xff] (!%p463_p7)  }
  0x30   : > { %v2026_v51 = vld [vmem:[%s2228_s6 + $0x20] sm:$0xff]   ;;  %v2028_v53 = vld [vmem:[%s2228_s6 + $0x28] sm:$0xff]   ;;  %v2029_v54 = vld [vmem:[%s2228_s6 + $0x70] sm:$0xff]   ;;  %s2596_s7 = smov (!%p494_p8, %s493_s7), 35 }
  0x31   : > { %1832 = vmatmul.mubr.msk.bf16.vlgmr.msra.gmra.mrb[0].mxu0 %vm578_vm3, %v2018_v43  ;;  %1872 = vmatmul.mubr.msk.bf16.vlgmr.msra.gmra.mrb[0].mxu1 %vm578_vm3, %v2019_v44  ;;  %v2030_v55 = vld [vmem:[%s2228_s6 + $0x30] sm:$0xff]   ;;  %v2031_v56 = vld [vmem:[%s2228_s6 + $0x78] sm:$0xff]   ;;  %v2033_v58 = vld [vmem:[%s2228_s6 + $0x80] sm:$0xff]   ;;  %s1561_s10 = sshll.u32 %s2596_s7, 2 }
  0x32   : > { %1908 = vmatpush3.bf16.msra.mxu0 %v2016_v36  ;;  %1948 = vmatpush3.bf16.msra.mxu1 %v2016_v36  ;;  %v2032_v57 = vld [vmem:[%s2228_s6 + $0x38] sm:$0xff]   ;;  %v2034_v59 = vld [vmem:[%s2228_s6 + $0x40] sm:$0xff]   ;;  %v2035_v60 = vld [vmem:[%s2228_s6 + $0x88] sm:$0xff]   ;;  %s2503_s14 = scalar_lea.vmem %s2588_s3, %s1561_s10 }
  0x33   : > { %1835 = vmatprep.mubr.msk.bf16.mxu0 %vm2080_vm2, %v2078_v37  ;;  %1875 = vmatprep.mubr.msk.bf16.mxu1 %vm2080_vm2, %v2078_v37  ;;  %v2036_v61 = vld [vmem:[%s2228_s6 + $0x90] sm:$0xff]   ;;  %v2037_v62 = vld [vmem:[%s2228_s6 + $0xd8] sm:$0xff]   ;;  %v2039_v0 = vld [vmem:[%s2228_s6 + $0xe0] sm:$0xff]  }
  0x34   : > { %1909 = vmatprep.subr.bf16.mxu0 %v2078_v37  ;;  %1949 = vmatprep.subr.bf16.mxu1 %v2078_v37  ;;  %v2038_v63 = vld [vmem:[%s2228_s6 + $0x98] sm:$0xff]   ;;  %v2040_v1 = vld [vmem:[%s2228_s6 + $0xa0] sm:$0xff]   ;;  %v2041_v2 = vld [vmem:[%s2228_s6 + $0xe8] sm:$0xff]  }
  0x35   : > { %v2042_v3 = vld [vmem:[%s2228_s6 + $0xa8] sm:$0xff]   ;;  %v2043_v4 = vld [vmem:[%s2228_s6 + $0xf0] sm:$0xff]   ;;  %v2045_v6 = vld [vmem:[%s2228_s6 + $0xf8] sm:$0xff]  }
  0x36   : > { %1910 = vmatpush3.bf16.msra.mxu0 %v611_v42  ;;  %1950 = vmatpush3.bf16.msra.mxu1 %v611_v42  ;;  %v2044_v5 = vld [vmem:[%s2228_s6 + $0xb0] sm:$0xff]   ;;  %v2046_v7 = vld [vmem:[%s2228_s6 + $0xb8] sm:$0xff]   ;;  %v2047_v8 = vld [vmem:[%s2228_s6 + $0x100] sm:$0xff]  }
  0x37   : > { %v2048_v9 = vld [vmem:[%s2228_s6 + $0xc0] sm:$0xff]   ;;  %v2049_v10 = vld [vmem:[%s2228_s6 + $0x108] sm:$0xff]   ;;  %v2051_v12 = vld [vmem:[%s2228_s6 + $0x110] sm:$0xff]  }
  0x38   : > { %v2050_v11 = vld [vmem:[%s2228_s6 + $0xc8] sm:$0xff]   ;;  %v2052_v13 = vld [vmem:[%s2228_s6 + $0xd0] sm:$0xff]   ;;  %v2053_v14 = vld [vmem:[%s2228_s6 + $0x118] sm:$0xff]  }
  0x39   : > { %1836 = vmatmul.mubr.msk.bf16.gmra.mrb[4].mxu0 %vm578_vm3, %v2020_v45  ;;  %1876 = vmatmul.mubr.msk.bf16.gmra.mrb[4].mxu1 %vm578_vm3, %v2021_v46 }
  0x3a   : > { %1839 = vmatprep.mubr.msk.bf16.mxu0 %vm2080_vm2, %v2078_v37  ;;  %1879 = vmatprep.mubr.msk.bf16.mxu1 %vm2080_vm2, %v2078_v37 }
  0x41   : > { %1840 = vmatmul.mubr.msk.bf16.gmra.mrb[8].mxu0 %vm578_vm3, %v2022_v47  ;;  %1880 = vmatmul.mubr.msk.bf16.gmra.mrb[8].mxu1 %vm578_vm3, %v2023_v48 }
  0x42   : > { %1843 = vmatprep.mubr.msk.bf16.mxu0 %vm2080_vm2, %v2078_v37  ;;  %1883 = vmatprep.mubr.msk.bf16.mxu1 %vm2080_vm2, %v2078_v37 }
  0x49   : > { %1844 = vmatmul.mubr.msk.bf16.gmra.mrb[12].mxu0 %vm578_vm3, %v2024_v49  ;;  %1884 = vmatmul.mubr.msk.bf16.gmra.mrb[12].mxu1 %vm578_vm3, %v2025_v50 }
  0x4a   : > { %1847 = vmatprep.mubr.msk.bf16.mxu0 %vm2080_vm2, %v2078_v37  ;;  %1887 = vmatprep.mubr.msk.bf16.mxu1 %vm2080_vm2, %v2078_v37 }
  0x51   : > { %1848 = vmatmul.mubr.msk.bf16.gmra.mrb[16].mxu0 %vm578_vm3, %v2026_v51  ;;  %1888 = vmatmul.mubr.msk.bf16.gmra.mrb[16].mxu1 %vm578_vm3, %v2027_v52 }
  0x52   : > { %1851 = vmatprep.mubr.msk.bf16.mxu0 %vm2080_vm2, %v2078_v37  ;;  %1891 = vmatprep.mubr.msk.bf16.mxu1 %vm2080_vm2, %v2078_v37 }
  0x59   : > { %1852 = vmatmul.mubr.msk.bf16.gmra.mrb[20].mxu0 %vm578_vm3, %v2028_v53  ;;  %1892 = vmatmul.mubr.msk.bf16.gmra.mrb[20].mxu1 %vm578_vm3, %v2029_v54 }
  0x5a   : > { %1855 = vmatprep.mubr.msk.bf16.mxu0 %vm2080_vm2, %v2078_v37  ;;  %1895 = vmatprep.mubr.msk.bf16.mxu1 %vm2080_vm2, %v2078_v37 }
  0x61   : > { %1856 = vmatmul.mubr.msk.bf16.gmra.mrb[24].mxu0 %vm578_vm3, %v2030_v55  ;;  %1896 = vmatmul.mubr.msk.bf16.gmra.mrb[24].mxu1 %vm578_vm3, %v2031_v56 }
  0x62   : > { %1859 = vmatprep.mubr.msk.bf16.mxu0 %vm2080_vm2, %v2078_v37  ;;  %1899 = vmatprep.mubr.msk.bf16.mxu1 %vm2080_vm2, %v2078_v37 }
  0x69   : > { %1860 = vmatmul.mubr.msk.bf16.gmra.mrb[28].mxu0 %vm578_vm3, %v2032_v57  ;;  %1900 = vmatmul.mubr.msk.bf16.gmra.mrb[28].mxu1 %vm578_vm3, %v2033_v58 }
  0x6a   : > { %1863 = vmatprep.mubr.msk.bf16.mxu0 %vm2080_vm2, %v2078_v37  ;;  %1903 = vmatprep.mubr.msk.bf16.mxu1 %vm2080_vm2, %v2078_v37 }
  0x71   : > { %1864 = vmatmul.mubr.msk.bf16.gmra.mrb[32].mxu0 %vm578_vm3, %v2034_v59  ;;  %1904 = vmatmul.mubr.msk.bf16.gmra.mrb[32].mxu1 %vm578_vm3, %v2035_v60 }
  0x72   : > { %1911 = vmatprep.mubr.msk.bf16.mxu0 %vm2080_vm2, %v2078_v37  ;;  %1951 = vmatprep.mubr.msk.bf16.mxu1 %vm2080_vm2, %v2078_v37 }
  0x79   : > { %1912 = vmatmul.mubr.msk.bf16.vlgmr.msra.gmra.mrb[36].mxu0 %vm578_vm3, %v2036_v61  ;;  %1952 = vmatmul.mubr.msk.bf16.vlgmr.msra.gmra.mrb[36].mxu1 %vm578_vm3, %v2037_v62 }
  0x7a   : > { %1915 = vmatprep.mubr.msk.bf16.mxu0 %vm2080_vm2, %v2078_v37  ;;  %1955 = vmatprep.mubr.msk.bf16.mxu1 %vm2080_vm2, %v2078_v37 }
  0x81   : > { %1916 = vmatmul.mubr.msk.bf16.gmra.mrb[40].mxu0 %vm578_vm3, %v2038_v63  ;;  %1956 = vmatmul.mubr.msk.bf16.gmra.mrb[40].mxu1 %vm578_vm3, %v2039_v0 }
  0x82   : > { %1919 = vmatprep.mubr.msk.bf16.mxu0 %vm2080_vm2, %v2078_v37  ;;  %1959 = vmatprep.mubr.msk.bf16.mxu1 %vm2080_vm2, %v2078_v37 }
  0x89   : > { %1920 = vmatmul.mubr.msk.bf16.gmra.mrb[44].mxu0 %vm578_vm3, %v2040_v1  ;;  %1960 = vmatmul.mubr.msk.bf16.gmra.mrb[44].mxu1 %vm578_vm3, %v2041_v2 }
  0x8a   : > { %1923 = vmatprep.mubr.msk.bf16.mxu0 %vm2080_vm2, %v2078_v37  ;;  %1963 = vmatprep.mubr.msk.bf16.mxu1 %vm2080_vm2, %v2078_v37 }
  0x91   : > { %1924 = vmatmul.mubr.msk.bf16.gmra.mrb[48].mxu0 %vm578_vm3, %v2042_v3  ;;  %1964 = vmatmul.mubr.msk.bf16.gmra.mrb[48].mxu1 %vm578_vm3, %v2043_v4 }
  0x92   : > { %1927 = vmatprep.mubr.msk.bf16.mxu0 %vm2080_vm2, %v2078_v37  ;;  %1967 = vmatprep.mubr.msk.bf16.mxu1 %vm2080_vm2, %v2078_v37 }
  0x99   : > { %1928 = vmatmul.mubr.msk.bf16.gmra.mrb[52].mxu0 %vm578_vm3, %v2044_v5  ;;  %1968 = vmatmul.mubr.msk.bf16.gmra.mrb[52].mxu1 %vm578_vm3, %v2045_v6 }
  0x9a   : > { %1931 = vmatprep.mubr.msk.bf16.mxu0 %vm2080_vm2, %v2078_v37  ;;  %1971 = vmatprep.mubr.msk.bf16.mxu1 %vm2080_vm2, %v2078_v37 }
  0xa1   : > { %1932 = vmatmul.mubr.msk.bf16.gmra.mrb[56].mxu0 %vm578_vm3, %v2046_v7  ;;  %1972 = vmatmul.mubr.msk.bf16.gmra.mrb[56].mxu1 %vm578_vm3, %v2047_v8 }
  0xa2   : > { %1935 = vmatprep.mubr.msk.bf16.mxu0 %vm2080_vm2, %v2078_v37  ;;  %1975 = vmatprep.mubr.msk.bf16.mxu1 %vm2080_vm2, %v2078_v37 }
  0xa9   : > { %1936 = vmatmul.mubr.msk.bf16.gmra.mrb[60].mxu0 %vm578_vm3, %v2048_v9  ;;  %1976 = vmatmul.mubr.msk.bf16.gmra.mrb[60].mxu1 %vm578_vm3, %v2049_v10 }
  0xaa   : > { %1939 = vmatprep.mubr.msk.bf16.mxu0 %vm2080_vm2, %v2078_v37  ;;  %1979 = vmatprep.mubr.msk.bf16.mxu1 %vm2080_vm2, %v2078_v37 }
  0xb1   : > { %1940 = vmatmul.mubr.msk.bf16.gmra.mrb[64].mxu0 %vm578_vm3, %v2050_v11  ;;  %1980 = vmatmul.mubr.msk.bf16.gmra.mrb[64].mxu1 %vm578_vm3, %v2051_v12 }
  0xb2   : > { %1943 = vmatprep.mubr.msk.bf16.mxu0 %vm2080_vm2, %v2078_v37  ;;  %1983 = vmatprep.mubr.msk.bf16.mxu1 %vm2080_vm2, %v2078_v37 }
  0xb9   : > { %1944 = vmatmul.mubr.msk.bf16.gmra.mrb[68].mxu0 %vm578_vm3, %v2052_v13  ;;  %1984 = vmatmul.mubr.msk.bf16.gmra.mrb[68].mxu1 %vm578_vm3, %v2053_v14 }
 0x104   : > { %v2374_v15 = vpop.f32.mrb[0].mxu0  ;;  %v2376_v16 = vpop.f32.mrb[0].mxu1 }
 0x105   : > { %v914_v17 = vmax.f32 %v2374_v15, %v2376_v16  ;;  %v1833_v18 = vpop.f32.mrb[1].mxu0  ;;  %v1873_v19 = vpop.f32.mrb[1].mxu1 }
 0x106   : > { %v2380_v20 = vpop.f32.mrb[2].mxu0  ;;  %v2382_v21 = vpop.f32.mrb[2].mxu1 }
 0x107   : > { %v915_v22 = vmax.f32 %v2380_v20, %v2382_v21  ;;  %v1834_v23 = vpop.f32.mrb[3].mxu0  ;;  %v1874_v24 = vpop.f32.mrb[3].mxu1 }
 0x10c   : > { %v2386_v25 = vpop.f32.mrb[4].mxu0  ;;  %v2388_v26 = vpop.f32.mrb[4].mxu1 }
 0x10d   : > { %v916_v27 = vmax.f32 %v2386_v25, %v2388_v26  ;;  %v1837_v28 = vpop.f32.mrb[5].mxu0  ;;  %v1877_v29 = vpop.f32.mrb[5].mxu1 }
 0x10e   : > { %v2392_v30 = vpop.f32.mrb[6].mxu0  ;;  %v2394_v31 = vpop.f32.mrb[6].mxu1 }
 0x10f   : > { %v917_v32 = vmax.f32 %v2392_v30, %v2394_v31  ;;  %v1838_v33 = vpop.f32.mrb[7].mxu0  ;;  %v1878_v34 = vpop.f32.mrb[7].mxu1 }
 0x114   : > { %v2398_v35 = vpop.f32.mrb[8].mxu0  ;;  %v2400_v36 = vpop.f32.mrb[8].mxu1 }
 0x115   : > { %v918_v37 = vmax.f32 %v2398_v35, %v2400_v36  ;;  %v1841_v38 = vpop.f32.mrb[9].mxu0  ;;  %v1881_v39 = vpop.f32.mrb[9].mxu1 }
 0x116   : > { %v2404_v40 = vpop.f32.mrb[10].mxu0  ;;  %v2406_v41 = vpop.f32.mrb[10].mxu1 }
 0x117   : > { %v919_v42 = vmax.f32 %v2404_v40, %v2406_v41  ;;  %v1842_v43 = vpop.f32.mrb[11].mxu0  ;;  %v1882_v44 = vpop.f32.mrb[11].mxu1 }
 0x11c   : > { %v2410_v45 = vpop.f32.mrb[12].mxu0  ;;  %v2412_v46 = vpop.f32.mrb[12].mxu1 }
 0x11d   : > { %v920_v47 = vmax.f32 %v2410_v45, %v2412_v46  ;;  %v1845_v48 = vpop.f32.mrb[13].mxu0  ;;  %v1885_v49 = vpop.f32.mrb[13].mxu1 }
 0x11e   : > { %v2416_v50 = vpop.f32.mrb[14].mxu0  ;;  %v2418_v51 = vpop.f32.mrb[14].mxu1 }
 0x11f   : > { %v921_v52 = vmax.f32 %v2416_v50, %v2418_v51  ;;  %v1846_v53 = vpop.f32.mrb[15].mxu0  ;;  %v1886_v54 = vpop.f32.mrb[15].mxu1 }
 0x124   : > { %v2422_v55 = vpop.f32.mrb[16].mxu0  ;;  %v2424_v56 = vpop.f32.mrb[16].mxu1 }
 0x125   : > { %v922_v57 = vmax.f32 %v2422_v55, %v2424_v56  ;;  %v1849_v58 = vpop.f32.mrb[17].mxu0  ;;  %v1889_v59 = vpop.f32.mrb[17].mxu1 }
 0x126   : > { %v2428_v60 = vpop.f32.mrb[18].mxu0  ;;  %v2430_v61 = vpop.f32.mrb[18].mxu1 }
 0x127   : > { %v923_v62 = vmax.f32 %v2428_v60, %v2430_v61  ;;  %v1850_v63 = vpop.f32.mrb[19].mxu0  ;;  %v1890_v0 = vpop.f32.mrb[19].mxu1 }
 0x12c   : > { %v2434_v1 = vpop.f32.mrb[20].mxu0  ;;  %v2436_v2 = vpop.f32.mrb[20].mxu1 }
 0x12d   : > { %v924_v3 = vmax.f32 %v2434_v1, %v2436_v2  ;;  %v1853_v4 = vpop.f32.mrb[21].mxu0  ;;  %v1893_v5 = vpop.f32.mrb[21].mxu1 }
 0x12e   : > { %v2440_v6 = vpop.f32.mrb[22].mxu0  ;;  %v2442_v7 = vpop.f32.mrb[22].mxu1 }
 0x12f   : > { %v925_v8 = vmax.f32 %v2440_v6, %v2442_v7  ;;  %v1854_v9 = vpop.f32.mrb[23].mxu0  ;;  %v1894_v10 = vpop.f32.mrb[23].mxu1 }
 0x134   : > { %v2446_v11 = vpop.f32.mrb[24].mxu0  ;;  %v2448_v12 = vpop.f32.mrb[24].mxu1 }
 0x135   : > { %v926_v13 = vmax.f32 %v2446_v11, %v2448_v12  ;;  %v1857_v14 = vpop.f32.mrb[25].mxu0  ;;  %v1897_v18 = vpop.f32.mrb[25].mxu1 }
 0x136   : > { %v2452_v19 = vpop.f32.mrb[26].mxu0  ;;  %v2454_v23 = vpop.f32.mrb[26].mxu1 }
 0x137   : > { %v927_v24 = vmax.f32 %v2452_v19, %v2454_v23  ;;  %v1858_v28 = vpop.f32.mrb[27].mxu0  ;;  %v1898_v29 = vpop.f32.mrb[27].mxu1 }
 0x13c   : > { %v2458_v33 = vpop.f32.mrb[28].mxu0  ;;  %v2460_v34 = vpop.f32.mrb[28].mxu1 }
 0x13d   : > { %v928_v38 = vmax.f32 %v2458_v33, %v2460_v34  ;;  %v1861_v39 = vpop.f32.mrb[29].mxu0  ;;  %v1901_v43 = vpop.f32.mrb[29].mxu1 }
 0x13e   : > { %v2464_v44 = vpop.f32.mrb[30].mxu0  ;;  %v2466_v48 = vpop.f32.mrb[30].mxu1 }
 0x13f   : > { %v1862_v53 = vpop.f32.mrb[31].mxu0  ;;  %v1902_v54 = vpop.f32.mrb[31].mxu1 }
 0x140   : > { %v2490_v54 = vld [vmem:[%s2587_s2] ss:$0 sm:$0xff] }
 0x144   : > { %v2470_v58 = vpop.f32.mrb[32].mxu0  ;;  %v2472_v59 = vpop.f32.mrb[32].mxu1 }
 0x145   : > { %v1865_v0 = vpop.f32.mrb[33].mxu0  ;;  %v1905_v4 = vpop.f32.mrb[33].mxu1 }
 0x146   : > { %v2476_v5 = vpop.f32.mrb[34].mxu0  ;;  %v2478_v9 = vpop.f32.mrb[34].mxu1 }
 0x147   : > { %v1866_v14 = vpop.f32.mrb[35].mxu0  ;;  %v1906_v18 = vpop.f32.mrb[35].mxu1 }
 0x14c   : > { %v1057_v28 = vpop.f32.mrb[36].mxu0  ;;  %v1271_v29 = vpop.f32.mrb[36].mxu1 }
 0x14d   : > { %v1128_v39 = vmax.f32 %v914_v17, %v1057_v28  ;;  %v1913_v43 = vpop.f32.mrb[37].mxu0  ;;  %v1953_v53 = vpop.f32.mrb[37].mxu1 }
 0x14e   : > { %v1060_v0 = vpop.f32.mrb[38].mxu0  ;;  %v1274_v4 = vpop.f32.mrb[38].mxu1 }
 0x14f   : > { %v1342_v14 = vmax.f32 %v1128_v39, %v1271_v29  ;;  %v1129_v18 = vmax.f32 %v915_v22, %v1060_v0  ;;  %v1914_v10 = vpop.f32.mrb[39].mxu0  ;;  %v1954_v63 = vpop.f32.mrb[39].mxu1 }
 0x151   : > { %v1367_v15 = vadd.f32 %v2490_v54, %v1342_v14  ;;  %v1343_v16 = vmax.f32 %v1129_v18, %v1274_v4 }
 0x153   : > { %v1368_v17 = vadd.f32 %v2490_v54, %v1343_v16  ;;  %v1385_v53 = vmax.f32 %v1367_v15, 0.0 }
 0x154   : > { %v1065_v28 = vpop.f32.mrb[40].mxu0  ;;  %v1279_v43 = vpop.f32.mrb[40].mxu1 }
 0x155   : > { %v1386_v49 = vmax.f32 %v1368_v17, 0.0  ;;  %v1130_v29 = vmax.f32 %v916_v27, %v1065_v28  ;;  %v1917_v39 = vpop.f32.mrb[41].mxu0  ;;  %v1957_v20 = vpop.f32.mrb[41].mxu1 }
 0x156   : > { %v1068_v21 = vpop.f32.mrb[42].mxu0  ;;  %v1282_v22 = vpop.f32.mrb[42].mxu1 }
 0x157   : > { %v1733_v63 = vpack.c.bf16 %v1386_v49, %v1385_v53  ;;  %v1344_v10 = vmax.f32 %v1130_v29, %v1279_v43  ;;  %v1131_v0 = vmax.f32 %v917_v32, %v1068_v21  ;;  %v1918_v4 = vpop.f32.mrb[43].mxu0  ;;  %v1958_v14 = vpop.f32.mrb[43].mxu1 }
 0x159   : > { %1734 = vst [vmem:[%s2503_s14] sm:$0xff] %v1733_v63   ;;  %v1369_v25 = vadd.f32 %v2490_v54, %v1344_v10  ;;  %v1345_v26 = vmax.f32 %v1131_v0, %v1282_v22 }
 0x15b   : > { %v1370_v27 = vadd.f32 %v2490_v54, %v1345_v26  ;;  %v1387_v16 = vmax.f32 %v1369_v25, 0.0 }
 0x15c   : > { %v1073_v18 = vpop.f32.mrb[44].mxu0  ;;  %v1287_v15 = vpop.f32.mrb[44].mxu1 }
 0x15d   : > { %v1388_v17 = vmax.f32 %v1370_v27, 0.0  ;;  %v1132_v49 = vmax.f32 %v918_v37, %v1073_v18  ;;  %v1921_v28 = vpop.f32.mrb[45].mxu0  ;;  %v1961_v30 = vpop.f32.mrb[45].mxu1 }
 0x15e   : > { %v1076_v31 = vpop.f32.mrb[46].mxu0  ;;  %v1290_v32 = vpop.f32.mrb[46].mxu1 }
 0x15f   : > { %v1738_v43 = vpack.c.bf16 %v1388_v17, %v1387_v16  ;;  %v1346_v53 = vmax.f32 %v1132_v49, %v1287_v15  ;;  %v1133_v29 = vmax.f32 %v919_v42, %v1076_v31  ;;  %v1922_v39 = vpop.f32.mrb[47].mxu0  ;;  %v1962_v20 = vpop.f32.mrb[47].mxu1 }
 0x161   : > { %1775 = vst [vmem:[%s2503_s14 + $0x8] sm:$0xff] %v1738_v43   ;;  %v1371_v21 = vadd.f32 %v2490_v54, %v1346_v53  ;;  %v1347_v22 = vmax.f32 %v1133_v29, %v1290_v32 }
 0x163   : > { %v1372_v35 = vadd.f32 %v2490_v54, %v1347_v22  ;;  %v1389_v63 = vmax.f32 %v1371_v21, 0.0 }
 0x164   : > { %v1081_v36 = vpop.f32.mrb[48].mxu0  ;;  %v1295_v37 = vpop.f32.mrb[48].mxu1 }
 0x165   : > { %v1390_v10 = vmax.f32 %v1372_v35, 0.0  ;;  %v1134_v0 = vmax.f32 %v920_v47, %v1081_v36  ;;  %v1925_v4 = vpop.f32.mrb[49].mxu0  ;;  %v1965_v40 = vpop.f32.mrb[49].mxu1 }
 0x166   : > { %v1084_v41 = vpop.f32.mrb[50].mxu0  ;;  %v1298_v42 = vpop.f32.mrb[50].mxu1 }
 0x167   : > { %v1743_v14 = vpack.c.bf16 %v1390_v10, %v1389_v63  ;;  %v1348_v25 = vmax.f32 %v1134_v0, %v1295_v37  ;;  %v1135_v26 = vmax.f32 %v921_v52, %v1084_v41  ;;  %v1926_v27 = vpop.f32.mrb[51].mxu0  ;;  %v1966_v18 = vpop.f32.mrb[51].mxu1 }
 0x169   : > { %1776 = vst [vmem:[%s2503_s14 + $0x10] sm:$0xff] %v1743_v14   ;;  %v1373_v15 = vadd.f32 %v2490_v54, %v1348_v25  ;;  %v1349_v16 = vmax.f32 %v1135_v26, %v1298_v42 }
 0x16b   : > { %v1374_v45 = vadd.f32 %v2490_v54, %v1349_v16  ;;  %v1391_v17 = vmax.f32 %v1373_v15, 0.0 }
 0x16c   : > { %v1089_v46 = vpop.f32.mrb[52].mxu0  ;;  %v1303_v47 = vpop.f32.mrb[52].mxu1 }
 0x16d   : > { %v1392_v49 = vmax.f32 %v1374_v45, 0.0  ;;  %v1136_v28 = vmax.f32 %v922_v57, %v1089_v46  ;;  %v1929_v30 = vpop.f32.mrb[53].mxu0  ;;  %v1969_v50 = vpop.f32.mrb[53].mxu1 }
 0x16e   : > { %v1092_v51 = vpop.f32.mrb[54].mxu0  ;;  %v1306_v52 = vpop.f32.mrb[54].mxu1 }
 0x16f   : > { %v1748_v31 = vpack.c.bf16 %v1392_v49, %v1391_v17  ;;  %v1350_v32 = vmax.f32 %v1136_v28, %v1303_v47  ;;  %v1137_v43 = vmax.f32 %v923_v62, %v1092_v51  ;;  %v1930_v53 = vpop.f32.mrb[55].mxu0  ;;  %v1970_v29 = vpop.f32.mrb[55].mxu1 }
 0x171   : > { %1777 = vst [vmem:[%s2503_s14 + $0x18] sm:$0xff] %v1748_v31   ;;  %v1375_v39 = vadd.f32 %v2490_v54, %v1350_v32  ;;  %v1351_v20 = vmax.f32 %v1137_v43, %v1306_v52  ;;  %v2589_v52 = vmax.f32 %v2464_v44, %v2466_v48 }
 0x173   : > { %v1376_v55 = vadd.f32 %v2490_v54, %v1351_v20  ;;  %v1393_v21 = vmax.f32 %v1375_v39, 0.0 }
 0x174   : > { %v1097_v56 = vpop.f32.mrb[56].mxu0  ;;  %v1311_v57 = vpop.f32.mrb[56].mxu1 }
 0x175   : > { %v1394_v22 = vmax.f32 %v1376_v55, 0.0  ;;  %v1138_v35 = vmax.f32 %v924_v3, %v1097_v56  ;;  %v1933_v36 = vpop.f32.mrb[57].mxu0  ;;  %v1973_v60 = vpop.f32.mrb[57].mxu1  ;;  %v2590_v55 = vmax.f32 %v2470_v58, %v2472_v59 }
 0x176   : > { %v1100_v61 = vpop.f32.mrb[58].mxu0  ;;  %v1314_v62 = vpop.f32.mrb[58].mxu1  ;;  %v2591_v36 = vmax.f32 %v2476_v5, %v2478_v9 }
 0x177   : > { %v1753_v37 = vpack.c.bf16 %v1394_v22, %v1393_v21  ;;  %v1352_v63 = vmax.f32 %v1138_v35, %v1311_v57  ;;  %v1139_v10 = vmax.f32 %v925_v8, %v1100_v61  ;;  %v1934_v0 = vpop.f32.mrb[59].mxu0  ;;  %v1974_v4 = vpop.f32.mrb[59].mxu1 }
 0x179   : > { %1778 = vst [vmem:[%s2503_s14 + $0x20] sm:$0xff] %v1753_v37   ;;  %v1377_v40 = vadd.f32 %v2490_v54, %v1352_v63  ;;  %v1353_v41 = vmax.f32 %v1139_v10, %v1314_v62 }
 0x17b   : > { %v1378_v1 = vadd.f32 %v2490_v54, %v1353_v41  ;;  %v1395_v42 = vmax.f32 %v1377_v40, 0.0 }
 0x17c   : > { %v1105_v2 = vpop.f32.mrb[60].mxu0  ;;  %v1319_v3 = vpop.f32.mrb[60].mxu1 }
 0x17d   : > { %v1396_v14 = vmax.f32 %v1378_v1, 0.0  ;;  %v1140_v25 = vmax.f32 %v926_v13, %v1105_v2  ;;  %v1937_v26 = vpop.f32.mrb[61].mxu0  ;;  %v1977_v6 = vpop.f32.mrb[61].mxu1 }
 0x17e   : > { %v1108_v7 = vpop.f32.mrb[62].mxu0  ;;  %v1322_v8 = vpop.f32.mrb[62].mxu1 }
 0x17f   : > { %v1758_v27 = vpack.c.bf16 %v1396_v14, %v1395_v42  ;;  %v1354_v18 = vmax.f32 %v1140_v25, %v1319_v3  ;;  %v1141_v15 = vmax.f32 %v927_v24, %v1108_v7  ;;  %v1938_v16 = vpop.f32.mrb[63].mxu0  ;;  %v1978_v45 = vpop.f32.mrb[63].mxu1 }
 0x181   : > { %1779 = vst [vmem:[%s2503_s14 + $0x28] sm:$0xff] %v1758_v27   ;;  %v1379_v46 = vadd.f32 %v2490_v54, %v1354_v18  ;;  %v1355_v47 = vmax.f32 %v1141_v15, %v1322_v8 }
 0x183   : > { %v1380_v11 = vadd.f32 %v2490_v54, %v1355_v47  ;;  %v1397_v17 = vmax.f32 %v1379_v46, 0.0 }
 0x184   : > { %v1113_v12 = vpop.f32.mrb[64].mxu0  ;;  %v1327_v13 = vpop.f32.mrb[64].mxu1 }
 0x185   : > { %v1398_v49 = vmax.f32 %v1380_v11, 0.0  ;;  %v1142_v28 = vmax.f32 %v928_v38, %v1113_v12  ;;  %v1941_v30 = vpop.f32.mrb[65].mxu0  ;;  %v1981_v19 = vpop.f32.mrb[65].mxu1 }
 0x186   : > { %v1116_v23 = vpop.f32.mrb[66].mxu0  ;;  %v1330_v24 = vpop.f32.mrb[66].mxu1 }
 0x187   : > { %v1763_v50 = vpack.c.bf16 %v1398_v49, %v1397_v17  ;;  %v1356_v51 = vmax.f32 %v1142_v28, %v1327_v13  ;;  %v1143_v31 = vmax.f32 %v2589_v52, %v1116_v23  ;;  %v1942_v32 = vpop.f32.mrb[67].mxu0  ;;  %v1982_v43 = vpop.f32.mrb[67].mxu1 }
 0x189   : > { %1780 = vst [vmem:[%s2503_s14 + $0x30] sm:$0xff] %v1763_v50   ;;  %v1381_v53 = vadd.f32 %v2490_v54, %v1356_v51  ;;  %v1357_v29 = vmax.f32 %v1143_v31, %v1330_v24 }
 0x18b   : > { %v1382_v33 = vadd.f32 %v2490_v54, %v1357_v29  ;;  %v1399_v39 = vmax.f32 %v1381_v53, 0.0 }
 0x18c   : > { %v1121_v34 = vpop.f32.mrb[68].mxu0  ;;  %v1335_v38 = vpop.f32.mrb[68].mxu1 }
 0x18d   : > { %v1400_v20 = vmax.f32 %v1382_v33, 0.0  ;;  %v1144_v56 = vmax.f32 %v2590_v55, %v1121_v34  ;;  %v1945_v57 = vpop.f32.mrb[69].mxu0  ;;  %v1985_v44 = vpop.f32.mrb[69].mxu1 }
 0x18e   : > { %v1124_v48 = vpop.f32.mrb[70].mxu0  ;;  %v1338_v21 = vpop.f32.mrb[70].mxu1 }
 0x18f   : > { %v1768_v22 = vpack.c.bf16 %v1400_v20, %v1399_v39  ;;  %v1358_v35 = vmax.f32 %v1144_v56, %v1335_v38  ;;  %v1145_v60 = vmax.f32 %v2591_v36, %v1124_v48  ;;  %v1946_v61 = vpop.f32.mrb[71].mxu0  ;;  %v1986_v62 = vpop.f32.mrb[71].mxu1 }
 0x191   : > { %1781 = vst [vmem:[%s2503_s14 + $0x38] sm:$0xff] %v1768_v22   ;;  %v1383_v37 = vadd.f32 %v2490_v54, %v1358_v35  ;;  %v1359_v63 = vmax.f32 %v1145_v60, %v1338_v21 }
 0x193   : > { %v1384_v58 = vadd.f32 %v2490_v54, %v1359_v63  ;;  %v1401_v59 = vmax.f32 %v1383_v37, 0.0 }
 0x195   : > { %v1402_v10 = vmax.f32 %v1384_v58, 0.0 }
 0x197   : > { %v1773_v0 = vpack.c.bf16 %v1402_v10, %v1401_v59 }
 0x199   : > { %1782 = vst [vmem:[%s2503_s14 + $0x40] sm:$0xff] %v1773_v0  }
 0x19a PF: > { %p10_p9 = scmp.ge.s32.totalorder %s2118_s16, 4   ;;  %s2592_s12 = smov %s2072_s13 }
 0x19b   : > { %s2593_s13 = smov %s2127_s19  ;;  %s2594_s14 = smov %s2118_s16 }
 0x19c   :  { %12 = sbr.rel (!%p10_p9) target bundleno = 2 (0x2), region = 111 }

// kernel: _cnn_mnist_forward.3
= control target key start
LH: loop header
LB: loop body
LE: loop exit
PB: predicated region body
PF: predicated region fallthrough
CT: control target
= control target key end

     0   :  { %v66_v8 = vlaneseq  ;;  %v7301_v15 = vmov 1966171168   ;;  %s9633_s0 = inlined_call_operand.vmem [shape: bf16[16,2,1024], index: 0, kind: input, shape index: {}]   ;;  %s9634_s1 = inlined_call_operand.vmem [shape: bf16[256,128], index: 1, kind: input, shape index: {}]   ;;  %s9635_s2 = inlined_call_operand.vmem [shape: f32[1,128], index: 2, kind: input, shape index: {}]   ;;  %s9636_s3 = inlined_call_operand.vmem [shape: bf16[2048,128], index: 3, kind: input, shape index: {}]   ;;  %s9637_s4 = inlined_call_operand.vmem [shape: f32[1,128], index: 4, kind: input, shape index: {}]   ;;  %s9638_s5 = inlined_call_operand.vmem [shape: bf16[128,128], index: 5, kind: input, shape index: {}]   ;;  %s9639_s6 = inlined_call_operand.vmem [shape: f32[1,128], index: 6, kind: input, shape index: {}]   ;;  %s9640_s7 = inlined_call_operand.hbm [shape: f32[2,128], index: 7, kind: output, shape index: {}]  }
   0x1   :  { %v7348_v0 = vld [vmem:[%s9634_s1 + $0x40] sm:$0xff]   ;;  %v7360_v2 = vld [vmem:[%s9634_s1 + $0x48] sm:$0xff]   ;;  %v7374_v4 = vld [vmem:[%s9634_s1 + $0x50] sm:$0xff]   ;;  %v64_v16 = vunpack.c.l.s4 %v7301_v15 }
   0x2   :  { %v7353_v1 = vld [vmem:[%s9634_s1] sm:$0xff]   ;;  %5440 = vmatprep.subr.bf16.mxu0 %v7348_v0  ;;  %5462 = vmatprep.subr.bf16.mxu1 %v7348_v0  ;;  %v7367_v3 = vld [vmem:[%s9634_s1 + $0x8] sm:$0xff]   ;;  %v7381_v5 = vld [vmem:[%s9634_s1 + $0x10] sm:$0xff]   ;;  %v67_v11 = vshrl.u32 %v66_v8, 7 }
   0x3   :  { %5441 = vmatpush3.bf16.msra.mxu0 %v7353_v1  ;;  %5463 = vmatpush3.bf16.msra.mxu1 %v7353_v1  ;;  %v7388_v6 = vld [vmem:[%s9634_s1 + $0x58] sm:$0xff]   ;;  %v7402_v9 = vld [vmem:[%s9634_s1 + $0x60] sm:$0xff]   ;;  %v7416_v12 = vld [vmem:[%s9634_s1 + $0x68] sm:$0xff]   ;;  %v65_v18 = vunpack.c.0.s8 %v64_v16 }
   0x4   :  { %5442 = vmatprep.subr.bf16.mxu0 %v7360_v2  ;;  %5464 = vmatprep.subr.bf16.mxu1 %v7360_v2  ;;  %v7395_v7 = vld [vmem:[%s9634_s1 + $0x18] sm:$0xff]   ;;  %v7409_v10 = vld [vmem:[%s9634_s1 + $0x20] sm:$0xff]   ;;  %v7424_v14 = vld [vmem:[%s9634_s1 + $0x28] sm:$0xff]  }
   0x5   :  { %v61_v13 = vld [vmem:[%s9633_s0] sm:$0xff]  ;;  %v7429_v17 = vld [vmem:[%s9634_s1 + $0x70] sm:$0xff]   ;;  %v7440_v21 = vsub.s32 %v65_v18, %v67_v11  ;;  %v7451_v24 = vld [vmem:[%s9634_s1 + $0x78] sm:$0xff]  }
   0x6   :  { %v268_v19 = vcombine.high %v61_v13, %v61_v13  ;;  %v7438_v20 = vld [vmem:[%s9634_s1 + $0x30] sm:$0xff]   ;;  %v7456_v25 = vld [vmem:[%s9634_s1 + $0x38] sm:$0xff]   ;;  %v5287_v34 = vld [vmem:[%s9633_s0 + $0x8] sm:$0xff] }
   0x7   :  { %5443 = vmatpush3.bf16.msra.mxu0 %v7367_v3  ;;  %5465 = vmatpush3.bf16.msra.mxu1 %v7367_v3  ;;  %v69_v22 = vrot.slane %v61_v13, %v7440_v21  ;;  %v397_v35 = vrot.slane %v5287_v34, %v7440_v21  ;;  %v500_v41 = vcombine.high %v5287_v34, %v5287_v34 }
   0x8   :  { %5444 = vmatprep.subr.bf16.mxu0 %v7374_v4  ;;  %5466 = vmatprep.subr.bf16.mxu1 %v7374_v4  ;;  %v275_v23 = vrot.slane %v268_v19, %v7440_v21 }
   0x9   :  { %v70_v26 = vcombine.high %v69_v22, %v69_v22  ;;  %v77_v28 = vrot.slane %v69_v22, %v7440_v21  ;;  %v398_v36 = vcombine.high %v397_v35, %v397_v35  ;;  %v507_v42 = vrot.slane %v500_v41, %v7440_v21 }
   0xa   :  { %v276_v27 = vcombine.high %v275_v23, %v275_v23  ;;  %v283_v37 = vrot.slane %v275_v23, %v7440_v21  ;;  %v405_v44 = vrot.slane %v397_v35, %v7440_v21 }
   0xb   :  { %5445 = vmatpush3.bf16.msra.mxu0 %v7381_v5  ;;  %5467 = vmatpush3.bf16.msra.mxu1 %v7381_v5  ;;  %v84_v29 = vrot.slane %v70_v26, %v7440_v21  ;;  %v223_v32 = vcombine.high %v77_v28, %v77_v28  ;;  %v412_v38 = vrot.slane %v398_v36, %v7440_v21 }
   0xc   :  { %5446 = vmatprep.subr.bf16.mxu0 %v7388_v6  ;;  %5468 = vmatprep.subr.bf16.mxu1 %v7388_v6  ;;  %v290_v31 = vrot.slane %v276_v27, %v7440_v21  ;;  %v334_v39 = vcombine.high %v283_v37, %v283_v37  ;;  %v508_v43 = vcombine.high %v507_v42, %v507_v42 }
   0xd   :  { %215 = vmatprep.mubr.bf16.mxu0 %v84_v29  ;;  %v224_v30 = vcombine.high %v84_v29, %v84_v29  ;;  %v456_v40 = vcombine.high %v412_v38, %v412_v38  ;;  %v455_v46 = vcombine.high %v405_v44, %v405_v44 }
   0xe   :  { %v335_v33 = vcombine.high %v290_v31, %v290_v31  ;;  %v522_v45 = vrot.slane %v508_v43, %v7440_v21 }
   0xf   :  { %5447 = vmatpush3.bf16.msra.mxu0 %v7395_v7  ;;  %5469 = vmatpush3.bf16.msra.mxu1 %v7395_v7 }
  0x10   :  { %5448 = vmatprep.subr.bf16.mxu0 %v7402_v9  ;;  %5470 = vmatprep.subr.bf16.mxu1 %v7402_v9  ;;  %v567_v47 = vcombine.high %v522_v45, %v522_v45 }
  0x11   :  { %259 = vmatprep.mubr.bf16.mxu1 %v224_v30 }
  0x13   :  { %5449 = vmatpush3.bf16.msra.mxu0 %v7409_v10  ;;  %5471 = vmatpush3.bf16.msra.mxu1 %v7409_v10 }
  0x14   :  { %5450 = vmatprep.subr.bf16.mxu0 %v7416_v12  ;;  %5472 = vmatprep.subr.bf16.mxu1 %v7416_v12 }
  0x17   :  { %5451 = vmatpush3.bf16.msra.mxu0 %v7424_v14  ;;  %5473 = vmatpush3.bf16.msra.mxu1 %v7424_v14 }
  0x18   :  { %5452 = vmatprep.subr.bf16.mxu0 %v7429_v17  ;;  %5474 = vmatprep.subr.bf16.mxu1 %v7429_v17 }
  0x1b   :  { %5453 = vmatpush3.bf16.msra.mxu0 %v7438_v20  ;;  %5475 = vmatpush3.bf16.msra.mxu1 %v7438_v20 }
  0x1c   :  { %5454 = vmatprep.subr.bf16.mxu0 %v7451_v24  ;;  %5476 = vmatprep.subr.bf16.mxu1 %v7451_v24 }
  0x1f   :  { %5455 = vmatpush3.bf16.msra.mxu0 %v7456_v25  ;;  %5477 = vmatpush3.bf16.msra.mxu1 %v7456_v25 }
  0x20   :  { %5484 = vmatprep.subr.bf16.mxu0 %v7348_v0  ;;  %5506 = vmatprep.subr.bf16.mxu1 %v7348_v0 }
  0x22   :  { %216 = vmatmul.mubr.bf16.vlgmr.msra.gmra.mrb[0].mxu0 %v77_v28  ;;  %260 = vmatmul.mubr.bf16.vlgmr.msra.gmra.mrb[0].mxu1 %v223_v32 }
  0x23   :  { %5485 = vmatpush3.bf16.msra.mxu0 %v7353_v1  ;;  %5507 = vmatpush3.bf16.msra.mxu1 %v7353_v1 }
  0x24   :  { %5486 = vmatprep.subr.bf16.mxu0 %v7360_v2  ;;  %5508 = vmatprep.subr.bf16.mxu1 %v7360_v2 }
  0x25   :  { %325 = vmatprep.mubr.bf16.mxu0 %v290_v31  ;;  %370 = vmatprep.mubr.bf16.mxu1 %v335_v33 }
  0x27   :  { %5487 = vmatpush3.bf16.msra.mxu0 %v7367_v3  ;;  %5509 = vmatpush3.bf16.msra.mxu1 %v7367_v3 }
  0x28   :  { %5488 = vmatprep.subr.bf16.mxu0 %v7374_v4  ;;  %5510 = vmatprep.subr.bf16.mxu1 %v7374_v4 }
  0x2b   :  { %5489 = vmatpush3.bf16.msra.mxu0 %v7381_v5  ;;  %5511 = vmatpush3.bf16.msra.mxu1 %v7381_v5 }
  0x2c   :  { %5490 = vmatprep.subr.bf16.mxu0 %v7388_v6  ;;  %5512 = vmatprep.subr.bf16.mxu1 %v7388_v6 }
  0x2f   :  { %5491 = vmatpush3.bf16.msra.mxu0 %v7395_v7  ;;  %5513 = vmatpush3.bf16.msra.mxu1 %v7395_v7 }
  0x30   :  { %5492 = vmatprep.subr.bf16.mxu0 %v7402_v9  ;;  %5514 = vmatprep.subr.bf16.mxu1 %v7402_v9 }
  0x33   :  { %5493 = vmatpush3.bf16.msra.mxu0 %v7409_v10  ;;  %5515 = vmatpush3.bf16.msra.mxu1 %v7409_v10 }
  0x34   :  { %5494 = vmatprep.subr.bf16.mxu0 %v7416_v12  ;;  %5516 = vmatprep.subr.bf16.mxu1 %v7416_v12 }
  0x37   :  { %5495 = vmatpush3.bf16.msra.mxu0 %v7424_v14  ;;  %5517 = vmatpush3.bf16.msra.mxu1 %v7424_v14 }
  0x38   :  { %5496 = vmatprep.subr.bf16.mxu0 %v7429_v17  ;;  %5518 = vmatprep.subr.bf16.mxu1 %v7429_v17 }
  0x3b   :  { %5497 = vmatpush3.bf16.msra.mxu0 %v7438_v20  ;;  %5519 = vmatpush3.bf16.msra.mxu1 %v7438_v20 }
  0x3c   :  { %5498 = vmatprep.subr.bf16.mxu0 %v7451_v24  ;;  %5520 = vmatprep.subr.bf16.mxu1 %v7451_v24 }
  0x3f   :  { %5499 = vmatpush3.bf16.msra.mxu0 %v7456_v25  ;;  %5521 = vmatpush3.bf16.msra.mxu1 %v7456_v25 }
  0x40   :  { %5528 = vmatprep.subr.bf16.mxu0 %v7348_v0  ;;  %5550 = vmatprep.subr.bf16.mxu1 %v7348_v0 }
  0x42   :  { %326 = vmatmul.mubr.bf16.vlgmr.msra.gmra.mrb[4].mxu0 %v283_v37  ;;  %371 = vmatmul.mubr.bf16.vlgmr.msra.gmra.mrb[4].mxu1 %v334_v39 }
  0x43   :  { %5529 = vmatpush3.bf16.msra.mxu0 %v7353_v1  ;;  %5551 = vmatpush3.bf16.msra.mxu1 %v7353_v1 }
  0x44   :  { %5530 = vmatprep.subr.bf16.mxu0 %v7360_v2  ;;  %5552 = vmatprep.subr.bf16.mxu1 %v7360_v2 }
  0x45   :  { %447 = vmatprep.mubr.bf16.mxu0 %v412_v38  ;;  %491 = vmatprep.mubr.bf16.mxu1 %v456_v40 }
  0x47   :  { %5531 = vmatpush3.bf16.msra.mxu0 %v7367_v3  ;;  %5553 = vmatpush3.bf16.msra.mxu1 %v7367_v3 }
  0x48   :  { %5532 = vmatprep.subr.bf16.mxu0 %v7374_v4  ;;  %5554 = vmatprep.subr.bf16.mxu1 %v7374_v4 }
  0x4b   :  { %5533 = vmatpush3.bf16.msra.mxu0 %v7381_v5  ;;  %5555 = vmatpush3.bf16.msra.mxu1 %v7381_v5 }
  0x4c   :  { %5534 = vmatprep.subr.bf16.mxu0 %v7388_v6  ;;  %5556 = vmatprep.subr.bf16.mxu1 %v7388_v6 }
  0x4f   :  { %5535 = vmatpush3.bf16.msra.mxu0 %v7395_v7  ;;  %5557 = vmatpush3.bf16.msra.mxu1 %v7395_v7 }
  0x50   :  { %5536 = vmatprep.subr.bf16.mxu0 %v7402_v9  ;;  %5558 = vmatprep.subr.bf16.mxu1 %v7402_v9 }
  0x53   :  { %5537 = vmatpush3.bf16.msra.mxu0 %v7409_v10  ;;  %5559 = vmatpush3.bf16.msra.mxu1 %v7409_v10 }
  0x54   :  { %5538 = vmatprep.subr.bf16.mxu0 %v7416_v12  ;;  %5560 = vmatprep.subr.bf16.mxu1 %v7416_v12 }
  0x57   :  { %5539 = vmatpush3.bf16.msra.mxu0 %v7424_v14  ;;  %5561 = vmatpush3.bf16.msra.mxu1 %v7424_v14 }
  0x58   :  { %5540 = vmatprep.subr.bf16.mxu0 %v7429_v17  ;;  %5562 = vmatprep.subr.bf16.mxu1 %v7429_v17 }
  0x5b   :  { %5541 = vmatpush3.bf16.msra.mxu0 %v7438_v20  ;;  %5563 = vmatpush3.bf16.msra.mxu1 %v7438_v20 }
  0x5c   :  { %5542 = vmatprep.subr.bf16.mxu0 %v7451_v24  ;;  %5564 = vmatprep.subr.bf16.mxu1 %v7451_v24 }
  0x5f   :  { %5543 = vmatpush3.bf16.msra.mxu0 %v7456_v25  ;;  %5565 = vmatpush3.bf16.msra.mxu1 %v7456_v25 }
  0x60   :  { %5572 = vmatprep.subr.bf16.mxu0 %v7348_v0  ;;  %5594 = vmatprep.subr.bf16.mxu1 %v7348_v0 }
  0x62   :  { %448 = vmatmul.mubr.bf16.vlgmr.msra.gmra.mrb[8].mxu0 %v405_v44  ;;  %492 = vmatmul.mubr.bf16.vlgmr.msra.gmra.mrb[8].mxu1 %v455_v46 }
  0x63   :  { %5573 = vmatpush3.bf16.msra.mxu0 %v7353_v1  ;;  %5595 = vmatpush3.bf16.msra.mxu1 %v7353_v1 }
  0x64   :  { %5574 = vmatprep.subr.bf16.mxu0 %v7360_v2  ;;  %5596 = vmatprep.subr.bf16.mxu1 %v7360_v2 }
  0x65   :  { %557 = vmatprep.mubr.bf16.mxu0 %v522_v45  ;;  %602 = vmatprep.mubr.bf16.mxu1 %v567_v47 }
  0x67   :  { %5575 = vmatpush3.bf16.msra.mxu0 %v7367_v3  ;;  %5597 = vmatpush3.bf16.msra.mxu1 %v7367_v3 }
  0x68   :  { %5576 = vmatprep.subr.bf16.mxu0 %v7374_v4  ;;  %5598 = vmatprep.subr.bf16.mxu1 %v7374_v4 }
  0x6b   :  { %5577 = vmatpush3.bf16.msra.mxu0 %v7381_v5  ;;  %5599 = vmatpush3.bf16.msra.mxu1 %v7381_v5 }
  0x6c   :  { %5578 = vmatprep.subr.bf16.mxu0 %v7388_v6  ;;  %5600 = vmatprep.subr.bf16.mxu1 %v7388_v6 }
  0x6d   :  { %12 = vsyncpa [#allocation3], 0  ;;  %v5288_v48 = vld [vmem:[%s9633_s0 + $0x10] sm:$0xff]  ;;  %v515_v51 = vrot.slane %v507_v42, %v7440_v21  ;;  %v7616_v61 = vld [vmem:[%s9634_s1 + $0x40] sm:$0xff]   ;;  %vm7303_vm0 = vmmov 0   ;;  %vm5242_vm1 = vcmask 1041408  }
  0x6e   :  { %v623_v49 = vrot.slane %v5288_v48, %v7440_v21  ;;  %v726_v55 = vcombine.high %v5288_v48, %v5288_v48  ;;  %v7623_v63 = vld [vmem:[%s9634_s1] sm:$0xff]   ;;  %v7724_v16 = vld [vmem:[%s9634_s1 + $0x68] sm:$0xff]   ;;  %v7741_v19 = vld [vmem:[%s9634_s1 + $0x70] sm:$0xff]   ;;  %s7304_s12 = smov [#allocation2]  }
  0x6f   :  { %5579 = vmatpush3.bf16.msra.mxu0 %v7395_v7  ;;  %5601 = vmatpush3.bf16.msra.mxu1 %v7395_v7  ;;  %v566_v53 = vcombine.high %v515_v51, %v515_v51  ;;  %v7682_v8 = vld [vmem:[%s9634_s1 + $0x20] sm:$0xff]   ;;  %v7734_v18 = vld [vmem:[%s9634_s1 + $0x28] sm:$0xff]   ;;  %v7751_v23 = vld [vmem:[%s9634_s1 + $0x30] sm:$0xff]  }
  0x70   :  { %5580 = vmatprep.subr.bf16.mxu0 %v7402_v9  ;;  %5602 = vmatprep.subr.bf16.mxu1 %v7402_v9  ;;  %v624_v50 = vcombine.high %v623_v49, %v623_v49  ;;  %v733_v56 = vrot.slane %v726_v55, %v7440_v21  ;;  %v631_v58 = vrot.slane %v623_v49, %v7440_v21  ;;  %v7766_v27 = vld [vmem:[%s9634_s1 + $0x38] sm:$0xff]   ;;  %v5290_v29 = vld [vmem:[%s9633_s0 + $0x20] sm:$0xff] }
  0x71   :  { %v7796_v32 = vrot.slane %v5290_v29, %v7440_v21  ;;  %v1178_v47 = vcombine.high %v5290_v29, %v5290_v29 }
  0x72   :  { %v638_v52 = vrot.slane %v624_v50, %v7440_v21  ;;  %v734_v57 = vcombine.high %v733_v56, %v733_v56  ;;  %v681_v60 = vcombine.high %v631_v58, %v631_v58  ;;  %v741_v11 = vrot.slane %v733_v56, %v7440_v21 }
  0x73   :  { %5581 = vmatpush3.bf16.msra.mxu0 %v7409_v10  ;;  %5603 = vmatpush3.bf16.msra.mxu1 %v7409_v10  ;;  %v1076_v42 = vcombine.high %v7796_v32, %v7796_v32  ;;  %v7842_v50 = vrot.slane %v1178_v47, %v7440_v21 }
  0x74   :  { %5582 = vmatprep.subr.bf16.mxu0 %v7416_v12  ;;  %5604 = vmatprep.subr.bf16.mxu1 %v7416_v12  ;;  %v682_v54 = vcombine.high %v638_v52, %v638_v52  ;;  %v748_v59 = vrot.slane %v734_v57, %v7440_v21  ;;  %v792_v13 = vcombine.high %v741_v11, %v741_v11 }
  0x75   :  { %v1090_v44 = vrot.slane %v1076_v42, %v7440_v21 }
  0x76   :  { %v793_v62 = vcombine.high %v748_v59, %v748_v59 }
  0x77   :  { %5583 = vmatpush3.bf16.msra.mxu0 %v7424_v14  ;;  %5605 = vmatpush3.bf16.msra.mxu1 %v7424_v14  ;;  %v1134_v46 = vcombine.high %v1090_v44, %v1090_v44 }
  0x78   :  { %5584 = vmatprep.subr.bf16.mxu0 %v7429_v17  ;;  %5606 = vmatprep.subr.bf16.mxu1 %v7429_v17 }
  0x7b   :  { %5585 = vmatpush3.bf16.msra.mxu0 %v7438_v20  ;;  %5607 = vmatpush3.bf16.msra.mxu1 %v7438_v20 }
  0x7c   :  { %5586 = vmatprep.subr.bf16.mxu0 %v7451_v24  ;;  %5608 = vmatprep.subr.bf16.mxu1 %v7451_v24 }
  0x7f   :  { %5587 = vmatpush3.bf16.msra.mxu0 %v7456_v25  ;;  %5609 = vmatpush3.bf16.msra.mxu1 %v7456_v25 }
  0x80   :  { %5616 = vmatprep.subr.bf16.mxu0 %v7348_v0  ;;  %5638 = vmatprep.subr.bf16.mxu1 %v7348_v0  ;;  %v7630_v0 = vld [vmem:[%s9634_s1 + $0x48] sm:$0xff]  }
  0x82   :  { %558 = vmatmul.mubr.bf16.vlgmr.msra.gmra.mrb[12].mxu0 %v515_v51  ;;  %603 = vmatmul.mubr.bf16.vlgmr.msra.gmra.mrb[12].mxu1 %v566_v53 }
  0x83   :  { %5617 = vmatpush3.bf16.msra.mxu0 %v7353_v1  ;;  %5639 = vmatpush3.bf16.msra.mxu1 %v7353_v1  ;;  %v7637_v1 = vld [vmem:[%s9634_s1 + $0x8] sm:$0xff]  }
  0x84   :  { %5618 = vmatprep.subr.bf16.mxu0 %v7360_v2  ;;  %5640 = vmatprep.subr.bf16.mxu1 %v7360_v2  ;;  %v7644_v2 = vld [vmem:[%s9634_s1 + $0x50] sm:$0xff]  }
  0x85   :  { %673 = vmatprep.mubr.bf16.mxu0 %v638_v52  ;;  %717 = vmatprep.mubr.bf16.mxu1 %v682_v54 }
  0x87   :  { %5619 = vmatpush3.bf16.msra.mxu0 %v7367_v3  ;;  %5641 = vmatpush3.bf16.msra.mxu1 %v7367_v3  ;;  %v7651_v3 = vld [vmem:[%s9634_s1 + $0x10] sm:$0xff]  }
  0x88   :  { %5620 = vmatprep.subr.bf16.mxu0 %v7374_v4  ;;  %5642 = vmatprep.subr.bf16.mxu1 %v7374_v4  ;;  %v7658_v4 = vld [vmem:[%s9634_s1 + $0x58] sm:$0xff]  }
  0x8b   :  { %5621 = vmatpush3.bf16.msra.mxu0 %v7381_v5  ;;  %5643 = vmatpush3.bf16.msra.mxu1 %v7381_v5  ;;  %v7665_v5 = vld [vmem:[%s9634_s1 + $0x18] sm:$0xff]  }
  0x8c   :  { %5622 = vmatprep.subr.bf16.mxu0 %v7388_v6  ;;  %5644 = vmatprep.subr.bf16.mxu1 %v7388_v6  ;;  %v7672_v6 = vld [vmem:[%s9634_s1 + $0x60] sm:$0xff]  }
  0x8f   :  { %5623 = vmatpush3.bf16.msra.mxu0 %v7395_v7  ;;  %5645 = vmatpush3.bf16.msra.mxu1 %v7395_v7  ;;  %v5289_v7 = vld [vmem:[%s9633_s0 + $0x18] sm:$0xff] }
  0x90   :  { %5624 = vmatprep.subr.bf16.mxu0 %v7402_v9  ;;  %5646 = vmatprep.subr.bf16.mxu1 %v7402_v9  ;;  %v849_v9 = vrot.slane %v5289_v7, %v7440_v21  ;;  %v952_v15 = vcombine.high %v5289_v7, %v5289_v7 }
  0x92   :  { %v857_v22 = vrot.slane %v849_v9, %v7440_v21 }
  0x93   :  { %5625 = vmatpush3.bf16.msra.mxu0 %v7409_v10  ;;  %5647 = vmatpush3.bf16.msra.mxu1 %v7409_v10  ;;  %v850_v10 = vcombine.high %v849_v9, %v849_v9 }
  0x94   :  { %5626 = vmatprep.subr.bf16.mxu0 %v7416_v12  ;;  %5648 = vmatprep.subr.bf16.mxu1 %v7416_v12  ;;  %v907_v26 = vcombine.high %v857_v22, %v857_v22 }
  0x97   :  { %5627 = vmatpush3.bf16.msra.mxu0 %v7424_v14  ;;  %5649 = vmatpush3.bf16.msra.mxu1 %v7424_v14 }
  0x98   :  { %5628 = vmatprep.subr.bf16.mxu0 %v7429_v17  ;;  %5650 = vmatprep.subr.bf16.mxu1 %v7429_v17 }
  0x9b   :  { %5629 = vmatpush3.bf16.msra.mxu0 %v7438_v20  ;;  %5651 = vmatpush3.bf16.msra.mxu1 %v7438_v20 }
  0x9c   :  { %5630 = vmatprep.subr.bf16.mxu0 %v7451_v24  ;;  %5652 = vmatprep.subr.bf16.mxu1 %v7451_v24 }
  0x9f   :  { %5631 = vmatpush3.bf16.msra.mxu0 %v7456_v25  ;;  %5653 = vmatpush3.bf16.msra.mxu1 %v7456_v25 }
  0xa0   :  { %5660 = vmatprep.subr.bf16.mxu0 %v7616_v61  ;;  %5682 = vmatprep.subr.bf16.mxu1 %v7616_v61 }
  0xa2   :  { %674 = vmatmul.mubr.bf16.vlgmr.msra.gmra.mrb[16].mxu0 %v631_v58  ;;  %718 = vmatmul.mubr.bf16.vlgmr.msra.gmra.mrb[16].mxu1 %v681_v60  ;;  %v1186_v60 = vcombine.high %v7842_v50, %v7842_v50 }
  0xa3   :  { %5661 = vmatpush3.bf16.msra.mxu0 %v7623_v63  ;;  %5683 = vmatpush3.bf16.msra.mxu1 %v7623_v63 }
  0xa4   :  { %5662 = vmatprep.subr.bf16.mxu0 %v7630_v0  ;;  %5684 = vmatprep.subr.bf16.mxu1 %v7630_v0  ;;  %v1200_v9 = vrot.slane %v1186_v60, %v7440_v21 }
  0xa5   :  { %783 = vmatprep.mubr.bf16.mxu0 %v748_v59  ;;  %828 = vmatprep.mubr.bf16.mxu1 %v793_v62  ;;  %v1083_v62 = vrot.slane %v7796_v32, %v7440_v21 }
  0xa7   :  { %5663 = vmatpush3.bf16.msra.mxu0 %v7637_v1  ;;  %5685 = vmatpush3.bf16.msra.mxu1 %v7637_v1 }
  0xa8   :  { %5664 = vmatprep.subr.bf16.mxu0 %v7644_v2  ;;  %5686 = vmatprep.subr.bf16.mxu1 %v7644_v2 }
  0xab   :  { %5665 = vmatpush3.bf16.msra.mxu0 %v7651_v3  ;;  %5687 = vmatpush3.bf16.msra.mxu1 %v7651_v3 }
  0xac   :  { %5666 = vmatprep.subr.bf16.mxu0 %v7658_v4  ;;  %5688 = vmatprep.subr.bf16.mxu1 %v7658_v4 }
  0xaf   :  { %5667 = vmatpush3.bf16.msra.mxu0 %v7665_v5  ;;  %5689 = vmatpush3.bf16.msra.mxu1 %v7665_v5 }
  0xb0   :  { %5668 = vmatprep.subr.bf16.mxu0 %v7672_v6  ;;  %5690 = vmatprep.subr.bf16.mxu1 %v7672_v6 }
  0xb3   :  { %5669 = vmatpush3.bf16.msra.mxu0 %v7682_v8  ;;  %5691 = vmatpush3.bf16.msra.mxu1 %v7682_v8 }
  0xb4   :  { %5670 = vmatprep.subr.bf16.mxu0 %v7416_v12  ;;  %5692 = vmatprep.subr.bf16.mxu1 %v7416_v12  ;;  %v864_v12 = vrot.slane %v850_v10, %v7440_v21  ;;  %v1133_v10 = vcombine.high %v1083_v62, %v1083_v62 }
  0xb7   :  { %5671 = vmatpush3.bf16.msra.mxu0 %v7424_v14  ;;  %5693 = vmatpush3.bf16.msra.mxu1 %v7424_v14  ;;  %v908_v14 = vcombine.high %v864_v12, %v864_v12 }
  0xb8   :  { %5672 = vmatprep.subr.bf16.mxu0 %v7429_v17  ;;  %5694 = vmatprep.subr.bf16.mxu1 %v7429_v17  ;;  %v7729_v17 = vrot.slane %v952_v15, %v7440_v21 }
  0xba   :  { %v967_v43 = vrot.slane %v7729_v17, %v7440_v21 }
  0xbb   :  { %5673 = vmatpush3.bf16.msra.mxu0 %v7438_v20  ;;  %5695 = vmatpush3.bf16.msra.mxu1 %v7438_v20  ;;  %v960_v20 = vcombine.high %v7729_v17, %v7729_v17 }
  0xbc   :  { %5674 = vmatprep.subr.bf16.mxu0 %v7451_v24  ;;  %5696 = vmatprep.subr.bf16.mxu1 %v7451_v24  ;;  %v7758_v24 = vld [vmem:[%s9634_s1 + $0x78] sm:$0xff]   ;;  %v1018_v45 = vcombine.high %v967_v43, %v967_v43 }
  0xbf   :  { %5675 = vmatpush3.bf16.msra.mxu0 %v7456_v25  ;;  %5697 = vmatpush3.bf16.msra.mxu1 %v7456_v25  ;;  %v974_v25 = vrot.slane %v960_v20, %v7440_v21 }
  0xc0   :  { %5704 = vmatprep.subr.bf16.mxu0 %v7616_v61  ;;  %5726 = vmatprep.subr.bf16.mxu1 %v7616_v61 }
  0xc1   :  { %v1019_v28 = vcombine.high %v974_v25, %v974_v25 }
  0xc2   :  { %784 = vmatmul.mubr.bf16.vlgmr.msra.gmra.mrb[20].mxu0 %v741_v11  ;;  %829 = vmatmul.mubr.bf16.vlgmr.msra.gmra.mrb[20].mxu1 %v792_v13  ;;  %v1245_v11 = vcombine.high %v1200_v9, %v1200_v9 }
  0xc3   :  { %5705 = vmatpush3.bf16.msra.mxu0 %v7623_v63  ;;  %5727 = vmatpush3.bf16.msra.mxu1 %v7623_v63 }
  0xc4   :  { %5706 = vmatprep.subr.bf16.mxu0 %v7630_v0  ;;  %5728 = vmatprep.subr.bf16.mxu1 %v7630_v0 }
  0xc5   :  { %899 = vmatprep.mubr.bf16.mxu0 %v864_v12  ;;  %943 = vmatprep.mubr.bf16.mxu1 %v908_v14  ;;  %v5291_v12 = vld [vmem:[%s9633_s0 + $0x28] sm:$0xff] }
  0xc6   :  { %v7891_v15 = vrot.slane %v5291_v12, %v7440_v21 }
  0xc7   :  { %5707 = vmatpush3.bf16.msra.mxu0 %v7637_v1  ;;  %5729 = vmatpush3.bf16.msra.mxu1 %v7637_v1 }
  0xc8   :  { %5708 = vmatprep.subr.bf16.mxu0 %v7644_v2  ;;  %5730 = vmatprep.subr.bf16.mxu1 %v7644_v2  ;;  %v1302_v32 = vcombine.high %v7891_v15, %v7891_v15 }
  0xcb   :  { %5709 = vmatpush3.bf16.msra.mxu0 %v7651_v3  ;;  %5731 = vmatpush3.bf16.msra.mxu1 %v7651_v3 }
  0xcc   :  { %5710 = vmatprep.subr.bf16.mxu0 %v7658_v4  ;;  %5732 = vmatprep.subr.bf16.mxu1 %v7658_v4 }
  0xcf   :  { %5711 = vmatpush3.bf16.msra.mxu0 %v7665_v5  ;;  %5733 = vmatpush3.bf16.msra.mxu1 %v7665_v5 }
  0xd0   :  { %5712 = vmatprep.subr.bf16.mxu0 %v7672_v6  ;;  %5734 = vmatprep.subr.bf16.mxu1 %v7672_v6 }
  0xd3   :  { %5713 = vmatpush3.bf16.msra.mxu0 %v7682_v8  ;;  %5735 = vmatpush3.bf16.msra.mxu1 %v7682_v8 }
  0xd4   :  { %5714 = vmatprep.subr.bf16.mxu0 %v7724_v16  ;;  %5736 = vmatprep.subr.bf16.mxu1 %v7724_v16 }
  0xd7   :  { %5715 = vmatpush3.bf16.msra.mxu0 %v7734_v18  ;;  %5737 = vmatpush3.bf16.msra.mxu1 %v7734_v18 }
  0xd8   :  { %5716 = vmatprep.subr.bf16.mxu0 %v7741_v19  ;;  %5738 = vmatprep.subr.bf16.mxu1 %v7741_v19 }
  0xdb   :  { %5717 = vmatpush3.bf16.msra.mxu0 %v7751_v23  ;;  %5739 = vmatpush3.bf16.msra.mxu1 %v7751_v23 }
  0xdc   :  { %5718 = vmatprep.subr.bf16.mxu0 %v7758_v24  ;;  %5740 = vmatprep.subr.bf16.mxu1 %v7758_v24 }
  0xdf   :  { %5719 = vmatpush3.bf16.msra.mxu0 %v7766_v27  ;;  %5741 = vmatpush3.bf16.msra.mxu1 %v7766_v27 }
  0xe0   :  { %5748 = vmatprep.subr.bf16.mxu0 %v7616_v61  ;;  %5770 = vmatprep.subr.bf16.mxu1 %v7616_v61 }
  0xe2   :  { %900 = vmatmul.mubr.bf16.vlgmr.msra.gmra.mrb[24].mxu0 %v857_v22  ;;  %944 = vmatmul.mubr.bf16.vlgmr.msra.gmra.mrb[24].mxu1 %v907_v26 }
  0xe3   :  { %5749 = vmatpush3.bf16.msra.mxu0 %v7623_v63  ;;  %5771 = vmatpush3.bf16.msra.mxu1 %v7623_v63 }
  0xe4   :  { %5750 = vmatprep.subr.bf16.mxu0 %v7630_v0  ;;  %5772 = vmatprep.subr.bf16.mxu1 %v7630_v0 }
  0xe5   :  { %1009 = vmatprep.mubr.bf16.mxu0 %v974_v25  ;;  %1054 = vmatprep.mubr.bf16.mxu1 %v1019_v28 }
  0xe7   :  { %5751 = vmatpush3.bf16.msra.mxu0 %v7637_v1  ;;  %5773 = vmatpush3.bf16.msra.mxu1 %v7637_v1 }
  0xe8   :  { %5752 = vmatprep.subr.bf16.mxu0 %v7644_v2  ;;  %5774 = vmatprep.subr.bf16.mxu1 %v7644_v2 }
  0xeb   :  { %5753 = vmatpush3.bf16.msra.mxu0 %v7651_v3  ;;  %5775 = vmatpush3.bf16.msra.mxu1 %v7651_v3 }
  0xec   :  { %5754 = vmatprep.subr.bf16.mxu0 %v7658_v4  ;;  %5776 = vmatprep.subr.bf16.mxu1 %v7658_v4 }
  0xef   :  { %5755 = vmatpush3.bf16.msra.mxu0 %v7665_v5  ;;  %5777 = vmatpush3.bf16.msra.mxu1 %v7665_v5 }
  0xf0   :  { %5756 = vmatprep.subr.bf16.mxu0 %v7672_v6  ;;  %5778 = vmatprep.subr.bf16.mxu1 %v7672_v6 }
  0xf3   :  { %5757 = vmatpush3.bf16.msra.mxu0 %v7682_v8  ;;  %5779 = vmatpush3.bf16.msra.mxu1 %v7682_v8 }
  0xf4   :  { %5758 = vmatprep.subr.bf16.mxu0 %v7724_v16  ;;  %5780 = vmatprep.subr.bf16.mxu1 %v7724_v16 }
  0xf5   :  { %v5456_v30 = vpop.f32.mrb[0].mxu0  ;;  %v5478_v31 = vpop.f32.mrb[0].mxu1 }
  0xf6   :  { %v5457_v33 = vpop.f32.mrb[1].mxu0  ;;  %v5479_v34 = vpop.f32.mrb[1].mxu1 }
  0xf7   :  { %v7798_v35 = vadd.f32 %v5457_v33, %v5456_v30  ;;  %v7800_v36 = vadd.f32 %v5479_v34, %v5478_v31  ;;  %v5459_v37 = vpop.f32.mrb[2].mxu0  ;;  %v5481_v38 = vpop.f32.mrb[2].mxu1  ;;  %5759 = vmatpush3.bf16.msra.mxu0 %v7734_v18  ;;  %5781 = vmatpush3.bf16.msra.mxu1 %v7734_v18  ;;  %v1193_v33 = vrot.slane %v7842_v50, %v7440_v21 }
  0xf8   :  { %v5460_v39 = vpop.f32.mrb[3].mxu0  ;;  %v5482_v40 = vpop.f32.mrb[3].mxu1  ;;  %5760 = vmatprep.subr.bf16.mxu0 %v7741_v19  ;;  %5782 = vmatprep.subr.bf16.mxu1 %v7741_v19  ;;  %v1316_v34 = vrot.slane %v1302_v32, %v7440_v21  ;;  %v1404_v37 = vcombine.high %v5291_v12, %v5291_v12 }
  0xf9   :  { %v267_v41 = vmax.f32 %v7798_v35, %v7800_v36  ;;  %v1244_v35 = vcombine.high %v1193_v33, %v1193_v33 }
  0xfa   :  { %v1360_v36 = vcombine.high %v1316_v34, %v1316_v34  ;;  %v7937_v40 = vrot.slane %v1404_v37, %v7440_v21 }
  0xfb   :  { %5761 = vmatpush3.bf16.msra.mxu0 %v7751_v23  ;;  %5783 = vmatpush3.bf16.msra.mxu1 %v7751_v23 }
  0xfc   :  { %5762 = vmatprep.subr.bf16.mxu0 %v7758_v24  ;;  %5784 = vmatprep.subr.bf16.mxu1 %v7758_v24  ;;  %v1412_v50 = vcombine.high %v7937_v40, %v7937_v40 }
  0xff   :  { %5763 = vmatpush3.bf16.msra.mxu0 %v7766_v27  ;;  %5785 = vmatpush3.bf16.msra.mxu1 %v7766_v27 }
 0x100   :  { %5792 = vmatprep.subr.bf16.mxu0 %v7616_v61  ;;  %5814 = vmatprep.subr.bf16.mxu1 %v7616_v61 }
 0x102   :  { %1010 = vmatmul.mubr.bf16.vlgmr.msra.gmra.mrb[28].mxu0 %v967_v43  ;;  %1055 = vmatmul.mubr.bf16.vlgmr.msra.gmra.mrb[28].mxu1 %v1018_v45 }
 0x103   :  { %5793 = vmatpush3.bf16.msra.mxu0 %v7623_v63  ;;  %5815 = vmatpush3.bf16.msra.mxu1 %v7623_v63 }
 0x104   :  { %5794 = vmatprep.subr.bf16.mxu0 %v7630_v0  ;;  %5816 = vmatprep.subr.bf16.mxu1 %v7630_v0 }
 0x105   :  { %1125 = vmatprep.mubr.bf16.mxu0 %v1090_v44  ;;  %1169 = vmatprep.mubr.bf16.mxu1 %v1134_v46 }
 0x107   :  { %5795 = vmatpush3.bf16.msra.mxu0 %v7637_v1  ;;  %5817 = vmatpush3.bf16.msra.mxu1 %v7637_v1 }
 0x108   :  { %5796 = vmatprep.subr.bf16.mxu0 %v7644_v2  ;;  %5818 = vmatprep.subr.bf16.mxu1 %v7644_v2 }
 0x10b   :  { %5797 = vmatpush3.bf16.msra.mxu0 %v7651_v3  ;;  %5819 = vmatpush3.bf16.msra.mxu1 %v7651_v3 }
 0x10c   :  { %5798 = vmatprep.subr.bf16.mxu0 %v7658_v4  ;;  %5820 = vmatprep.subr.bf16.mxu1 %v7658_v4 }
 0x10f   :  { %5799 = vmatpush3.bf16.msra.mxu0 %v7665_v5  ;;  %5821 = vmatpush3.bf16.msra.mxu1 %v7665_v5 }
 0x110   :  { %5800 = vmatprep.subr.bf16.mxu0 %v7672_v6  ;;  %5822 = vmatprep.subr.bf16.mxu1 %v7672_v6 }
 0x113   :  { %5801 = vmatpush3.bf16.msra.mxu0 %v7682_v8  ;;  %5823 = vmatpush3.bf16.msra.mxu1 %v7682_v8 }
 0x114   :  { %5802 = vmatprep.subr.bf16.mxu0 %v7724_v16  ;;  %5824 = vmatprep.subr.bf16.mxu1 %v7724_v16 }
 0x115   :  { %v5500_v48 = vpop.f32.mrb[4].mxu0  ;;  %v5522_v49 = vpop.f32.mrb[4].mxu1 }
 0x116   :  { %v5501_v51 = vpop.f32.mrb[5].mxu0  ;;  %v5523_v52 = vpop.f32.mrb[5].mxu1 }
 0x117   :  { %v5502_v53 = vadd.f32 %v5501_v51, %v5500_v48  ;;  %v7844_v54 = vadd.f32 %v5523_v52, %v5522_v49  ;;  %v5503_v55 = vpop.f32.mrb[6].mxu0  ;;  %v5525_v56 = vpop.f32.mrb[6].mxu1  ;;  %5803 = vmatpush3.bf16.msra.mxu0 %v7734_v18  ;;  %5825 = vmatpush3.bf16.msra.mxu1 %v7734_v18  ;;  %v1309_v51 = vrot.slane %v7891_v15, %v7440_v21 }
 0x118   :  { %v5504_v57 = vpop.f32.mrb[7].mxu0  ;;  %v5526_v58 = vpop.f32.mrb[7].mxu1  ;;  %5804 = vmatprep.subr.bf16.mxu0 %v7741_v19  ;;  %5826 = vmatprep.subr.bf16.mxu1 %v7741_v19 }
 0x119   :  { %v7850_v59 = vmax.f32 %v267_v41, %v5502_v53  ;;  %v1426_v53 = vrot.slane %v1412_v50, %v7440_v21  ;;  %v1359_v55 = vcombine.high %v1309_v51, %v1309_v51  ;;  %v5292_v57 = vld [vmem:[%s9633_s0 + $0x30] sm:$0xff] }
 0x11b   :  { %v378_v7 = vmax.f32 %v7850_v59, %v7844_v54  ;;  %5805 = vmatpush3.bf16.msra.mxu0 %v7751_v23  ;;  %5827 = vmatpush3.bf16.msra.mxu1 %v7751_v23  ;;  %v1471_v56 = vcombine.high %v1426_v53, %v1426_v53  ;;  %v7118_v59 = vld [vmem:[%s9636_s3 + $0xf8] sm:$0xff]  }
 0x11c   :  { %5806 = vmatprep.subr.bf16.mxu0 %v7758_v24  ;;  %5828 = vmatprep.subr.bf16.mxu1 %v7758_v24 }
 0x11f   :  { %5807 = vmatpush3.bf16.msra.mxu0 %v7766_v27  ;;  %5829 = vmatpush3.bf16.msra.mxu1 %v7766_v27 }
 0x120   :  { %5836 = vmatprep.subr.bf16.mxu0 %v7616_v61  ;;  %5858 = vmatprep.subr.bf16.mxu1 %v7616_v61 }
 0x122   :  { %1126 = vmatmul.mubr.bf16.vlgmr.msra.gmra.mrb[32].mxu0 %v1083_v62  ;;  %1170 = vmatmul.mubr.bf16.vlgmr.msra.gmra.mrb[32].mxu1 %v1133_v10  ;;  %v7986_v62 = vrot.slane %v5292_v57, %v7440_v21 }
 0x123   :  { %5837 = vmatpush3.bf16.msra.mxu0 %v7623_v63  ;;  %5859 = vmatpush3.bf16.msra.mxu1 %v7623_v63 }
 0x124   :  { %5838 = vmatprep.subr.bf16.mxu0 %v7630_v0  ;;  %5860 = vmatprep.subr.bf16.mxu1 %v7630_v0 }
 0x125   :  { %1235 = vmatprep.mubr.bf16.mxu0 %v1200_v9  ;;  %1280 = vmatprep.mubr.bf16.mxu1 %v1245_v11 }
 0x127   :  { %5839 = vmatpush3.bf16.msra.mxu0 %v7637_v1  ;;  %5861 = vmatpush3.bf16.msra.mxu1 %v7637_v1 }
 0x128   :  { %5840 = vmatprep.subr.bf16.mxu0 %v7644_v2  ;;  %5862 = vmatprep.subr.bf16.mxu1 %v7644_v2 }
 0x12b   :  { %5841 = vmatpush3.bf16.msra.mxu0 %v7651_v3  ;;  %5863 = vmatpush3.bf16.msra.mxu1 %v7651_v3 }
 0x12c   :  { %5842 = vmatprep.subr.bf16.mxu0 %v7658_v4  ;;  %5864 = vmatprep.subr.bf16.mxu1 %v7658_v4 }
 0x12f   :  { %5843 = vmatpush3.bf16.msra.mxu0 %v7665_v5  ;;  %5865 = vmatpush3.bf16.msra.mxu1 %v7665_v5 }
 0x130   :  { %5844 = vmatprep.subr.bf16.mxu0 %v7672_v6  ;;  %5866 = vmatprep.subr.bf16.mxu1 %v7672_v6 }
 0x133   :  { %5845 = vmatpush3.bf16.msra.mxu0 %v7682_v8  ;;  %5867 = vmatpush3.bf16.msra.mxu1 %v7682_v8 }
 0x134   :  { %5846 = vmatprep.subr.bf16.mxu0 %v7724_v16  ;;  %5868 = vmatprep.subr.bf16.mxu1 %v7724_v16 }
 0x135   :  { %v5544_v13 = vpop.f32.mrb[8].mxu0  ;;  %v5566_v14 = vpop.f32.mrb[8].mxu1 }
 0x136   :  { %v5545_v17 = vpop.f32.mrb[9].mxu0  ;;  %v5567_v20 = vpop.f32.mrb[9].mxu1 }
 0x137   :  { %v7893_v22 = vadd.f32 %v5545_v17, %v5544_v13  ;;  %v7895_v25 = vadd.f32 %v5567_v20, %v5566_v14  ;;  %v5547_v26 = vpop.f32.mrb[10].mxu0  ;;  %v5569_v28 = vpop.f32.mrb[10].mxu1  ;;  %5847 = vmatpush3.bf16.msra.mxu0 %v7734_v18  ;;  %5869 = vmatpush3.bf16.msra.mxu1 %v7734_v18 }
 0x138   :  { %v5548_v29 = vpop.f32.mrb[11].mxu0  ;;  %v5570_v30 = vpop.f32.mrb[11].mxu1  ;;  %5848 = vmatprep.subr.bf16.mxu0 %v7741_v19  ;;  %5870 = vmatprep.subr.bf16.mxu1 %v7741_v19 }
 0x139   :  { %v499_v31 = vmax.f32 %v7893_v22, %v7895_v25  ;;  %v1528_v22 = vcombine.high %v7986_v62, %v7986_v62  ;;  %v1419_v25 = vrot.slane %v7937_v40, %v7440_v21  ;;  %v1630_v30 = vcombine.high %v5292_v57, %v5292_v57 }
 0x13b   :  { %5849 = vmatpush3.bf16.msra.mxu0 %v7751_v23  ;;  %5871 = vmatpush3.bf16.msra.mxu1 %v7751_v23  ;;  %v1542_v26 = vrot.slane %v1528_v22, %v7440_v21  ;;  %v1470_v28 = vcombine.high %v1419_v25, %v1419_v25 }
 0x13c   :  { %5850 = vmatprep.subr.bf16.mxu0 %v7758_v24  ;;  %5872 = vmatprep.subr.bf16.mxu1 %v7758_v24 }
 0x13d   :  { %v1586_v29 = vcombine.high %v1542_v26, %v1542_v26 }
 0x13f   :  { %5851 = vmatpush3.bf16.msra.mxu0 %v7766_v27  ;;  %5873 = vmatpush3.bf16.msra.mxu1 %v7766_v27 }
 0x140   :  { %5880 = vmatprep.subr.bf16.mxu0 %v7616_v61  ;;  %5902 = vmatprep.subr.bf16.mxu1 %v7616_v61 }
 0x142   :  { %1236 = vmatmul.mubr.bf16.vlgmr.msra.gmra.mrb[36].mxu0 %v1193_v33  ;;  %1281 = vmatmul.mubr.bf16.vlgmr.msra.gmra.mrb[36].mxu1 %v1244_v35  ;;  %v8032_v33 = vrot.slane %v1630_v30, %v7440_v21 }
 0x143   :  { %5881 = vmatpush3.bf16.msra.mxu0 %v7623_v63  ;;  %5903 = vmatpush3.bf16.msra.mxu1 %v7623_v63 }
 0x144   :  { %5882 = vmatprep.subr.bf16.mxu0 %v7630_v0  ;;  %5904 = vmatprep.subr.bf16.mxu1 %v7630_v0 }
 0x145   :  { %1351 = vmatprep.mubr.bf16.mxu0 %v1316_v34  ;;  %1395 = vmatprep.mubr.bf16.mxu1 %v1360_v36 }
 0x147   :  { %5883 = vmatpush3.bf16.msra.mxu0 %v7637_v1  ;;  %5905 = vmatpush3.bf16.msra.mxu1 %v7637_v1 }
 0x148   :  { %5884 = vmatprep.subr.bf16.mxu0 %v7644_v2  ;;  %5906 = vmatprep.subr.bf16.mxu1 %v7644_v2 }
 0x14b   :  { %5885 = vmatpush3.bf16.msra.mxu0 %v7651_v3  ;;  %5907 = vmatpush3.bf16.msra.mxu1 %v7651_v3 }
 0x14c   :  { %5886 = vmatprep.subr.bf16.mxu0 %v7658_v4  ;;  %5908 = vmatprep.subr.bf16.mxu1 %v7658_v4 }
 0x14f   :  { %5887 = vmatpush3.bf16.msra.mxu0 %v7665_v5  ;;  %5909 = vmatpush3.bf16.msra.mxu1 %v7665_v5 }
 0x150   :  { %5888 = vmatprep.subr.bf16.mxu0 %v7672_v6  ;;  %5910 = vmatprep.subr.bf16.mxu1 %v7672_v6 }
 0x153   :  { %5889 = vmatpush3.bf16.msra.mxu0 %v7682_v8  ;;  %5911 = vmatpush3.bf16.msra.mxu1 %v7682_v8 }
 0x154   :  { %5890 = vmatprep.subr.bf16.mxu0 %v7724_v16  ;;  %5912 = vmatprep.subr.bf16.mxu1 %v7724_v16 }
 0x155   :  { %v5588_v38 = vpop.f32.mrb[12].mxu0  ;;  %v5610_v39 = vpop.f32.mrb[12].mxu1 }
 0x156   :  { %v5589_v41 = vpop.f32.mrb[13].mxu0  ;;  %v5611_v42 = vpop.f32.mrb[13].mxu1 }
 0x157   :  { %v5590_v43 = vadd.f32 %v5589_v41, %v5588_v38  ;;  %v7939_v44 = vadd.f32 %v5611_v42, %v5610_v39  ;;  %v5591_v45 = vpop.f32.mrb[14].mxu0  ;;  %v5613_v46 = vpop.f32.mrb[14].mxu1  ;;  %5891 = vmatpush3.bf16.msra.mxu0 %v7734_v18  ;;  %5913 = vmatpush3.bf16.msra.mxu1 %v7734_v18 }
 0x158   :  { %v5592_v47 = vpop.f32.mrb[15].mxu0  ;;  %v5614_v48 = vpop.f32.mrb[15].mxu1  ;;  %5892 = vmatprep.subr.bf16.mxu0 %v7741_v19  ;;  %5914 = vmatprep.subr.bf16.mxu1 %v7741_v19  ;;  %v1535_v45 = vrot.slane %v7986_v62, %v7440_v21 }
 0x159   :  { %v7945_v49 = vmax.f32 %v499_v31, %v5590_v43  ;;  %v1638_v43 = vcombine.high %v8032_v33, %v8032_v33 }
 0x15a   :  { %v1585_v48 = vcombine.high %v1535_v45, %v1535_v45 }
 0x15b   :  { %v610_v52 = vmax.f32 %v7945_v49, %v7939_v44  ;;  %5893 = vmatpush3.bf16.msra.mxu0 %v7751_v23  ;;  %5915 = vmatpush3.bf16.msra.mxu1 %v7751_v23  ;;  %v1652_v47 = vrot.slane %v1638_v43, %v7440_v21  ;;  %v8195_v43 = vld [vmem:[%s9634_s1 + $0x58] sm:$0xff]   ;;  %v7089_v44 = vld [vmem:[%s9636_s3 + $0x40] sm:$0xff]  }
 0x15c   :  { %5894 = vmatprep.subr.bf16.mxu0 %v7758_v24  ;;  %5916 = vmatprep.subr.bf16.mxu1 %v7758_v24  ;;  %v7090_v49 = vld [vmem:[%s9636_s3 + $0xc0] sm:$0xff]  }
 0x15d   :  { %v1697_v50 = vcombine.high %v1652_v47, %v1652_v47 }
 0x15f   :  { %5895 = vmatpush3.bf16.msra.mxu0 %v7766_v27  ;;  %5917 = vmatpush3.bf16.msra.mxu1 %v7766_v27 }
 0x160   :  { %5924 = vmatprep.subr.bf16.mxu0 %v7616_v61  ;;  %5946 = vmatprep.subr.bf16.mxu1 %v7616_v61 }
 0x162   :  { %1352 = vmatmul.mubr.bf16.vlgmr.msra.gmra.mrb[40].mxu0 %v1309_v51  ;;  %1396 = vmatmul.mubr.bf16.vlgmr.msra.gmra.mrb[40].mxu1 %v1359_v55  ;;  %v5293_v51 = vld [vmem:[%s9633_s0 + $0x38] sm:$0xff] }
 0x163   :  { %5925 = vmatpush3.bf16.msra.mxu0 %v7623_v63  ;;  %5947 = vmatpush3.bf16.msra.mxu1 %v7623_v63 }
 0x164   :  { %5926 = vmatprep.subr.bf16.mxu0 %v7630_v0  ;;  %5948 = vmatprep.subr.bf16.mxu1 %v7630_v0 }
 0x165   :  { %1461 = vmatprep.mubr.bf16.mxu0 %v1426_v53  ;;  %1506 = vmatprep.mubr.bf16.mxu1 %v1471_v56  ;;  %v8081_v56 = vrot.slane %v5293_v51, %v7440_v21 }
 0x167   :  { %5927 = vmatpush3.bf16.msra.mxu0 %v7637_v1  ;;  %5949 = vmatpush3.bf16.msra.mxu1 %v7637_v1  ;;  %v1761_v30 = vrot.slane %v8081_v56, %v7440_v21 }
 0x168   :  { %5928 = vmatprep.subr.bf16.mxu0 %v7644_v2  ;;  %5950 = vmatprep.subr.bf16.mxu1 %v7644_v2 }
 0x16b   :  { %5929 = vmatpush3.bf16.msra.mxu0 %v7651_v3  ;;  %5951 = vmatpush3.bf16.msra.mxu1 %v7651_v3 }
 0x16c   :  { %5930 = vmatprep.subr.bf16.mxu0 %v7658_v4  ;;  %5952 = vmatprep.subr.bf16.mxu1 %v7658_v4 }
 0x16f   :  { %5931 = vmatpush3.bf16.msra.mxu0 %v7665_v5  ;;  %5953 = vmatpush3.bf16.msra.mxu1 %v7665_v5 }
 0x170   :  { %5932 = vmatprep.subr.bf16.mxu0 %v7672_v6  ;;  %5954 = vmatprep.subr.bf16.mxu1 %v7672_v6 }
 0x173   :  { %5933 = vmatpush3.bf16.msra.mxu0 %v7682_v8  ;;  %5955 = vmatpush3.bf16.msra.mxu1 %v7682_v8 }
 0x174   :  { %5934 = vmatprep.subr.bf16.mxu0 %v7724_v16  ;;  %5956 = vmatprep.subr.bf16.mxu1 %v7724_v16 }
 0x175   :  { %v5632_v58 = vpop.f32.mrb[16].mxu0  ;;  %v5654_v60 = vpop.f32.mrb[16].mxu1 }
 0x176   :  { %v5633_v9 = vpop.f32.mrb[17].mxu0  ;;  %v5655_v10 = vpop.f32.mrb[17].mxu1 }
 0x177   :  { %v7988_v11 = vadd.f32 %v5633_v9, %v5632_v58  ;;  %v7990_v12 = vadd.f32 %v5655_v10, %v5654_v60  ;;  %v5635_v13 = vpop.f32.mrb[18].mxu0  ;;  %v5657_v14 = vpop.f32.mrb[18].mxu1  ;;  %5935 = vmatpush3.bf16.msra.mxu0 %v7734_v18  ;;  %5957 = vmatpush3.bf16.msra.mxu1 %v7734_v18 }
 0x178   :  { %v5636_v15 = vpop.f32.mrb[19].mxu0  ;;  %v5658_v17 = vpop.f32.mrb[19].mxu1  ;;  %5936 = vmatprep.subr.bf16.mxu0 %v7741_v19  ;;  %5958 = vmatprep.subr.bf16.mxu1 %v7741_v19  ;;  %v1754_v14 = vcombine.high %v8081_v56, %v8081_v56 }
 0x179   :  { %v725_v20 = vmax.f32 %v7988_v11, %v7990_v12  ;;  %v1645_v15 = vrot.slane %v8032_v33, %v7440_v21  ;;  %v1811_v33 = vcombine.high %v1761_v30, %v1761_v30 }
 0x17a   :  { %v1768_v17 = vrot.slane %v1754_v14, %v7440_v21 }
 0x17b   :  { %5937 = vmatpush3.bf16.msra.mxu0 %v7751_v23  ;;  %5959 = vmatpush3.bf16.msra.mxu1 %v7751_v23 }
 0x17c   :  { %5938 = vmatprep.subr.bf16.mxu0 %v7758_v24  ;;  %5960 = vmatprep.subr.bf16.mxu1 %v7758_v24  ;;  %v1812_v22 = vcombine.high %v1768_v17, %v1768_v17 }
 0x17f   :  { %5939 = vmatpush3.bf16.msra.mxu0 %v7766_v27  ;;  %5961 = vmatpush3.bf16.msra.mxu1 %v7766_v27 }
 0x180   :  { %5968 = vmatprep.subr.bf16.mxu0 %v7616_v61  ;;  %5990 = vmatprep.subr.bf16.mxu1 %v7616_v61 }
 0x182   :  { %1462 = vmatmul.mubr.bf16.vlgmr.msra.gmra.mrb[44].mxu0 %v1419_v25  ;;  %1507 = vmatmul.mubr.bf16.vlgmr.msra.gmra.mrb[44].mxu1 %v1470_v28 }
 0x183   :  { %5969 = vmatpush3.bf16.msra.mxu0 %v7623_v63  ;;  %5991 = vmatpush3.bf16.msra.mxu1 %v7623_v63 }
 0x184   :  { %5970 = vmatprep.subr.bf16.mxu0 %v7630_v0  ;;  %5992 = vmatprep.subr.bf16.mxu1 %v7630_v0 }
 0x185   :  { %1577 = vmatprep.mubr.bf16.mxu0 %v1542_v26  ;;  %1621 = vmatprep.mubr.bf16.mxu1 %v1586_v29 }
 0x187   :  { %5971 = vmatpush3.bf16.msra.mxu0 %v7637_v1  ;;  %5993 = vmatpush3.bf16.msra.mxu1 %v7637_v1 }
 0x188   :  { %5972 = vmatprep.subr.bf16.mxu0 %v7644_v2  ;;  %5994 = vmatprep.subr.bf16.mxu1 %v7644_v2 }
 0x18b   :  { %5973 = vmatpush3.bf16.msra.mxu0 %v7651_v3  ;;  %5995 = vmatpush3.bf16.msra.mxu1 %v7651_v3 }
 0x18c   :  { %5974 = vmatprep.subr.bf16.mxu0 %v7658_v4  ;;  %5996 = vmatprep.subr.bf16.mxu1 %v7658_v4 }
 0x18f   :  { %5975 = vmatpush3.bf16.msra.mxu0 %v7665_v5  ;;  %5997 = vmatpush3.bf16.msra.mxu1 %v7665_v5 }
 0x190   :  { %5976 = vmatprep.subr.bf16.mxu0 %v7672_v6  ;;  %5998 = vmatprep.subr.bf16.mxu1 %v7672_v6 }
 0x193   :  { %5977 = vmatpush3.bf16.msra.mxu0 %v7682_v8  ;;  %5999 = vmatpush3.bf16.msra.mxu1 %v7682_v8 }
 0x194   :  { %5978 = vmatprep.subr.bf16.mxu0 %v7724_v16  ;;  %6000 = vmatprep.subr.bf16.mxu1 %v7724_v16 }
 0x195   :  { %v5676_v31 = vpop.f32.mrb[20].mxu0  ;;  %v5698_v32 = vpop.f32.mrb[20].mxu1 }
 0x196   :  { %v5677_v34 = vpop.f32.mrb[21].mxu0  ;;  %v5699_v35 = vpop.f32.mrb[21].mxu1 }
 0x197   :  { %v5678_v36 = vadd.f32 %v5677_v34, %v5676_v31  ;;  %v8034_v37 = vadd.f32 %v5699_v35, %v5698_v32  ;;  %v5679_v38 = vpop.f32.mrb[22].mxu0  ;;  %v5701_v39 = vpop.f32.mrb[22].mxu1  ;;  %5979 = vmatpush3.bf16.msra.mxu0 %v7734_v18  ;;  %6001 = vmatpush3.bf16.msra.mxu1 %v7734_v18  ;;  %v8153_v34 = vld [vmem:[%s9634_s1 + $0x40] sm:$0xff]  }
 0x198   :  { %v5680_v40 = vpop.f32.mrb[23].mxu0  ;;  %v5702_v41 = vpop.f32.mrb[23].mxu1  ;;  %5980 = vmatprep.subr.bf16.mxu0 %v7741_v19  ;;  %6002 = vmatprep.subr.bf16.mxu1 %v7741_v19  ;;  %v8167_v38 = vld [vmem:[%s9634_s1 + $0x48] sm:$0xff]  }
 0x199   :  { %v8040_v42 = vmax.f32 %v725_v20, %v5678_v36  ;;  %v1696_v20 = vcombine.high %v1645_v15, %v1645_v15  ;;  %v8160_v36 = vld [vmem:[%s9634_s1] sm:$0xff]   ;;  %v8174_v39 = vld [vmem:[%s9634_s1 + $0x8] sm:$0xff]   ;;  %v8181_v40 = vld [vmem:[%s9634_s1 + $0x50] sm:$0xff]  }
 0x19a   :  { %v8188_v41 = vld [vmem:[%s9634_s1 + $0x10] sm:$0xff]  }
 0x19b   :  { %v836_v46 = vmax.f32 %v8040_v42, %v8034_v37  ;;  %5981 = vmatpush3.bf16.msra.mxu0 %v7751_v23  ;;  %6003 = vmatpush3.bf16.msra.mxu1 %v7751_v23 }
 0x19c   :  { %5982 = vmatprep.subr.bf16.mxu0 %v7758_v24  ;;  %6004 = vmatprep.subr.bf16.mxu1 %v7758_v24 }
 0x19f   :  { %5983 = vmatpush3.bf16.msra.mxu0 %v7766_v27  ;;  %6005 = vmatpush3.bf16.msra.mxu1 %v7766_v27 }
 0x1a0   :  { %6012 = vmatprep.subr.bf16.mxu0 %v7616_v61  ;;  %6034 = vmatprep.subr.bf16.mxu1 %v7616_v61 }
 0x1a2   :  { %1578 = vmatmul.mubr.bf16.vlgmr.msra.gmra.mrb[48].mxu0 %v1535_v45  ;;  %1622 = vmatmul.mubr.bf16.vlgmr.msra.gmra.mrb[48].mxu1 %v1585_v48  ;;  %v8202_v45 = vld [vmem:[%s9634_s1 + $0x18] sm:$0xff]   ;;  %v8216_v48 = vld [vmem:[%s9633_s0 + $0x40] sm:$0xff] }
 0x1a3   :  { %6013 = vmatpush3.bf16.msra.mxu0 %v7623_v63  ;;  %6035 = vmatpush3.bf16.msra.mxu1 %v7623_v63 }
 0x1a4   :  { %6014 = vmatprep.subr.bf16.mxu0 %v7630_v0  ;;  %6036 = vmatprep.subr.bf16.mxu1 %v7630_v0 }
 0x1a5   :  { %1687 = vmatprep.mubr.bf16.mxu0 %v1652_v47  ;;  %1732 = vmatprep.mubr.bf16.mxu1 %v1697_v50  ;;  %v8209_v47 = vld [vmem:[%s9634_s1 + $0x60] sm:$0xff]  }
 0x1a6   :  { %v8221_v50 = vld [vmem:[%s9634_s1 + $0x20] sm:$0xff]  }
 0x1a7   :  { %6015 = vmatpush3.bf16.msra.mxu0 %v7637_v1  ;;  %6037 = vmatpush3.bf16.msra.mxu1 %v7637_v1 }
 0x1a8   :  { %6016 = vmatprep.subr.bf16.mxu0 %v7644_v2  ;;  %6038 = vmatprep.subr.bf16.mxu1 %v7644_v2 }
 0x1ab   :  { %6017 = vmatpush3.bf16.msra.mxu0 %v7651_v3  ;;  %6039 = vmatpush3.bf16.msra.mxu1 %v7651_v3 }
 0x1ac   :  { %6018 = vmatprep.subr.bf16.mxu0 %v7658_v4  ;;  %6040 = vmatprep.subr.bf16.mxu1 %v7658_v4 }
 0x1af   :  { %6019 = vmatpush3.bf16.msra.mxu0 %v7665_v5  ;;  %6041 = vmatpush3.bf16.msra.mxu1 %v7665_v5 }
 0x1b0   :  { %6020 = vmatprep.subr.bf16.mxu0 %v7672_v6  ;;  %6042 = vmatprep.subr.bf16.mxu1 %v7672_v6 }
 0x1b3   :  { %6021 = vmatpush3.bf16.msra.mxu0 %v7682_v8  ;;  %6043 = vmatpush3.bf16.msra.mxu1 %v7682_v8 }
 0x1b4   :  { %6022 = vmatprep.subr.bf16.mxu0 %v7724_v16  ;;  %6044 = vmatprep.subr.bf16.mxu1 %v7724_v16 }
 0x1b5   :  { %v5720_v53 = vpop.f32.mrb[24].mxu0  ;;  %v5742_v55 = vpop.f32.mrb[24].mxu1 }
 0x1b6   :  { %v5721_v57 = vpop.f32.mrb[25].mxu0  ;;  %v5743_v58 = vpop.f32.mrb[25].mxu1 }
 0x1b7   :  { %v8083_v60 = vadd.f32 %v5721_v57, %v5720_v53  ;;  %v8085_v62 = vadd.f32 %v5743_v58, %v5742_v55  ;;  %v5723_v9 = vpop.f32.mrb[26].mxu0  ;;  %v5745_v10 = vpop.f32.mrb[26].mxu1  ;;  %6023 = vmatpush3.bf16.msra.mxu0 %v7734_v18  ;;  %6045 = vmatpush3.bf16.msra.mxu1 %v7734_v18  ;;  %v8229_v55 = vrot.slane %v8216_v48, %v7440_v21 }
 0x1b8   :  { %v5724_v11 = vpop.f32.mrb[27].mxu0  ;;  %v5746_v12 = vpop.f32.mrb[27].mxu1  ;;  %6024 = vmatprep.subr.bf16.mxu0 %v7741_v19  ;;  %6046 = vmatprep.subr.bf16.mxu1 %v7741_v19 }
 0x1b9   :  { %v951_v13 = vmax.f32 %v8083_v60, %v8085_v62  ;;  %v1980_v12 = vcombine.high %v8229_v55, %v8229_v55 }
 0x1bb   :  { %6025 = vmatpush3.bf16.msra.mxu0 %v7751_v23  ;;  %6047 = vmatpush3.bf16.msra.mxu1 %v7751_v23 }
 0x1bc   :  { %6026 = vmatprep.subr.bf16.mxu0 %v7758_v24  ;;  %6048 = vmatprep.subr.bf16.mxu1 %v7758_v24 }
 0x1bf   :  { %6027 = vmatpush3.bf16.msra.mxu0 %v7766_v27  ;;  %6049 = vmatpush3.bf16.msra.mxu1 %v7766_v27 }
 0x1c0   :  { %6056 = vmatprep.subr.bf16.mxu0 %v7616_v61  ;;  %6078 = vmatprep.subr.bf16.mxu1 %v7616_v61  ;;  %v1856_v61 = vcombine.high %v5293_v51, %v5293_v51 }
 0x1c2   :  { %1688 = vmatmul.mubr.bf16.vlgmr.msra.gmra.mrb[52].mxu0 %v1645_v15  ;;  %1733 = vmatmul.mubr.bf16.vlgmr.msra.gmra.mrb[52].mxu1 %v1696_v20 }
 0x1c3   :  { %6057 = vmatpush3.bf16.msra.mxu0 %v7623_v63  ;;  %6079 = vmatpush3.bf16.msra.mxu1 %v7623_v63 }
 0x1c4   :  { %6058 = vmatprep.subr.bf16.mxu0 %v7630_v0  ;;  %6080 = vmatprep.subr.bf16.mxu1 %v7630_v0 }
 0x1c5   :  { %1803 = vmatprep.mubr.bf16.mxu0 %v1768_v17  ;;  %1847 = vmatprep.mubr.bf16.mxu1 %v1812_v22 }
 0x1c7   :  { %6059 = vmatpush3.bf16.msra.mxu0 %v7637_v1  ;;  %6081 = vmatpush3.bf16.msra.mxu1 %v7637_v1  ;;  %v8127_v1 = vrot.slane %v1856_v61, %v7440_v21 }
 0x1c8   :  { %6060 = vmatprep.subr.bf16.mxu0 %v7644_v2  ;;  %6082 = vmatprep.subr.bf16.mxu1 %v7644_v2 }
 0x1c9   :  { %v1864_v29 = vcombine.high %v8127_v1, %v8127_v1 }
 0x1cb   :  { %6061 = vmatpush3.bf16.msra.mxu0 %v7651_v3  ;;  %6083 = vmatpush3.bf16.msra.mxu1 %v7651_v3  ;;  %v1878_v32 = vrot.slane %v1864_v29, %v7440_v21 }
 0x1cc   :  { %6062 = vmatprep.subr.bf16.mxu0 %v7658_v4  ;;  %6084 = vmatprep.subr.bf16.mxu1 %v7658_v4 }
 0x1cd   :  { %v1923_v35 = vcombine.high %v1878_v32, %v1878_v32 }
 0x1cf   :  { %6063 = vmatpush3.bf16.msra.mxu0 %v7665_v5  ;;  %6085 = vmatpush3.bf16.msra.mxu1 %v7665_v5 }
 0x1d0   :  { %6064 = vmatprep.subr.bf16.mxu0 %v7672_v6  ;;  %6086 = vmatprep.subr.bf16.mxu1 %v7672_v6 }
 0x1d3   :  { %6065 = vmatpush3.bf16.msra.mxu0 %v7682_v8  ;;  %6087 = vmatpush3.bf16.msra.mxu1 %v7682_v8 }
 0x1d4   :  { %6066 = vmatprep.subr.bf16.mxu0 %v7724_v16  ;;  %6088 = vmatprep.subr.bf16.mxu1 %v7724_v16 }
 0x1d5   :  { %v5764_v63 = vpop.f32.mrb[28].mxu0  ;;  %v5786_v0 = vpop.f32.mrb[28].mxu1 }
 0x1d6   :  { %v5765_v2 = vpop.f32.mrb[29].mxu0  ;;  %v5787_v3 = vpop.f32.mrb[29].mxu1 }
 0x1d7   :  { %v5766_v4 = vadd.f32 %v5765_v2, %v5764_v63  ;;  %v8129_v5 = vadd.f32 %v5787_v3, %v5786_v0  ;;  %v5767_v6 = vpop.f32.mrb[30].mxu0  ;;  %v5789_v25 = vpop.f32.mrb[30].mxu1  ;;  %6067 = vmatpush3.bf16.msra.mxu0 %v7734_v18  ;;  %6089 = vmatpush3.bf16.msra.mxu1 %v7734_v18  ;;  %v8289_v2 = vld [vmem:[%s9634_s1 + $0x28] sm:$0xff]  }
 0x1d8   :  { %v5768_v8 = vpop.f32.mrb[31].mxu0  ;;  %v5790_v26 = vpop.f32.mrb[31].mxu1  ;;  %6068 = vmatprep.subr.bf16.mxu0 %v7741_v19  ;;  %6090 = vmatprep.subr.bf16.mxu1 %v7741_v19  ;;  %v8296_v6 = vld [vmem:[%s9634_s1 + $0x70] sm:$0xff]  }
 0x1d9   :  { %v8135_v28 = vmax.f32 %v951_v13, %v5766_v4  ;;  %v1871_v13 = vrot.slane %v8127_v1, %v7440_v21  ;;  %v1987_v26 = vrot.slane %v8229_v55, %v7440_v21 }
 0x1db   :  { %v1062_v31 = vmax.f32 %v8135_v28, %v8129_v5  ;;  %6069 = vmatpush3.bf16.msra.mxu0 %v7751_v23  ;;  %6091 = vmatpush3.bf16.msra.mxu1 %v7751_v23 }
 0x1dc   :  { %6070 = vmatprep.subr.bf16.mxu0 %v7758_v24  ;;  %6092 = vmatprep.subr.bf16.mxu1 %v7758_v24 }
 0x1df   :  { %6071 = vmatpush3.bf16.msra.mxu0 %v7766_v27  ;;  %6093 = vmatpush3.bf16.msra.mxu1 %v7766_v27 }
 0x1e0   :  { %6100 = vmatprep.subr.bf16.mxu0 %v8153_v34  ;;  %6122 = vmatprep.subr.bf16.mxu1 %v8153_v34 }
 0x1e2   :  { %1804 = vmatmul.mubr.bf16.vlgmr.msra.gmra.mrb[56].mxu0 %v1761_v30  ;;  %1848 = vmatmul.mubr.bf16.vlgmr.msra.gmra.mrb[56].mxu1 %v1811_v33  ;;  %v8311_v30 = vld [vmem:[%s9634_s1 + $0x30] sm:$0xff]  }
 0x1e3   :  { %6101 = vmatpush3.bf16.msra.mxu0 %v8160_v36  ;;  %6123 = vmatpush3.bf16.msra.mxu1 %v8160_v36 }
 0x1e4   :  { %6102 = vmatprep.subr.bf16.mxu0 %v8167_v38  ;;  %6124 = vmatprep.subr.bf16.mxu1 %v8167_v38 }
 0x1e5   :  { %1913 = vmatprep.mubr.bf16.mxu0 %v1878_v32  ;;  %1958 = vmatprep.mubr.bf16.mxu1 %v1923_v35  ;;  %v8318_v32 = vld [vmem:[%s9634_s1 + $0x78] sm:$0xff]   ;;  %v2037_v35 = vcombine.high %v1987_v26, %v1987_v26 }
 0x1e7   :  { %6103 = vmatpush3.bf16.msra.mxu0 %v8174_v39  ;;  %6125 = vmatpush3.bf16.msra.mxu1 %v8174_v39 }
 0x1e8   :  { %6104 = vmatprep.subr.bf16.mxu0 %v8181_v40  ;;  %6126 = vmatprep.subr.bf16.mxu1 %v8181_v40 }
 0x1eb   :  { %6105 = vmatpush3.bf16.msra.mxu0 %v8188_v41  ;;  %6127 = vmatpush3.bf16.msra.mxu1 %v8188_v41 }
 0x1ec   :  { %6106 = vmatprep.subr.bf16.mxu0 %v8195_v43  ;;  %6128 = vmatprep.subr.bf16.mxu1 %v8195_v43 }
 0x1ef   :  { %6107 = vmatpush3.bf16.msra.mxu0 %v8202_v45  ;;  %6129 = vmatpush3.bf16.msra.mxu1 %v8202_v45 }
 0x1f0   :  { %6108 = vmatprep.subr.bf16.mxu0 %v8209_v47  ;;  %6130 = vmatprep.subr.bf16.mxu1 %v8209_v47 }
 0x1f3   :  { %6109 = vmatpush3.bf16.msra.mxu0 %v8221_v50  ;;  %6131 = vmatpush3.bf16.msra.mxu1 %v8221_v50 }
 0x1f4   :  { %6110 = vmatprep.subr.bf16.mxu0 %v7724_v16  ;;  %6132 = vmatprep.subr.bf16.mxu1 %v7724_v16 }
 0x1f5   :  { %v5808_v51 = vpop.f32.mrb[32].mxu0  ;;  %v5830_v53 = vpop.f32.mrb[32].mxu1 }
 0x1f6   :  { %v5809_v56 = vpop.f32.mrb[33].mxu0  ;;  %v5831_v57 = vpop.f32.mrb[33].mxu1 }
 0x1f7   :  { %v8231_v58 = vadd.f32 %v5809_v56, %v5808_v51  ;;  %v8233_v60 = vadd.f32 %v5831_v57, %v5830_v53  ;;  %v5811_v62 = vpop.f32.mrb[34].mxu0  ;;  %v5833_v9 = vpop.f32.mrb[34].mxu1  ;;  %6111 = vmatpush3.bf16.msra.mxu0 %v7734_v18  ;;  %6133 = vmatpush3.bf16.msra.mxu1 %v7734_v18  ;;  %v1994_v18 = vrot.slane %v1980_v12, %v7440_v21  ;;  %v5295_v53 = vld [vmem:[%s9633_s0 + $0x48] sm:$0xff] }
 0x1f8   :  { %v5812_v10 = vpop.f32.mrb[35].mxu0  ;;  %v5834_v16 = vpop.f32.mrb[35].mxu1  ;;  %6112 = vmatprep.subr.bf16.mxu0 %v7741_v19  ;;  %6134 = vmatprep.subr.bf16.mxu1 %v7741_v19  ;;  %v1922_v19 = vcombine.high %v1871_v13, %v1871_v13  ;;  %v8356_v57 = vrot.slane %v5295_v53, %v7440_v21 }
 0x1f9   :  { %v1177_v11 = vmax.f32 %v8231_v58, %v8233_v60  ;;  %v2038_v14 = vcombine.high %v1994_v18, %v1994_v18 }
 0x1fb   :  { %6113 = vmatpush3.bf16.msra.mxu0 %v7751_v23  ;;  %6135 = vmatpush3.bf16.msra.mxu1 %v7751_v23  ;;  %v2082_v23 = vcombine.high %v8216_v48, %v8216_v48  ;;  %v8326_v48 = vld [vmem:[%s9634_s1 + $0x38] sm:$0xff]  }
 0x1fc   :  { %6114 = vmatprep.subr.bf16.mxu0 %v7758_v24  ;;  %6136 = vmatprep.subr.bf16.mxu1 %v7758_v24  ;;  %v8277_v24 = vld [vmem:[%s9634_s1 + $0x68] sm:$0xff]  }
 0x1fd   :  { %v8282_v17 = vrot.slane %v2082_v23, %v7440_v21 }
 0x1ff   :  { %6115 = vmatpush3.bf16.msra.mxu0 %v7766_v27  ;;  %6137 = vmatpush3.bf16.msra.mxu1 %v7766_v27  ;;  %v2090_v8 = vcombine.high %v8282_v17, %v8282_v17 }
 0x200   :  { %6144 = vmatprep.subr.bf16.mxu0 %v8153_v34  ;;  %6166 = vmatprep.subr.bf16.mxu1 %v8153_v34 }
 0x201   :  { %v2104_v33 = vrot.slane %v2090_v8, %v7440_v21 }
 0x202   :  { %1914 = vmatmul.mubr.bf16.vlgmr.msra.gmra.mrb[60].mxu0 %v1871_v13  ;;  %1959 = vmatmul.mubr.bf16.vlgmr.msra.gmra.mrb[60].mxu1 %v1922_v19  ;;  %v2097_v19 = vrot.slane %v8282_v17, %v7440_v21 }
 0x203   :  { %6145 = vmatpush3.bf16.msra.mxu0 %v8160_v36  ;;  %6167 = vmatpush3.bf16.msra.mxu1 %v8160_v36  ;;  %v2149_v51 = vcombine.high %v2104_v33, %v2104_v33 }
 0x204   :  { %6146 = vmatprep.subr.bf16.mxu0 %v8167_v38  ;;  %6168 = vmatprep.subr.bf16.mxu1 %v8167_v38  ;;  %v2148_v23 = vcombine.high %v2097_v19, %v2097_v19 }
 0x205   :  { %2029 = vmatprep.mubr.bf16.mxu0 %v1994_v18  ;;  %2073 = vmatprep.mubr.bf16.mxu1 %v2038_v14  ;;  %v2206_v18 = vcombine.high %v8356_v57, %v8356_v57 }
 0x207   :  { %6147 = vmatpush3.bf16.msra.mxu0 %v8174_v39  ;;  %6169 = vmatpush3.bf16.msra.mxu1 %v8174_v39  ;;  %v2220_v14 = vrot.slane %v2206_v18, %v7440_v21 }
 0x208   :  { %6148 = vmatprep.subr.bf16.mxu0 %v8181_v40  ;;  %6170 = vmatprep.subr.bf16.mxu1 %v8181_v40 }
 0x20b   :  { %6149 = vmatpush3.bf16.msra.mxu0 %v8188_v41  ;;  %6171 = vmatpush3.bf16.msra.mxu1 %v8188_v41 }
 0x20c   :  { %6150 = vmatprep.subr.bf16.mxu0 %v8195_v43  ;;  %6172 = vmatprep.subr.bf16.mxu1 %v8195_v43 }
 0x20f   :  { %6151 = vmatpush3.bf16.msra.mxu0 %v8202_v45  ;;  %6173 = vmatpush3.bf16.msra.mxu1 %v8202_v45 }
 0x210   :  { %6152 = vmatprep.subr.bf16.mxu0 %v8209_v47  ;;  %6174 = vmatprep.subr.bf16.mxu1 %v8209_v47 }
 0x213   :  { %6153 = vmatpush3.bf16.msra.mxu0 %v8221_v50  ;;  %6175 = vmatpush3.bf16.msra.mxu1 %v8221_v50 }
 0x214   :  { %6154 = vmatprep.subr.bf16.mxu0 %v8277_v24  ;;  %6176 = vmatprep.subr.bf16.mxu1 %v8277_v24 }
 0x215   :  { %v5852_v27 = vpop.f32.mrb[36].mxu0  ;;  %v5874_v15 = vpop.f32.mrb[36].mxu1 }
 0x216   :  { %v5853_v20 = vpop.f32.mrb[37].mxu0  ;;  %v5875_v22 = vpop.f32.mrb[37].mxu1 }
 0x217   :  { %v5854_v61 = vadd.f32 %v5853_v20, %v5852_v27  ;;  %v8284_v63 = vadd.f32 %v5875_v22, %v5874_v15  ;;  %v5855_v0 = vpop.f32.mrb[38].mxu0  ;;  %v5877_v1 = vpop.f32.mrb[38].mxu1  ;;  %6155 = vmatpush3.bf16.msra.mxu0 %v8289_v2  ;;  %6177 = vmatpush3.bf16.msra.mxu1 %v8289_v2  ;;  %v2264_v27 = vcombine.high %v2220_v14, %v2220_v14 }
 0x218   :  { %v5856_v3 = vpop.f32.mrb[39].mxu0  ;;  %v5878_v4 = vpop.f32.mrb[39].mxu1  ;;  %6156 = vmatprep.subr.bf16.mxu0 %v8296_v6  ;;  %6178 = vmatprep.subr.bf16.mxu1 %v8296_v6  ;;  %v2308_v15 = vcombine.high %v5295_v53, %v5295_v53  ;;  %v2213_v53 = vrot.slane %v8356_v57, %v7440_v21 }
 0x219   :  { %v8300_v25 = vmax.f32 %v1177_v11, %v5854_v61 }
 0x21a   :  { %v8402_v22 = vrot.slane %v2308_v15, %v7440_v21 }
 0x21b   :  { %v1288_v29 = vmax.f32 %v8300_v25, %v8284_v63  ;;  %6157 = vmatpush3.bf16.msra.mxu0 %v8311_v30  ;;  %6179 = vmatpush3.bf16.msra.mxu1 %v8311_v30  ;;  %v7150_v25 = vld [vmem:[%s9636_s3 + $0x1f8] sm:$0xff]  }
 0x21c   :  { %6158 = vmatprep.subr.bf16.mxu0 %v8318_v32  ;;  %6180 = vmatprep.subr.bf16.mxu1 %v8318_v32 }
 0x21f   :  { %6159 = vmatpush3.bf16.msra.mxu0 %v8326_v48  ;;  %6181 = vmatpush3.bf16.msra.mxu1 %v8326_v48 }
 0x220   :  { %6188 = vmatprep.subr.bf16.mxu0 %v8153_v34  ;;  %6210 = vmatprep.subr.bf16.mxu1 %v8153_v34 }
 0x222   :  { %2030 = vmatmul.mubr.bf16.vlgmr.msra.gmra.mrb[64].mxu0 %v1987_v26  ;;  %2074 = vmatmul.mubr.bf16.vlgmr.msra.gmra.mrb[64].mxu1 %v2037_v35 }
 0x223   :  { %6189 = vmatpush3.bf16.msra.mxu0 %v8160_v36  ;;  %6211 = vmatpush3.bf16.msra.mxu1 %v8160_v36 }
 0x224   :  { %6190 = vmatprep.subr.bf16.mxu0 %v8167_v38  ;;  %6212 = vmatprep.subr.bf16.mxu1 %v8167_v38 }
 0x225   :  { %2139 = vmatprep.mubr.bf16.mxu0 %v2104_v33  ;;  %2184 = vmatprep.mubr.bf16.mxu1 %v2149_v51  ;;  %v2316_v51 = vcombine.high %v8402_v22, %v8402_v22 }
 0x227   :  { %6191 = vmatpush3.bf16.msra.mxu0 %v8174_v39  ;;  %6213 = vmatpush3.bf16.msra.mxu1 %v8174_v39 }
 0x228   :  { %6192 = vmatprep.subr.bf16.mxu0 %v8181_v40  ;;  %6214 = vmatprep.subr.bf16.mxu1 %v8181_v40 }
 0x22b   :  { %6193 = vmatpush3.bf16.msra.mxu0 %v8188_v41  ;;  %6215 = vmatpush3.bf16.msra.mxu1 %v8188_v41 }
 0x22c   :  { %6194 = vmatprep.subr.bf16.mxu0 %v8195_v43  ;;  %6216 = vmatprep.subr.bf16.mxu1 %v8195_v43 }
 0x22f   :  { %6195 = vmatpush3.bf16.msra.mxu0 %v8202_v45  ;;  %6217 = vmatpush3.bf16.msra.mxu1 %v8202_v45 }
 0x230   :  { %6196 = vmatprep.subr.bf16.mxu0 %v8209_v47  ;;  %6218 = vmatprep.subr.bf16.mxu1 %v8209_v47 }
 0x233   :  { %6197 = vmatpush3.bf16.msra.mxu0 %v8221_v50  ;;  %6219 = vmatpush3.bf16.msra.mxu1 %v8221_v50 }
 0x234   :  { %6198 = vmatprep.subr.bf16.mxu0 %v8277_v24  ;;  %6220 = vmatprep.subr.bf16.mxu1 %v8277_v24 }
 0x235   :  { %v5896_v55 = vpop.f32.mrb[40].mxu0  ;;  %v5918_v56 = vpop.f32.mrb[40].mxu1 }
 0x236   :  { %v5897_v58 = vpop.f32.mrb[41].mxu0  ;;  %v5919_v60 = vpop.f32.mrb[41].mxu1 }
 0x237   :  { %v8358_v62 = vadd.f32 %v5897_v58, %v5896_v55  ;;  %v8360_v9 = vadd.f32 %v5919_v60, %v5918_v56  ;;  %v5899_v10 = vpop.f32.mrb[42].mxu0  ;;  %v5921_v16 = vpop.f32.mrb[42].mxu1  ;;  %6199 = vmatpush3.bf16.msra.mxu0 %v8289_v2  ;;  %6221 = vmatpush3.bf16.msra.mxu1 %v8289_v2  ;;  %v2330_v56 = vrot.slane %v2316_v51, %v7440_v21  ;;  %v5296_v60 = vld [vmem:[%s9633_s0 + $0x50] sm:$0xff] }
 0x238   :  { %v5900_v11 = vpop.f32.mrb[43].mxu0  ;;  %v5922_v12 = vpop.f32.mrb[43].mxu1  ;;  %6200 = vmatprep.subr.bf16.mxu0 %v8296_v6  ;;  %6222 = vmatprep.subr.bf16.mxu1 %v8296_v6  ;;  %v2263_v58 = vcombine.high %v2213_v53, %v2213_v53  ;;  %v8451_v10 = vrot.slane %v5296_v60, %v7440_v21 }
 0x239   :  { %v1403_v13 = vmax.f32 %v8358_v62, %v8360_v9  ;;  %v2375_v57 = vcombine.high %v2330_v56, %v2330_v56 }
 0x23a   :  { %v2432_v15 = vcombine.high %v8451_v10, %v8451_v10 }
 0x23b   :  { %6201 = vmatpush3.bf16.msra.mxu0 %v8311_v30  ;;  %6223 = vmatpush3.bf16.msra.mxu1 %v8311_v30 }
 0x23c   :  { %6202 = vmatprep.subr.bf16.mxu0 %v8318_v32  ;;  %6224 = vmatprep.subr.bf16.mxu1 %v8318_v32 }
 0x23f   :  { %6203 = vmatpush3.bf16.msra.mxu0 %v8326_v48  ;;  %6225 = vmatpush3.bf16.msra.mxu1 %v8326_v48 }
 0x240   :  { %6232 = vmatprep.subr.bf16.mxu0 %v8153_v34  ;;  %6254 = vmatprep.subr.bf16.mxu1 %v8153_v34 }
 0x242   :  { %2140 = vmatmul.mubr.bf16.vlgmr.msra.gmra.mrb[68].mxu0 %v2097_v19  ;;  %2185 = vmatmul.mubr.bf16.vlgmr.msra.gmra.mrb[68].mxu1 %v2148_v23 }
 0x243   :  { %6233 = vmatpush3.bf16.msra.mxu0 %v8160_v36  ;;  %6255 = vmatpush3.bf16.msra.mxu1 %v8160_v36 }
 0x244   :  { %6234 = vmatprep.subr.bf16.mxu0 %v8167_v38  ;;  %6256 = vmatprep.subr.bf16.mxu1 %v8167_v38 }
 0x245   :  { %2255 = vmatprep.mubr.bf16.mxu0 %v2220_v14  ;;  %2299 = vmatprep.mubr.bf16.mxu1 %v2264_v27 }
 0x247   :  { %6235 = vmatpush3.bf16.msra.mxu0 %v8174_v39  ;;  %6257 = vmatpush3.bf16.msra.mxu1 %v8174_v39 }
 0x248   :  { %6236 = vmatprep.subr.bf16.mxu0 %v8181_v40  ;;  %6258 = vmatprep.subr.bf16.mxu1 %v8181_v40 }
 0x24b   :  { %6237 = vmatpush3.bf16.msra.mxu0 %v8188_v41  ;;  %6259 = vmatpush3.bf16.msra.mxu1 %v8188_v41 }
 0x24c   :  { %6238 = vmatprep.subr.bf16.mxu0 %v8195_v43  ;;  %6260 = vmatprep.subr.bf16.mxu1 %v8195_v43 }
 0x24f   :  { %6239 = vmatpush3.bf16.msra.mxu0 %v8202_v45  ;;  %6261 = vmatpush3.bf16.msra.mxu1 %v8202_v45 }
 0x250   :  { %6240 = vmatprep.subr.bf16.mxu0 %v8209_v47  ;;  %6262 = vmatprep.subr.bf16.mxu1 %v8209_v47 }
 0x253   :  { %6241 = vmatpush3.bf16.msra.mxu0 %v8221_v50  ;;  %6263 = vmatpush3.bf16.msra.mxu1 %v8221_v50 }
 0x254   :  { %6242 = vmatprep.subr.bf16.mxu0 %v8277_v24  ;;  %6264 = vmatprep.subr.bf16.mxu1 %v8277_v24 }
 0x255   :  { %v5940_v17 = vpop.f32.mrb[44].mxu0  ;;  %v5962_v20 = vpop.f32.mrb[44].mxu1 }
 0x256   :  { %v5941_v61 = vpop.f32.mrb[45].mxu0  ;;  %v5963_v0 = vpop.f32.mrb[45].mxu1 }
 0x257   :  { %v5942_v1 = vadd.f32 %v5941_v61, %v5940_v17  ;;  %v8404_v3 = vadd.f32 %v5963_v0, %v5962_v20  ;;  %v5943_v4 = vpop.f32.mrb[46].mxu0  ;;  %v5965_v8 = vpop.f32.mrb[46].mxu1  ;;  %6243 = vmatpush3.bf16.msra.mxu0 %v8289_v2  ;;  %6265 = vmatpush3.bf16.msra.mxu1 %v8289_v2  ;;  %v2323_v17 = vrot.slane %v8402_v22, %v7440_v21 }
 0x258   :  { %v5944_v26 = vpop.f32.mrb[47].mxu0  ;;  %v5966_v33 = vpop.f32.mrb[47].mxu1  ;;  %6244 = vmatprep.subr.bf16.mxu0 %v8296_v6  ;;  %6266 = vmatprep.subr.bf16.mxu1 %v8296_v6  ;;  %v2446_v20 = vrot.slane %v2432_v15, %v7440_v21  ;;  %v2534_v0 = vcombine.high %v5296_v60, %v5296_v60 }
 0x259   :  { %v8410_v35 = vmax.f32 %v1403_v13, %v5942_v1  ;;  %v2374_v61 = vcombine.high %v2323_v17, %v2323_v17 }
 0x25a   :  { %v2490_v22 = vcombine.high %v2446_v20, %v2446_v20  ;;  %v8497_v8 = vrot.slane %v2534_v0, %v7440_v21 }
 0x25b   :  { %v1514_v55 = vmax.f32 %v8410_v35, %v8404_v3  ;;  %6245 = vmatpush3.bf16.msra.mxu0 %v8311_v30  ;;  %6267 = vmatpush3.bf16.msra.mxu1 %v8311_v30  ;;  %v7120_v3 = vld [vmem:[%s9636_s3 + $0xb8] sm:$0xff]   ;;  %v7121_v35 = vld [vmem:[%s9636_s3 + $0x140] sm:$0xff]  }
 0x25c   :  { %6246 = vmatprep.subr.bf16.mxu0 %v8318_v32  ;;  %6268 = vmatprep.subr.bf16.mxu1 %v8318_v32 }
 0x25f   :  { %6247 = vmatpush3.bf16.msra.mxu0 %v8326_v48  ;;  %6269 = vmatpush3.bf16.msra.mxu1 %v8326_v48 }
 0x260   :  { %6276 = vmatprep.subr.bf16.mxu0 %v8153_v34  ;;  %6298 = vmatprep.subr.bf16.mxu1 %v8153_v34 }
 0x262   :  { %2256 = vmatmul.mubr.bf16.vlgmr.msra.gmra.mrb[72].mxu0 %v2213_v53  ;;  %2300 = vmatmul.mubr.bf16.vlgmr.msra.gmra.mrb[72].mxu1 %v2263_v58 }
 0x263   :  { %6277 = vmatpush3.bf16.msra.mxu0 %v8160_v36  ;;  %6299 = vmatpush3.bf16.msra.mxu1 %v8160_v36 }
 0x264   :  { %6278 = vmatprep.subr.bf16.mxu0 %v8167_v38  ;;  %6300 = vmatprep.subr.bf16.mxu1 %v8167_v38 }
 0x265   :  { %2365 = vmatprep.mubr.bf16.mxu0 %v2330_v56  ;;  %2410 = vmatprep.mubr.bf16.mxu1 %v2375_v57 }
 0x267   :  { %6279 = vmatpush3.bf16.msra.mxu0 %v8174_v39  ;;  %6301 = vmatpush3.bf16.msra.mxu1 %v8174_v39 }
 0x268   :  { %6280 = vmatprep.subr.bf16.mxu0 %v8181_v40  ;;  %6302 = vmatprep.subr.bf16.mxu1 %v8181_v40 }
 0x26b   :  { %6281 = vmatpush3.bf16.msra.mxu0 %v8188_v41  ;;  %6303 = vmatpush3.bf16.msra.mxu1 %v8188_v41 }
 0x26c   :  { %6282 = vmatprep.subr.bf16.mxu0 %v8195_v43  ;;  %6304 = vmatprep.subr.bf16.mxu1 %v8195_v43 }
 0x26f   :  { %6283 = vmatpush3.bf16.msra.mxu0 %v8202_v45  ;;  %6305 = vmatpush3.bf16.msra.mxu1 %v8202_v45 }
 0x270   :  { %6284 = vmatprep.subr.bf16.mxu0 %v8209_v47  ;;  %6306 = vmatprep.subr.bf16.mxu1 %v8209_v47 }
 0x273   :  { %6285 = vmatpush3.bf16.msra.mxu0 %v8221_v50  ;;  %6307 = vmatpush3.bf16.msra.mxu1 %v8221_v50 }
 0x274   :  { %6286 = vmatprep.subr.bf16.mxu0 %v8277_v24  ;;  %6308 = vmatprep.subr.bf16.mxu1 %v8277_v24 }
 0x275   :  { %v5984_v62 = vpop.f32.mrb[48].mxu0  ;;  %v6006_v9 = vpop.f32.mrb[48].mxu1 }
 0x276   :  { %v5985_v16 = vpop.f32.mrb[49].mxu0  ;;  %v6007_v11 = vpop.f32.mrb[49].mxu1 }
 0x277   :  { %v8453_v12 = vadd.f32 %v5985_v16, %v5984_v62  ;;  %v8455_v13 = vadd.f32 %v6007_v11, %v6006_v9  ;;  %v5987_v18 = vpop.f32.mrb[50].mxu0  ;;  %v6009_v19 = vpop.f32.mrb[50].mxu1  ;;  %6287 = vmatpush3.bf16.msra.mxu0 %v8289_v2  ;;  %6309 = vmatpush3.bf16.msra.mxu1 %v8289_v2  ;;  %v2542_v9 = vcombine.high %v8497_v8, %v8497_v8 }
 0x278   :  { %v5988_v14 = vpop.f32.mrb[51].mxu0  ;;  %v6010_v23 = vpop.f32.mrb[51].mxu1  ;;  %6288 = vmatprep.subr.bf16.mxu0 %v8296_v6  ;;  %6310 = vmatprep.subr.bf16.mxu1 %v8296_v6  ;;  %v2439_v16 = vrot.slane %v8451_v10, %v7440_v21  ;;  %v5297_v18 = vld [vmem:[%s9633_s0 + $0x58] sm:$0xff] }
 0x279   :  { %v1629_v27 = vmax.f32 %v8453_v12, %v8455_v13  ;;  %v2556_v12 = vrot.slane %v2542_v9, %v7440_v21  ;;  %v8546_v23 = vrot.slane %v5297_v18, %v7440_v21 }
 0x27a   :  { %v2489_v13 = vcombine.high %v2439_v16, %v2439_v16 }
 0x27b   :  { %6289 = vmatpush3.bf16.msra.mxu0 %v8311_v30  ;;  %6311 = vmatpush3.bf16.msra.mxu1 %v8311_v30  ;;  %v2601_v10 = vcombine.high %v2556_v12, %v2556_v12 }
 0x27c   :  { %6290 = vmatprep.subr.bf16.mxu0 %v8318_v32  ;;  %6312 = vmatprep.subr.bf16.mxu1 %v8318_v32 }
 0x27f   :  { %6291 = vmatpush3.bf16.msra.mxu0 %v8326_v48  ;;  %6313 = vmatpush3.bf16.msra.mxu1 %v8326_v48 }
 0x280   :  { %6320 = vmatprep.subr.bf16.mxu0 %v8153_v34  ;;  %6342 = vmatprep.subr.bf16.mxu1 %v8153_v34 }
 0x282   :  { %2366 = vmatmul.mubr.bf16.vlgmr.msra.gmra.mrb[76].mxu0 %v2323_v17  ;;  %2411 = vmatmul.mubr.bf16.vlgmr.msra.gmra.mrb[76].mxu1 %v2374_v61 }
 0x283   :  { %6321 = vmatpush3.bf16.msra.mxu0 %v8160_v36  ;;  %6343 = vmatpush3.bf16.msra.mxu1 %v8160_v36 }
 0x284   :  { %6322 = vmatprep.subr.bf16.mxu0 %v8167_v38  ;;  %6344 = vmatprep.subr.bf16.mxu1 %v8167_v38 }
 0x285   :  { %2481 = vmatprep.mubr.bf16.mxu0 %v2446_v20  ;;  %2525 = vmatprep.mubr.bf16.mxu1 %v2490_v22 }
 0x287   :  { %6323 = vmatpush3.bf16.msra.mxu0 %v8174_v39  ;;  %6345 = vmatpush3.bf16.msra.mxu1 %v8174_v39 }
 0x288   :  { %6324 = vmatprep.subr.bf16.mxu0 %v8181_v40  ;;  %6346 = vmatprep.subr.bf16.mxu1 %v8181_v40 }
 0x28b   :  { %6325 = vmatpush3.bf16.msra.mxu0 %v8188_v41  ;;  %6347 = vmatpush3.bf16.msra.mxu1 %v8188_v41 }
 0x28c   :  { %6326 = vmatprep.subr.bf16.mxu0 %v8195_v43  ;;  %6348 = vmatprep.subr.bf16.mxu1 %v8195_v43 }
 0x28f   :  { %6327 = vmatpush3.bf16.msra.mxu0 %v8202_v45  ;;  %6349 = vmatpush3.bf16.msra.mxu1 %v8202_v45 }
 0x290   :  { %6328 = vmatprep.subr.bf16.mxu0 %v8209_v47  ;;  %6350 = vmatprep.subr.bf16.mxu1 %v8209_v47 }
 0x293   :  { %6329 = vmatpush3.bf16.msra.mxu0 %v8221_v50  ;;  %6351 = vmatpush3.bf16.msra.mxu1 %v8221_v50 }
 0x294   :  { %6330 = vmatprep.subr.bf16.mxu0 %v8277_v24  ;;  %6352 = vmatprep.subr.bf16.mxu1 %v8277_v24 }
 0x295   :  { %v6028_v1 = vpop.f32.mrb[52].mxu0  ;;  %v6050_v4 = vpop.f32.mrb[52].mxu1 }
 0x296   :  { %v6029_v26 = vpop.f32.mrb[53].mxu0  ;;  %v6051_v33 = vpop.f32.mrb[53].mxu1 }
 0x297   :  { %v6030_v51 = vadd.f32 %v6029_v26, %v6028_v1  ;;  %v8499_v53 = vadd.f32 %v6051_v33, %v6050_v4  ;;  %v6031_v56 = vpop.f32.mrb[54].mxu0  ;;  %v6053_v58 = vpop.f32.mrb[54].mxu1  ;;  %6331 = vmatpush3.bf16.msra.mxu0 %v8289_v2  ;;  %6353 = vmatpush3.bf16.msra.mxu1 %v8289_v2  ;;  %v2658_v26 = vcombine.high %v8546_v23, %v8546_v23 }
 0x298   :  { %v6032_v57 = vpop.f32.mrb[55].mxu0  ;;  %v6054_v60 = vpop.f32.mrb[55].mxu1  ;;  %6332 = vmatprep.subr.bf16.mxu0 %v8296_v6  ;;  %6354 = vmatprep.subr.bf16.mxu1 %v8296_v6  ;;  %v2549_v33 = vrot.slane %v8497_v8, %v7440_v21  ;;  %v2760_v58 = vcombine.high %v5297_v18, %v5297_v18 }
 0x299   :  { %v8505_v62 = vmax.f32 %v1629_v27, %v6030_v51  ;;  %v2672_v51 = vrot.slane %v2658_v26, %v7440_v21 }
 0x29a   :  { %v2600_v56 = vcombine.high %v2549_v33, %v2549_v33  ;;  %v8592_v9 = vrot.slane %v2760_v58, %v7440_v21 }
 0x29b   :  { %v1740_v11 = vmax.f32 %v8505_v62, %v8499_v53  ;;  %6333 = vmatpush3.bf16.msra.mxu0 %v8311_v30  ;;  %6355 = vmatpush3.bf16.msra.mxu1 %v8311_v30  ;;  %v2716_v8 = vcombine.high %v2672_v51, %v2672_v51  ;;  %v7151_v62 = vld [vmem:[%s9636_s3 + $0x138] sm:$0xff]  }
 0x29c   :  { %6334 = vmatprep.subr.bf16.mxu0 %v8318_v32  ;;  %6356 = vmatprep.subr.bf16.mxu1 %v8318_v32 }
 0x29f   :  { %6335 = vmatpush3.bf16.msra.mxu0 %v8326_v48  ;;  %6357 = vmatpush3.bf16.msra.mxu1 %v8326_v48 }
 0x2a0   :  { %6364 = vmatprep.subr.bf16.mxu0 %v8153_v34  ;;  %6386 = vmatprep.subr.bf16.mxu1 %v8153_v34 }
 0x2a2   :  { %2482 = vmatmul.mubr.bf16.vlgmr.msra.gmra.mrb[80].mxu0 %v2439_v16  ;;  %2526 = vmatmul.mubr.bf16.vlgmr.msra.gmra.mrb[80].mxu1 %v2489_v13 }
 0x2a3   :  { %6365 = vmatpush3.bf16.msra.mxu0 %v8160_v36  ;;  %6387 = vmatpush3.bf16.msra.mxu1 %v8160_v36 }
 0x2a4   :  { %6366 = vmatprep.subr.bf16.mxu0 %v8167_v38  ;;  %6388 = vmatprep.subr.bf16.mxu1 %v8167_v38 }
 0x2a5   :  { %2591 = vmatprep.mubr.bf16.mxu0 %v2556_v12  ;;  %2636 = vmatprep.mubr.bf16.mxu1 %v2601_v10 }
 0x2a7   :  { %6367 = vmatpush3.bf16.msra.mxu0 %v8174_v39  ;;  %6389 = vmatpush3.bf16.msra.mxu1 %v8174_v39 }
 0x2a8   :  { %6368 = vmatprep.subr.bf16.mxu0 %v8181_v40  ;;  %6390 = vmatprep.subr.bf16.mxu1 %v8181_v40 }
 0x2ab   :  { %6369 = vmatpush3.bf16.msra.mxu0 %v8188_v41  ;;  %6391 = vmatpush3.bf16.msra.mxu1 %v8188_v41 }
 0x2ac   :  { %6370 = vmatprep.subr.bf16.mxu0 %v8195_v43  ;;  %6392 = vmatprep.subr.bf16.mxu1 %v8195_v43 }
 0x2af   :  { %6371 = vmatpush3.bf16.msra.mxu0 %v8202_v45  ;;  %6393 = vmatpush3.bf16.msra.mxu1 %v8202_v45 }
 0x2b0   :  { %6372 = vmatprep.subr.bf16.mxu0 %v8209_v47  ;;  %6394 = vmatprep.subr.bf16.mxu1 %v8209_v47 }
 0x2b3   :  { %6373 = vmatpush3.bf16.msra.mxu0 %v8221_v50  ;;  %6395 = vmatpush3.bf16.msra.mxu1 %v8221_v50 }
 0x2b4   :  { %6374 = vmatprep.subr.bf16.mxu0 %v8277_v24  ;;  %6396 = vmatprep.subr.bf16.mxu1 %v8277_v24 }
 0x2b5   :  { %v6072_v19 = vpop.f32.mrb[56].mxu0  ;;  %v6094_v14 = vpop.f32.mrb[56].mxu1 }
 0x2b6   :  { %v6073_v27 = vpop.f32.mrb[57].mxu0  ;;  %v6095_v15 = vpop.f32.mrb[57].mxu1 }
 0x2b7   :  { %v8548_v17 = vadd.f32 %v6073_v27, %v6072_v19  ;;  %v8550_v20 = vadd.f32 %v6095_v15, %v6094_v14  ;;  %v6075_v61 = vpop.f32.mrb[58].mxu0  ;;  %v6097_v22 = vpop.f32.mrb[58].mxu1  ;;  %6375 = vmatpush3.bf16.msra.mxu0 %v8289_v2  ;;  %6397 = vmatpush3.bf16.msra.mxu1 %v8289_v2 }
 0x2b8   :  { %v6076_v0 = vpop.f32.mrb[59].mxu0  ;;  %v6098_v1 = vpop.f32.mrb[59].mxu1  ;;  %6376 = vmatprep.subr.bf16.mxu0 %v8296_v6  ;;  %6398 = vmatprep.subr.bf16.mxu1 %v8296_v6 }
 0x2b9   :  { %v1855_v4 = vmax.f32 %v8548_v17, %v8550_v20  ;;  %v2768_v17 = vcombine.high %v8592_v9, %v8592_v9  ;;  %v2665_v20 = vrot.slane %v8546_v23, %v7440_v21  ;;  %v5298_v1 = vld [vmem:[%s9633_s0 + $0x60] sm:$0xff] }
 0x2bb   :  { %6377 = vmatpush3.bf16.msra.mxu0 %v8311_v30  ;;  %6399 = vmatpush3.bf16.msra.mxu1 %v8311_v30  ;;  %v2782_v22 = vrot.slane %v2768_v17, %v7440_v21  ;;  %v2715_v0 = vcombine.high %v2665_v20, %v2665_v20 }
 0x2bc   :  { %6378 = vmatprep.subr.bf16.mxu0 %v8318_v32  ;;  %6400 = vmatprep.subr.bf16.mxu1 %v8318_v32 }
 0x2bd   :  { %v2827_v23 = vcombine.high %v2782_v22, %v2782_v22 }
 0x2bf   :  { %6379 = vmatpush3.bf16.msra.mxu0 %v8326_v48  ;;  %6401 = vmatpush3.bf16.msra.mxu1 %v8326_v48 }
 0x2c0   :  { %6408 = vmatprep.subr.bf16.mxu0 %v8153_v34  ;;  %6430 = vmatprep.subr.bf16.mxu1 %v8153_v34 }
 0x2c2   :  { %2592 = vmatmul.mubr.bf16.vlgmr.msra.gmra.mrb[84].mxu0 %v2549_v33  ;;  %2637 = vmatmul.mubr.bf16.vlgmr.msra.gmra.mrb[84].mxu1 %v2600_v56  ;;  %v8641_v33 = vrot.slane %v5298_v1, %v7440_v21 }
 0x2c3   :  { %6409 = vmatpush3.bf16.msra.mxu0 %v8160_v36  ;;  %6431 = vmatpush3.bf16.msra.mxu1 %v8160_v36 }
 0x2c4   :  { %6410 = vmatprep.subr.bf16.mxu0 %v8167_v38  ;;  %6432 = vmatprep.subr.bf16.mxu1 %v8167_v38 }
 0x2c5   :  { %2707 = vmatprep.mubr.bf16.mxu0 %v2672_v51  ;;  %2751 = vmatprep.mubr.bf16.mxu1 %v2716_v8 }
 0x2c7   :  { %6411 = vmatpush3.bf16.msra.mxu0 %v8174_v39  ;;  %6433 = vmatpush3.bf16.msra.mxu1 %v8174_v39 }
 0x2c8   :  { %6412 = vmatprep.subr.bf16.mxu0 %v8181_v40  ;;  %6434 = vmatprep.subr.bf16.mxu1 %v8181_v40 }
 0x2cb   :  { %6413 = vmatpush3.bf16.msra.mxu0 %v8188_v41  ;;  %6435 = vmatpush3.bf16.msra.mxu1 %v8188_v41 }
 0x2cc   :  { %6414 = vmatprep.subr.bf16.mxu0 %v8195_v43  ;;  %6436 = vmatprep.subr.bf16.mxu1 %v8195_v43 }
 0x2cf   :  { %6415 = vmatpush3.bf16.msra.mxu0 %v8202_v45  ;;  %6437 = vmatpush3.bf16.msra.mxu1 %v8202_v45 }
 0x2d0   :  { %6416 = vmatprep.subr.bf16.mxu0 %v8209_v47  ;;  %6438 = vmatprep.subr.bf16.mxu1 %v8209_v47 }
 0x2d3   :  { %6417 = vmatpush3.bf16.msra.mxu0 %v8221_v50  ;;  %6439 = vmatpush3.bf16.msra.mxu1 %v8221_v50 }
 0x2d4   :  { %6418 = vmatprep.subr.bf16.mxu0 %v8277_v24  ;;  %6440 = vmatprep.subr.bf16.mxu1 %v8277_v24 }
 0x2d5   :  { %v6116_v57 = vpop.f32.mrb[60].mxu0  ;;  %v6138_v60 = vpop.f32.mrb[60].mxu1 }
 0x2d6   :  { %v6117_v16 = vpop.f32.mrb[61].mxu0  ;;  %v6139_v12 = vpop.f32.mrb[61].mxu1 }
 0x2d7   :  { %v6118_v13 = vadd.f32 %v6117_v16, %v6116_v57  ;;  %v8594_v10 = vadd.f32 %v6139_v12, %v6138_v60  ;;  %v6119_v19 = vpop.f32.mrb[62].mxu0  ;;  %v6141_v18 = vpop.f32.mrb[62].mxu1  ;;  %6419 = vmatpush3.bf16.msra.mxu0 %v8289_v2  ;;  %6441 = vmatpush3.bf16.msra.mxu1 %v8289_v2 }
 0x2d8   :  { %v6120_v14 = vpop.f32.mrb[63].mxu0  ;;  %v6142_v27 = vpop.f32.mrb[63].mxu1  ;;  %6420 = vmatprep.subr.bf16.mxu0 %v8296_v6  ;;  %6442 = vmatprep.subr.bf16.mxu1 %v8296_v6  ;;  %v2884_v19 = vcombine.high %v8641_v33, %v8641_v33  ;;  %v2775_v18 = vrot.slane %v8592_v9, %v7440_v21 }
 0x2d9   :  { %v8600_v15 = vmax.f32 %v1855_v4, %v6118_v13 }
 0x2da   :  { %v2898_v14 = vrot.slane %v2884_v19, %v7440_v21  ;;  %v2826_v27 = vcombine.high %v2775_v18, %v2775_v18  ;;  %v8776_v19 = vld [vmem:[%s9633_s0 + $0x68] sm:$0xff] }
 0x2db   :  { %v1966_v61 = vmax.f32 %v8600_v15, %v8594_v10  ;;  %6421 = vmatpush3.bf16.msra.mxu0 %v8311_v30  ;;  %6443 = vmatpush3.bf16.msra.mxu1 %v8311_v30  ;;  %v7122_v10 = vld [vmem:[%s9636_s3 + $0x1c0] sm:$0xff]  }
 0x2dc   :  { %6422 = vmatprep.subr.bf16.mxu0 %v8318_v32  ;;  %6444 = vmatprep.subr.bf16.mxu1 %v8318_v32  ;;  %v2942_v9 = vcombine.high %v2898_v14, %v2898_v14 }
 0x2df   :  { %6423 = vmatpush3.bf16.msra.mxu0 %v8326_v48  ;;  %6445 = vmatpush3.bf16.msra.mxu1 %v8326_v48 }
 0x2e0   :  { %6452 = vmatprep.subr.bf16.mxu0 %v8153_v34  ;;  %6474 = vmatprep.subr.bf16.mxu1 %v8153_v34 }
 0x2e2   :  { %2708 = vmatmul.mubr.bf16.vlgmr.msra.gmra.mrb[88].mxu0 %v2665_v20  ;;  %2752 = vmatmul.mubr.bf16.vlgmr.msra.gmra.mrb[88].mxu1 %v2715_v0 }
 0x2e3   :  { %6453 = vmatpush3.bf16.msra.mxu0 %v8160_v36  ;;  %6475 = vmatpush3.bf16.msra.mxu1 %v8160_v36 }
 0x2e4   :  { %6454 = vmatprep.subr.bf16.mxu0 %v8167_v38  ;;  %6476 = vmatprep.subr.bf16.mxu1 %v8167_v38 }
 0x2e5   :  { %2817 = vmatprep.mubr.bf16.mxu0 %v2782_v22  ;;  %2862 = vmatprep.mubr.bf16.mxu1 %v2827_v23  ;;  %v2891_v23 = vrot.slane %v8641_v33, %v7440_v21  ;;  %v8713_v33 = vld [vmem:[%s9634_s1 + $0x40] sm:$0xff]  }
 0x2e7   :  { %6455 = vmatpush3.bf16.msra.mxu0 %v8174_v39  ;;  %6477 = vmatpush3.bf16.msra.mxu1 %v8174_v39 }
 0x2e8   :  { %6456 = vmatprep.subr.bf16.mxu0 %v8181_v40  ;;  %6478 = vmatprep.subr.bf16.mxu1 %v8181_v40 }
 0x2eb   :  { %6457 = vmatpush3.bf16.msra.mxu0 %v8188_v41  ;;  %6479 = vmatpush3.bf16.msra.mxu1 %v8188_v41 }
 0x2ec   :  { %6458 = vmatprep.subr.bf16.mxu0 %v8195_v43  ;;  %6480 = vmatprep.subr.bf16.mxu1 %v8195_v43 }
 0x2ef   :  { %6459 = vmatpush3.bf16.msra.mxu0 %v8202_v45  ;;  %6481 = vmatpush3.bf16.msra.mxu1 %v8202_v45 }
 0x2f0   :  { %6460 = vmatprep.subr.bf16.mxu0 %v8209_v47  ;;  %6482 = vmatprep.subr.bf16.mxu1 %v8209_v47 }
 0x2f3   :  { %6461 = vmatpush3.bf16.msra.mxu0 %v8221_v50  ;;  %6483 = vmatpush3.bf16.msra.mxu1 %v8221_v50 }
 0x2f4   :  { %6462 = vmatprep.subr.bf16.mxu0 %v8277_v24  ;;  %6484 = vmatprep.subr.bf16.mxu1 %v8277_v24 }
 0x2f5   :  { %v6160_v4 = vpop.f32.mrb[64].mxu0  ;;  %v6182_v26 = vpop.f32.mrb[64].mxu1 }
 0x2f6   :  { %v6161_v51 = vpop.f32.mrb[65].mxu0  ;;  %v6183_v56 = vpop.f32.mrb[65].mxu1 }
 0x2f7   :  { %v8643_v8 = vadd.f32 %v6161_v51, %v6160_v4  ;;  %v8645_v58 = vadd.f32 %v6183_v56, %v6182_v26  ;;  %v6163_v57 = vpop.f32.mrb[66].mxu0  ;;  %v6185_v60 = vpop.f32.mrb[66].mxu1  ;;  %6463 = vmatpush3.bf16.msra.mxu0 %v8289_v2  ;;  %6485 = vmatpush3.bf16.msra.mxu1 %v8289_v2  ;;  %v2941_v26 = vcombine.high %v2891_v23, %v2891_v23  ;;  %v8720_v56 = vld [vmem:[%s9634_s1] sm:$0xff]  }
 0x2f8   :  { %v6164_v16 = vpop.f32.mrb[67].mxu0  ;;  %v6186_v12 = vpop.f32.mrb[67].mxu1  ;;  %6464 = vmatprep.subr.bf16.mxu0 %v8296_v6  ;;  %6486 = vmatprep.subr.bf16.mxu1 %v8296_v6  ;;  %v8741_v57 = vld [vmem:[%s9634_s1 + $0x50] sm:$0xff]  }
 0x2f9   :  { %v2081_v13 = vmax.f32 %v8643_v8, %v8645_v58  ;;  %v8727_v8 = vld [vmem:[%s9634_s1 + $0x48] sm:$0xff]   ;;  %v8748_v60 = vld [vmem:[%s9634_s1 + $0x10] sm:$0xff]   ;;  %v8755_v16 = vld [vmem:[%s9634_s1 + $0x58] sm:$0xff]  }
 0x2fa   :  { %v8734_v58 = vld [vmem:[%s9634_s1 + $0x8] sm:$0xff]   ;;  %v8762_v12 = vld [vmem:[%s9634_s1 + $0x18] sm:$0xff]  }
 0x2fb   :  { %6465 = vmatpush3.bf16.msra.mxu0 %v8311_v30  ;;  %6487 = vmatpush3.bf16.msra.mxu1 %v8311_v30 }
 0x2fc   :  { %6466 = vmatprep.subr.bf16.mxu0 %v8318_v32  ;;  %6488 = vmatprep.subr.bf16.mxu1 %v8318_v32 }
 0x2ff   :  { %6467 = vmatpush3.bf16.msra.mxu0 %v8326_v48  ;;  %6489 = vmatpush3.bf16.msra.mxu1 %v8326_v48 }
 0x300   :  { %6496 = vmatprep.subr.bf16.mxu0 %v8153_v34  ;;  %6518 = vmatprep.subr.bf16.mxu1 %v8153_v34  ;;  %v2986_v34 = vcombine.high %v5298_v1, %v5298_v1 }
 0x302   :  { %2818 = vmatmul.mubr.bf16.vlgmr.msra.gmra.mrb[92].mxu0 %v2775_v18  ;;  %2863 = vmatmul.mubr.bf16.vlgmr.msra.gmra.mrb[92].mxu1 %v2826_v27  ;;  %v8781_v18 = vld [vmem:[%s9634_s1 + $0x20] sm:$0xff]  }
 0x303   :  { %6497 = vmatpush3.bf16.msra.mxu0 %v8160_v36  ;;  %6519 = vmatpush3.bf16.msra.mxu1 %v8160_v36 }
 0x304   :  { %6498 = vmatprep.subr.bf16.mxu0 %v8167_v38  ;;  %6520 = vmatprep.subr.bf16.mxu1 %v8167_v38 }
 0x305   :  { %2933 = vmatprep.mubr.bf16.mxu0 %v2898_v14  ;;  %2977 = vmatprep.mubr.bf16.mxu1 %v2942_v9  ;;  %v8789_v9 = vrot.slane %v8776_v19, %v7440_v21 }
 0x307   :  { %6499 = vmatpush3.bf16.msra.mxu0 %v8174_v39  ;;  %6521 = vmatpush3.bf16.msra.mxu1 %v8174_v39  ;;  %v8687_v39 = vrot.slane %v2986_v34, %v7440_v21 }
 0x308   :  { %6500 = vmatprep.subr.bf16.mxu0 %v8181_v40  ;;  %6522 = vmatprep.subr.bf16.mxu1 %v8181_v40 }
 0x309   :  { %v2994_v0 = vcombine.high %v8687_v39, %v8687_v39 }
 0x30b   :  { %6501 = vmatpush3.bf16.msra.mxu0 %v8188_v41  ;;  %6523 = vmatpush3.bf16.msra.mxu1 %v8188_v41  ;;  %v3008_v4 = vrot.slane %v2994_v0, %v7440_v21 }
 0x30c   :  { %6502 = vmatprep.subr.bf16.mxu0 %v8195_v43  ;;  %6524 = vmatprep.subr.bf16.mxu1 %v8195_v43 }
 0x30d   :  { %v3053_v51 = vcombine.high %v3008_v4, %v3008_v4 }
 0x30f   :  { %6503 = vmatpush3.bf16.msra.mxu0 %v8202_v45  ;;  %6525 = vmatpush3.bf16.msra.mxu1 %v8202_v45 }
 0x310   :  { %6504 = vmatprep.subr.bf16.mxu0 %v8209_v47  ;;  %6526 = vmatprep.subr.bf16.mxu1 %v8209_v47 }
 0x313   :  { %6505 = vmatpush3.bf16.msra.mxu0 %v8221_v50  ;;  %6527 = vmatpush3.bf16.msra.mxu1 %v8221_v50 }
 0x314   :  { %6506 = vmatprep.subr.bf16.mxu0 %v8277_v24  ;;  %6528 = vmatprep.subr.bf16.mxu1 %v8277_v24 }
 0x315   :  { %v6204_v36 = vpop.f32.mrb[68].mxu0  ;;  %v6226_v38 = vpop.f32.mrb[68].mxu1 }
 0x316   :  { %v6205_v40 = vpop.f32.mrb[69].mxu0  ;;  %v6227_v41 = vpop.f32.mrb[69].mxu1 }
 0x317   :  { %v6206_v43 = vadd.f32 %v6205_v40, %v6204_v36  ;;  %v8689_v45 = vadd.f32 %v6227_v41, %v6226_v38  ;;  %v6207_v47 = vpop.f32.mrb[70].mxu0  ;;  %v6229_v17 = vpop.f32.mrb[70].mxu1  ;;  %6507 = vmatpush3.bf16.msra.mxu0 %v8289_v2  ;;  %6529 = vmatpush3.bf16.msra.mxu1 %v8289_v2 }
 0x318   :  { %v6208_v50 = vpop.f32.mrb[71].mxu0  ;;  %v6230_v20 = vpop.f32.mrb[71].mxu1  ;;  %6508 = vmatprep.subr.bf16.mxu0 %v8296_v6  ;;  %6530 = vmatprep.subr.bf16.mxu1 %v8296_v6 }
 0x319   :  { %v8695_v22 = vmax.f32 %v2081_v13, %v6206_v43  ;;  %v8769_v13 = vld [vmem:[%s9634_s1 + $0x60] sm:$0xff]   ;;  %v3110_v50 = vcombine.high %v8789_v9, %v8789_v9  ;;  %v3001_v20 = vrot.slane %v8687_v39, %v7440_v21 }
 0x31b   :  { %v2192_v1 = vmax.f32 %v8695_v22, %v8689_v45  ;;  %6509 = vmatpush3.bf16.msra.mxu0 %v8311_v30  ;;  %6531 = vmatpush3.bf16.msra.mxu1 %v8311_v30  ;;  %v7182_v22 = vld [vmem:[%s9636_s3 + $0x2f8] sm:$0xff]  }
 0x31c   :  { %6510 = vmatprep.subr.bf16.mxu0 %v8318_v32  ;;  %6532 = vmatprep.subr.bf16.mxu1 %v8318_v32 }
 0x31f   :  { %6511 = vmatpush3.bf16.msra.mxu0 %v8326_v48  ;;  %6533 = vmatpush3.bf16.msra.mxu1 %v8326_v48 }
 0x320   :  { %6540 = vmatprep.subr.bf16.mxu0 %v8713_v33  ;;  %6562 = vmatprep.subr.bf16.mxu1 %v8713_v33 }
 0x322   :  { %2934 = vmatmul.mubr.bf16.vlgmr.msra.gmra.mrb[96].mxu0 %v2891_v23  ;;  %2978 = vmatmul.mubr.bf16.vlgmr.msra.gmra.mrb[96].mxu1 %v2941_v26 }
 0x323   :  { %6541 = vmatpush3.bf16.msra.mxu0 %v8720_v56  ;;  %6563 = vmatpush3.bf16.msra.mxu1 %v8720_v56 }
 0x324   :  { %6542 = vmatprep.subr.bf16.mxu0 %v8727_v8  ;;  %6564 = vmatprep.subr.bf16.mxu1 %v8727_v8 }
 0x325   :  { %3043 = vmatprep.mubr.bf16.mxu0 %v3008_v4  ;;  %3088 = vmatprep.mubr.bf16.mxu1 %v3053_v51 }
 0x327   :  { %6543 = vmatpush3.bf16.msra.mxu0 %v8734_v58  ;;  %6565 = vmatpush3.bf16.msra.mxu1 %v8734_v58 }
 0x328   :  { %6544 = vmatprep.subr.bf16.mxu0 %v8741_v57  ;;  %6566 = vmatprep.subr.bf16.mxu1 %v8741_v57 }
 0x32b   :  { %6545 = vmatpush3.bf16.msra.mxu0 %v8748_v60  ;;  %6567 = vmatpush3.bf16.msra.mxu1 %v8748_v60 }
 0x32c   :  { %6546 = vmatprep.subr.bf16.mxu0 %v8755_v16  ;;  %6568 = vmatprep.subr.bf16.mxu1 %v8755_v16 }
 0x32f   :  { %6547 = vmatpush3.bf16.msra.mxu0 %v8762_v12  ;;  %6569 = vmatpush3.bf16.msra.mxu1 %v8762_v12 }
 0x330   :  { %6548 = vmatprep.subr.bf16.mxu0 %v8769_v13  ;;  %6570 = vmatprep.subr.bf16.mxu1 %v8769_v13 }
 0x333   :  { %6549 = vmatpush3.bf16.msra.mxu0 %v8781_v18  ;;  %6571 = vmatpush3.bf16.msra.mxu1 %v8781_v18 }
 0x334   :  { %6550 = vmatprep.subr.bf16.mxu0 %v8277_v24  ;;  %6572 = vmatprep.subr.bf16.mxu1 %v8277_v24 }
 0x335   :  { %v6248_v14 = vpop.f32.mrb[72].mxu0  ;;  %v6270_v27 = vpop.f32.mrb[72].mxu1 }
 0x336   :  { %v6249_v34 = vpop.f32.mrb[73].mxu0  ;;  %v6271_v36 = vpop.f32.mrb[73].mxu1 }
 0x337   :  { %v8791_v38 = vadd.f32 %v6249_v34, %v6248_v14  ;;  %v8793_v40 = vadd.f32 %v6271_v36, %v6270_v27  ;;  %v6251_v41 = vpop.f32.mrb[74].mxu0  ;;  %v6273_v43 = vpop.f32.mrb[74].mxu1  ;;  %6551 = vmatpush3.bf16.msra.mxu0 %v8289_v2  ;;  %6573 = vmatpush3.bf16.msra.mxu1 %v8289_v2  ;;  %v3124_v2 = vrot.slane %v3110_v50, %v7440_v21  ;;  %v8849_v34 = vld [vmem:[%s9634_s1 + $0x28] sm:$0xff]   ;;  %v8871_v50 = vld [vmem:[%s9634_s1 + $0x30] sm:$0xff]  }
 0x338   :  { %v6252_v47 = vpop.f32.mrb[75].mxu0  ;;  %v6274_v24 = vpop.f32.mrb[75].mxu1  ;;  %6552 = vmatprep.subr.bf16.mxu0 %v8296_v6  ;;  %6574 = vmatprep.subr.bf16.mxu1 %v8296_v6  ;;  %v3052_v6 = vcombine.high %v3001_v20, %v3001_v20 }
 0x339   :  { %v2307_v17 = vmax.f32 %v8791_v38, %v8793_v40  ;;  %v3168_v39 = vcombine.high %v3124_v2, %v3124_v2  ;;  %v8856_v40 = vld [vmem:[%s9634_s1 + $0x70] sm:$0xff]   ;;  %v3117_v47 = vrot.slane %v8789_v9, %v7440_v21 }
 0x33b   :  { %6553 = vmatpush3.bf16.msra.mxu0 %v8311_v30  ;;  %6575 = vmatpush3.bf16.msra.mxu1 %v8311_v30  ;;  %v3212_v30 = vcombine.high %v8776_v19, %v8776_v19 }
 0x33c   :  { %6554 = vmatprep.subr.bf16.mxu0 %v8318_v32  ;;  %6576 = vmatprep.subr.bf16.mxu1 %v8318_v32  ;;  %v8837_v32 = vld [vmem:[%s9634_s1 + $0x68] sm:$0xff]  }
 0x33d   :  { %v8842_v23 = vrot.slane %v3212_v30, %v7440_v21 }
 0x33f   :  { %6555 = vmatpush3.bf16.msra.mxu0 %v8326_v48  ;;  %6577 = vmatpush3.bf16.msra.mxu1 %v8326_v48  ;;  %v3220_v43 = vcombine.high %v8842_v23, %v8842_v23 }
 0x340   :  { %6584 = vmatprep.subr.bf16.mxu0 %v8713_v33  ;;  %6606 = vmatprep.subr.bf16.mxu1 %v8713_v33 }
 0x341   :  { %v3234_v9 = vrot.slane %v3220_v43, %v7440_v21 }
 0x342   :  { %3044 = vmatmul.mubr.bf16.vlgmr.msra.gmra.mrb[100].mxu0 %v3001_v20  ;;  %3089 = vmatmul.mubr.bf16.vlgmr.msra.gmra.mrb[100].mxu1 %v3052_v6  ;;  %v3167_v20 = vcombine.high %v3117_v47, %v3117_v47 }
 0x343   :  { %6585 = vmatpush3.bf16.msra.mxu0 %v8720_v56  ;;  %6607 = vmatpush3.bf16.msra.mxu1 %v8720_v56  ;;  %v3279_v6 = vcombine.high %v3234_v9, %v3234_v9 }
 0x344   :  { %6586 = vmatprep.subr.bf16.mxu0 %v8727_v8  ;;  %6608 = vmatprep.subr.bf16.mxu1 %v8727_v8 }
 0x345   :  { %3159 = vmatprep.mubr.bf16.mxu0 %v3124_v2  ;;  %3203 = vmatprep.mubr.bf16.mxu1 %v3168_v39  ;;  %v8886_v2 = vld [vmem:[%s9634_s1 + $0x38] sm:$0xff]   ;;  %v5300_v39 = vld [vmem:[%s9633_s0 + $0x70] sm:$0xff] }
 0x347   :  { %6587 = vmatpush3.bf16.msra.mxu0 %v8734_v58  ;;  %6609 = vmatpush3.bf16.msra.mxu1 %v8734_v58 }
 0x348   :  { %6588 = vmatprep.subr.bf16.mxu0 %v8741_v57  ;;  %6610 = vmatprep.subr.bf16.mxu1 %v8741_v57 }
 0x34b   :  { %6589 = vmatpush3.bf16.msra.mxu0 %v8748_v60  ;;  %6611 = vmatpush3.bf16.msra.mxu1 %v8748_v60 }
 0x34c   :  { %6590 = vmatprep.subr.bf16.mxu0 %v8755_v16  ;;  %6612 = vmatprep.subr.bf16.mxu1 %v8755_v16 }
 0x34f   :  { %6591 = vmatpush3.bf16.msra.mxu0 %v8762_v12  ;;  %6613 = vmatpush3.bf16.msra.mxu1 %v8762_v12 }
 0x350   :  { %6592 = vmatprep.subr.bf16.mxu0 %v8769_v13  ;;  %6614 = vmatprep.subr.bf16.mxu1 %v8769_v13 }
 0x353   :  { %6593 = vmatpush3.bf16.msra.mxu0 %v8781_v18  ;;  %6615 = vmatpush3.bf16.msra.mxu1 %v8781_v18 }
 0x354   :  { %6594 = vmatprep.subr.bf16.mxu0 %v8837_v32  ;;  %6616 = vmatprep.subr.bf16.mxu1 %v8837_v32 }
 0x355   :  { %v6292_v48 = vpop.f32.mrb[76].mxu0  ;;  %v6314_v0 = vpop.f32.mrb[76].mxu1 }
 0x356   :  { %v6293_v4 = vpop.f32.mrb[77].mxu0  ;;  %v6315_v26 = vpop.f32.mrb[77].mxu1 }
 0x357   :  { %v6294_v51 = vadd.f32 %v6293_v4, %v6292_v48  ;;  %v8844_v19 = vadd.f32 %v6315_v26, %v6314_v0  ;;  %v6295_v14 = vpop.f32.mrb[78].mxu0  ;;  %v6317_v27 = vpop.f32.mrb[78].mxu1  ;;  %6595 = vmatpush3.bf16.msra.mxu0 %v8849_v34  ;;  %6617 = vmatpush3.bf16.msra.mxu1 %v8849_v34  ;;  %v8916_v0 = vrot.slane %v5300_v39, %v7440_v21 }
 0x358   :  { %v6296_v36 = vpop.f32.mrb[79].mxu0  ;;  %v6318_v38 = vpop.f32.mrb[79].mxu1  ;;  %6596 = vmatprep.subr.bf16.mxu0 %v8856_v40  ;;  %6618 = vmatprep.subr.bf16.mxu1 %v8856_v40 }
 0x359   :  { %v8860_v41 = vmax.f32 %v2307_v17, %v6294_v51  ;;  %v8878_v17 = vld [vmem:[%s9634_s1 + $0x78] sm:$0xff]  }
 0x35b   :  { %v2418_v24 = vmax.f32 %v8860_v41, %v8844_v19  ;;  %6597 = vmatpush3.bf16.msra.mxu0 %v8871_v50  ;;  %6619 = vmatpush3.bf16.msra.mxu1 %v8871_v50  ;;  %v7153_v19 = vld [vmem:[%s9636_s3 + $0x240] sm:$0xff]  }
 0x35c   :  { %6598 = vmatprep.subr.bf16.mxu0 %v8878_v17  ;;  %6620 = vmatprep.subr.bf16.mxu1 %v8878_v17 }
 0x35f   :  { %6599 = vmatpush3.bf16.msra.mxu0 %v8886_v2  ;;  %6621 = vmatpush3.bf16.msra.mxu1 %v8886_v2 }
 0x360   :  { %6628 = vmatprep.subr.bf16.mxu0 %v8713_v33  ;;  %6650 = vmatprep.subr.bf16.mxu1 %v8713_v33 }
 0x362   :  { %3160 = vmatmul.mubr.bf16.vlgmr.msra.gmra.mrb[104].mxu0 %v3117_v47  ;;  %3204 = vmatmul.mubr.bf16.vlgmr.msra.gmra.mrb[104].mxu1 %v3167_v20  ;;  %v3227_v20 = vrot.slane %v8842_v23, %v7440_v21 }
 0x363   :  { %6629 = vmatpush3.bf16.msra.mxu0 %v8720_v56  ;;  %6651 = vmatpush3.bf16.msra.mxu1 %v8720_v56 }
 0x364   :  { %6630 = vmatprep.subr.bf16.mxu0 %v8727_v8  ;;  %6652 = vmatprep.subr.bf16.mxu1 %v8727_v8 }
 0x365   :  { %3269 = vmatprep.mubr.bf16.mxu0 %v3234_v9  ;;  %3314 = vmatprep.mubr.bf16.mxu1 %v3279_v6  ;;  %v3336_v9 = vcombine.high %v8916_v0, %v8916_v0 }
 0x367   :  { %6631 = vmatpush3.bf16.msra.mxu0 %v8734_v58  ;;  %6653 = vmatpush3.bf16.msra.mxu1 %v8734_v58  ;;  %v3350_v6 = vrot.slane %v3336_v9, %v7440_v21 }
 0x368   :  { %6632 = vmatprep.subr.bf16.mxu0 %v8741_v57  ;;  %6654 = vmatprep.subr.bf16.mxu1 %v8741_v57 }
 0x369   :  { %v3394_v23 = vcombine.high %v3350_v6, %v3350_v6 }
 0x36b   :  { %6633 = vmatpush3.bf16.msra.mxu0 %v8748_v60  ;;  %6655 = vmatpush3.bf16.msra.mxu1 %v8748_v60 }
 0x36c   :  { %6634 = vmatprep.subr.bf16.mxu0 %v8755_v16  ;;  %6656 = vmatprep.subr.bf16.mxu1 %v8755_v16 }
 0x36f   :  { %6635 = vmatpush3.bf16.msra.mxu0 %v8762_v12  ;;  %6657 = vmatpush3.bf16.msra.mxu1 %v8762_v12 }
 0x370   :  { %6636 = vmatprep.subr.bf16.mxu0 %v8769_v13  ;;  %6658 = vmatprep.subr.bf16.mxu1 %v8769_v13 }
 0x373   :  { %6637 = vmatpush3.bf16.msra.mxu0 %v8781_v18  ;;  %6659 = vmatpush3.bf16.msra.mxu1 %v8781_v18 }
 0x374   :  { %6638 = vmatprep.subr.bf16.mxu0 %v8837_v32  ;;  %6660 = vmatprep.subr.bf16.mxu1 %v8837_v32 }
 0x375   :  { %v6336_v30 = vpop.f32.mrb[80].mxu0  ;;  %v6358_v48 = vpop.f32.mrb[80].mxu1 }
 0x376   :  { %v6337_v4 = vpop.f32.mrb[81].mxu0  ;;  %v6359_v26 = vpop.f32.mrb[81].mxu1 }
 0x377   :  { %v8918_v51 = vadd.f32 %v6337_v4, %v6336_v30  ;;  %v8920_v14 = vadd.f32 %v6359_v26, %v6358_v48  ;;  %v6339_v27 = vpop.f32.mrb[82].mxu0  ;;  %v6361_v36 = vpop.f32.mrb[82].mxu1  ;;  %6639 = vmatpush3.bf16.msra.mxu0 %v8849_v34  ;;  %6661 = vmatpush3.bf16.msra.mxu1 %v8849_v34  ;;  %v3278_v30 = vcombine.high %v3227_v20, %v3227_v20 }
 0x378   :  { %v6340_v38 = vpop.f32.mrb[83].mxu0  ;;  %v6362_v43 = vpop.f32.mrb[83].mxu1  ;;  %6640 = vmatprep.subr.bf16.mxu0 %v8856_v40  ;;  %6662 = vmatprep.subr.bf16.mxu1 %v8856_v40  ;;  %v3438_v48 = vcombine.high %v5300_v39, %v5300_v39 }
 0x379   :  { %v2533_v47 = vmax.f32 %v8918_v51, %v8920_v14 }
 0x37a   :  { %v8962_v51 = vrot.slane %v3438_v48, %v7440_v21 }
 0x37b   :  { %6641 = vmatpush3.bf16.msra.mxu0 %v8871_v50  ;;  %6663 = vmatpush3.bf16.msra.mxu1 %v8871_v50 }
 0x37c   :  { %6642 = vmatprep.subr.bf16.mxu0 %v8878_v17  ;;  %6664 = vmatprep.subr.bf16.mxu1 %v8878_v17 }
 0x37f   :  { %6643 = vmatpush3.bf16.msra.mxu0 %v8886_v2  ;;  %6665 = vmatpush3.bf16.msra.mxu1 %v8886_v2 }
 0x380   :  { %6672 = vmatprep.subr.bf16.mxu0 %v8713_v33  ;;  %6694 = vmatprep.subr.bf16.mxu1 %v8713_v33 }
 0x382   :  { %3270 = vmatmul.mubr.bf16.vlgmr.msra.gmra.mrb[108].mxu0 %v3227_v20  ;;  %3315 = vmatmul.mubr.bf16.vlgmr.msra.gmra.mrb[108].mxu1 %v3278_v30  ;;  %v3446_v30 = vcombine.high %v8962_v51, %v8962_v51 }
 0x383   :  { %6673 = vmatpush3.bf16.msra.mxu0 %v8720_v56  ;;  %6695 = vmatpush3.bf16.msra.mxu1 %v8720_v56 }
 0x384   :  { %6674 = vmatprep.subr.bf16.mxu0 %v8727_v8  ;;  %6696 = vmatprep.subr.bf16.mxu1 %v8727_v8 }
 0x385   :  { %3385 = vmatprep.mubr.bf16.mxu0 %v3350_v6  ;;  %3429 = vmatprep.mubr.bf16.mxu1 %v3394_v23  ;;  %v3343_v23 = vrot.slane %v8916_v0, %v7440_v21 }
 0x387   :  { %6675 = vmatpush3.bf16.msra.mxu0 %v8734_v58  ;;  %6697 = vmatpush3.bf16.msra.mxu1 %v8734_v58 }
 0x388   :  { %6676 = vmatprep.subr.bf16.mxu0 %v8741_v57  ;;  %6698 = vmatprep.subr.bf16.mxu1 %v8741_v57 }
 0x38b   :  { %6677 = vmatpush3.bf16.msra.mxu0 %v8748_v60  ;;  %6699 = vmatpush3.bf16.msra.mxu1 %v8748_v60 }
 0x38c   :  { %6678 = vmatprep.subr.bf16.mxu0 %v8755_v16  ;;  %6700 = vmatprep.subr.bf16.mxu1 %v8755_v16 }
 0x38f   :  { %6679 = vmatpush3.bf16.msra.mxu0 %v8762_v12  ;;  %6701 = vmatpush3.bf16.msra.mxu1 %v8762_v12 }
 0x390   :  { %6680 = vmatprep.subr.bf16.mxu0 %v8769_v13  ;;  %6702 = vmatprep.subr.bf16.mxu1 %v8769_v13 }
 0x393   :  { %6681 = vmatpush3.bf16.msra.mxu0 %v8781_v18  ;;  %6703 = vmatpush3.bf16.msra.mxu1 %v8781_v18 }
 0x394   :  { %6682 = vmatprep.subr.bf16.mxu0 %v8837_v32  ;;  %6704 = vmatprep.subr.bf16.mxu1 %v8837_v32 }
 0x395   :  { %v6380_v4 = vpop.f32.mrb[84].mxu0  ;;  %v6402_v26 = vpop.f32.mrb[84].mxu1 }
 0x396   :  { %v6381_v14 = vpop.f32.mrb[85].mxu0  ;;  %v6403_v27 = vpop.f32.mrb[85].mxu1 }
 0x397   :  { %v6382_v36 = vadd.f32 %v6381_v14, %v6380_v4  ;;  %v8964_v38 = vadd.f32 %v6403_v27, %v6402_v26  ;;  %v6383_v43 = vpop.f32.mrb[86].mxu0  ;;  %v6405_v39 = vpop.f32.mrb[86].mxu1  ;;  %6683 = vmatpush3.bf16.msra.mxu0 %v8849_v34  ;;  %6705 = vmatpush3.bf16.msra.mxu1 %v8849_v34  ;;  %v3393_v4 = vcombine.high %v3343_v23, %v3343_v23  ;;  %v5301_v26 = vld [vmem:[%s9633_s0 + $0x78] sm:$0xff] }
 0x398   :  { %v6384_v9 = vpop.f32.mrb[87].mxu0  ;;  %v6406_v20 = vpop.f32.mrb[87].mxu1  ;;  %6684 = vmatprep.subr.bf16.mxu0 %v8856_v40  ;;  %6706 = vmatprep.subr.bf16.mxu1 %v8856_v40 }
 0x399   :  { %v8970_v6 = vmax.f32 %v2533_v47, %v6382_v36  ;;  %v3460_v47 = vrot.slane %v3446_v30, %v7440_v21  ;;  %v9011_v36 = vrot.slane %v5301_v26, %v7440_v21 }
 0x39b   :  { %6685 = vmatpush3.bf16.msra.mxu0 %v8871_v50  ;;  %6707 = vmatpush3.bf16.msra.mxu1 %v8871_v50  ;;  %v3505_v0 = vcombine.high %v3460_v47, %v3460_v47 }
 0x39c   :  { %6686 = vmatprep.subr.bf16.mxu0 %v8878_v17  ;;  %6708 = vmatprep.subr.bf16.mxu1 %v8878_v17 }
 0x39f   :  { %6687 = vmatpush3.bf16.msra.mxu0 %v8886_v2  ;;  %6709 = vmatpush3.bf16.msra.mxu1 %v8886_v2 }
 0x3a0   :  { %6716 = vmatprep.subr.bf16.mxu0 %v8713_v33  ;;  %6738 = vmatprep.subr.bf16.mxu1 %v8713_v33 }
 0x3a2   :  { %3386 = vmatmul.mubr.bf16.vlgmr.msra.gmra.mrb[112].mxu0 %v3343_v23  ;;  %3430 = vmatmul.mubr.bf16.vlgmr.msra.gmra.mrb[112].mxu1 %v3393_v4 }
 0x3a3   :  { %6717 = vmatpush3.bf16.msra.mxu0 %v8720_v56  ;;  %6739 = vmatpush3.bf16.msra.mxu1 %v8720_v56 }
 0x3a4   :  { %6718 = vmatprep.subr.bf16.mxu0 %v8727_v8  ;;  %6740 = vmatprep.subr.bf16.mxu1 %v8727_v8 }
 0x3a5   :  { %3495 = vmatprep.mubr.bf16.mxu0 %v3460_v47  ;;  %3540 = vmatprep.mubr.bf16.mxu1 %v3505_v0 }
 0x3a7   :  { %6719 = vmatpush3.bf16.msra.mxu0 %v8734_v58  ;;  %6741 = vmatpush3.bf16.msra.mxu1 %v8734_v58 }
 0x3a8   :  { %6720 = vmatprep.subr.bf16.mxu0 %v8741_v57  ;;  %6742 = vmatprep.subr.bf16.mxu1 %v8741_v57 }
 0x3ab   :  { %6721 = vmatpush3.bf16.msra.mxu0 %v8748_v60  ;;  %6743 = vmatpush3.bf16.msra.mxu1 %v8748_v60 }
 0x3ac   :  { %6722 = vmatprep.subr.bf16.mxu0 %v8755_v16  ;;  %6744 = vmatprep.subr.bf16.mxu1 %v8755_v16 }
 0x3af   :  { %6723 = vmatpush3.bf16.msra.mxu0 %v8762_v12  ;;  %6745 = vmatpush3.bf16.msra.mxu1 %v8762_v12 }
 0x3b0   :  { %6724 = vmatprep.subr.bf16.mxu0 %v8769_v13  ;;  %6746 = vmatprep.subr.bf16.mxu1 %v8769_v13 }
 0x3b3   :  { %6725 = vmatpush3.bf16.msra.mxu0 %v8781_v18  ;;  %6747 = vmatpush3.bf16.msra.mxu1 %v8781_v18 }
 0x3b4   :  { %6726 = vmatprep.subr.bf16.mxu0 %v8837_v32  ;;  %6748 = vmatprep.subr.bf16.mxu1 %v8837_v32 }
 0x3b5   :  { %v6424_v14 = vpop.f32.mrb[88].mxu0  ;;  %v6446_v27 = vpop.f32.mrb[88].mxu1 }
 0x3b6   :  { %v6425_v43 = vpop.f32.mrb[89].mxu0  ;;  %v6447_v39 = vpop.f32.mrb[89].mxu1 }
 0x3b7   :  { %v9013_v9 = vadd.f32 %v6425_v43, %v6424_v14  ;;  %v9015_v20 = vadd.f32 %v6447_v39, %v6446_v27  ;;  %v6427_v30 = vpop.f32.mrb[90].mxu0  ;;  %v6449_v23 = vpop.f32.mrb[90].mxu1  ;;  %6727 = vmatpush3.bf16.msra.mxu0 %v8849_v34  ;;  %6749 = vmatpush3.bf16.msra.mxu1 %v8849_v34  ;;  %v3562_v14 = vcombine.high %v9011_v36, %v9011_v36 }
 0x3b8   :  { %v6428_v47 = vpop.f32.mrb[91].mxu0  ;;  %v6450_v4 = vpop.f32.mrb[91].mxu1  ;;  %6728 = vmatprep.subr.bf16.mxu0 %v8856_v40  ;;  %6750 = vmatprep.subr.bf16.mxu1 %v8856_v40  ;;  %v3453_v27 = vrot.slane %v8962_v51, %v7440_v21 }
 0x3b9   :  { %v2759_v0 = vmax.f32 %v9013_v9, %v9015_v20  ;;  %v3576_v43 = vrot.slane %v3562_v14, %v7440_v21  ;;  %v3664_v9 = vcombine.high %v5301_v26, %v5301_v26 }
 0x3ba   :  { %v3504_v39 = vcombine.high %v3453_v27, %v3453_v27 }
 0x3bb   :  { %6729 = vmatpush3.bf16.msra.mxu0 %v8871_v50  ;;  %6751 = vmatpush3.bf16.msra.mxu1 %v8871_v50  ;;  %v3620_v51 = vcombine.high %v3576_v43, %v3576_v43  ;;  %v9057_v23 = vrot.slane %v3664_v9, %v7440_v21 }
 0x3bc   :  { %6730 = vmatprep.subr.bf16.mxu0 %v8878_v17  ;;  %6752 = vmatprep.subr.bf16.mxu1 %v8878_v17 }
 0x3bd   :  { %v3672_v9 = vcombine.high %v9057_v23, %v9057_v23 }
 0x3bf   :  { %6731 = vmatpush3.bf16.msra.mxu0 %v8886_v2  ;;  %6753 = vmatpush3.bf16.msra.mxu1 %v8886_v2 }
 0x3c0   :  { %6760 = vmatprep.subr.bf16.mxu0 %v8713_v33  ;;  %6782 = vmatprep.subr.bf16.mxu1 %v8713_v33 }
 0x3c2   :  { %3496 = vmatmul.mubr.bf16.vlgmr.msra.gmra.mrb[116].mxu0 %v3453_v27  ;;  %3541 = vmatmul.mubr.bf16.vlgmr.msra.gmra.mrb[116].mxu1 %v3504_v39 }
 0x3c3   :  { %6761 = vmatpush3.bf16.msra.mxu0 %v8720_v56  ;;  %6783 = vmatpush3.bf16.msra.mxu1 %v8720_v56 }
 0x3c4   :  { %6762 = vmatprep.subr.bf16.mxu0 %v8727_v8  ;;  %6784 = vmatprep.subr.bf16.mxu1 %v8727_v8 }
 0x3c5   :  { %3611 = vmatprep.mubr.bf16.mxu0 %v3576_v43  ;;  %3655 = vmatprep.mubr.bf16.mxu1 %v3620_v51 }
 0x3c7   :  { %6763 = vmatpush3.bf16.msra.mxu0 %v8734_v58  ;;  %6785 = vmatpush3.bf16.msra.mxu1 %v8734_v58 }
 0x3c8   :  { %6764 = vmatprep.subr.bf16.mxu0 %v8741_v57  ;;  %6786 = vmatprep.subr.bf16.mxu1 %v8741_v57 }
 0x3cb   :  { %6765 = vmatpush3.bf16.msra.mxu0 %v8748_v60  ;;  %6787 = vmatpush3.bf16.msra.mxu1 %v8748_v60 }
 0x3cc   :  { %6766 = vmatprep.subr.bf16.mxu0 %v8755_v16  ;;  %6788 = vmatprep.subr.bf16.mxu1 %v8755_v16 }
 0x3cf   :  { %6767 = vmatpush3.bf16.msra.mxu0 %v8762_v12  ;;  %6789 = vmatpush3.bf16.msra.mxu1 %v8762_v12 }
 0x3d0   :  { %6768 = vmatprep.subr.bf16.mxu0 %v8769_v13  ;;  %6790 = vmatprep.subr.bf16.mxu1 %v8769_v13 }
 0x3d3   :  { %6769 = vmatpush3.bf16.msra.mxu0 %v8781_v18  ;;  %6791 = vmatpush3.bf16.msra.mxu1 %v8781_v18 }
 0x3d4   :  { %6770 = vmatprep.subr.bf16.mxu0 %v8837_v32  ;;  %6792 = vmatprep.subr.bf16.mxu1 %v8837_v32 }
 0x3d5   :  { %v6468_v20 = vpop.f32.mrb[92].mxu0  ;;  %v6490_v30 = vpop.f32.mrb[92].mxu1 }
 0x3d6   :  { %v6469_v47 = vpop.f32.mrb[93].mxu0  ;;  %v6491_v4 = vpop.f32.mrb[93].mxu1 }
 0x3d7   :  { %v6470_v14 = vadd.f32 %v6469_v47, %v6468_v20  ;;  %v9059_v27 = vadd.f32 %v6491_v4, %v6490_v30  ;;  %v6471_v43 = vpop.f32.mrb[94].mxu0  ;;  %v6493_v26 = vpop.f32.mrb[94].mxu1  ;;  %6771 = vmatpush3.bf16.msra.mxu0 %v8849_v34  ;;  %6793 = vmatpush3.bf16.msra.mxu1 %v8849_v34  ;;  %v3569_v20 = vrot.slane %v9011_v36, %v7440_v21 }
 0x3d8   :  { %v6472_v39 = vpop.f32.mrb[95].mxu0  ;;  %v6494_v51 = vpop.f32.mrb[95].mxu1  ;;  %6772 = vmatprep.subr.bf16.mxu0 %v8856_v40  ;;  %6794 = vmatprep.subr.bf16.mxu1 %v8856_v40  ;;  %v3679_v43 = vrot.slane %v9057_v23, %v7440_v21  ;;  %v7095_v23 = vld [vmem:[%s9636_s3 + $0x8] sm:$0xff]  }
 0x3d9   :  { %v9065_v48 = vmax.f32 %v2759_v0, %v6470_v14  ;;  %v3686_v0 = vrot.slane %v3672_v9, %v7440_v21  ;;  %v3619_v47 = vcombine.high %v3569_v20, %v3569_v20  ;;  %v7091_v21 = vld [vmem:[%s9636_s3] sm:$0xff]   ;;  %v7096_v26 = vld [vmem:[%s9636_s3 + $0x88] sm:$0xff]   ;;  %v7097_v39 = vld [vmem:[%s9636_s3 + $0x50] sm:$0xff]  }
 0x3da   :  { %v3730_v5 = vcombine.high %v3679_v43, %v3679_v43  ;;  %v7098_v51 = vld [vmem:[%s9636_s3 + $0xd0] sm:$0xff]  }
 0x3db   :  { %v2870_v30 = vmax.f32 %v9065_v48, %v9059_v27  ;;  %6773 = vmatpush3.bf16.msra.mxu0 %v8871_v50  ;;  %6795 = vmatpush3.bf16.msra.mxu1 %v8871_v50  ;;  %v3731_v36 = vcombine.high %v3686_v0, %v3686_v0  ;;  %v7099_v9 = vld [vmem:[%s9636_s3 + $0x10] sm:$0xff]   ;;  %v7155_v27 = vld [vmem:[%s9636_s3 + $0x200] sm:$0xff]  }
 0x3dc   :  { %6774 = vmatprep.subr.bf16.mxu0 %v8878_v17  ;;  %6796 = vmatprep.subr.bf16.mxu1 %v8878_v17 }
 0x3df   :  { %6775 = vmatpush3.bf16.msra.mxu0 %v8886_v2  ;;  %6797 = vmatpush3.bf16.msra.mxu1 %v8886_v2 }
 0x3e0   :  { %6804 = vmatprep.subr.bf16.mxu0 %v8713_v33  ;;  %6826 = vmatprep.subr.bf16.mxu1 %v8713_v33 }
 0x3e2   :  { %3612 = vmatmul.mubr.bf16.vlgmr.msra.gmra.mrb[120].mxu0 %v3569_v20  ;;  %3656 = vmatmul.mubr.bf16.vlgmr.msra.gmra.mrb[120].mxu1 %v3619_v47  ;;  %v7100_v20 = vld [vmem:[%s9636_s3 + $0x90] sm:$0xff]   ;;  %v7102_v47 = vld [vmem:[%s9636_s3 + $0xd8] sm:$0xff]  }
 0x3e3   :  { %6805 = vmatpush3.bf16.msra.mxu0 %v8720_v56  ;;  %6827 = vmatpush3.bf16.msra.mxu1 %v8720_v56 }
 0x3e4   :  { %6806 = vmatprep.subr.bf16.mxu0 %v8727_v8  ;;  %6828 = vmatprep.subr.bf16.mxu1 %v8727_v8 }
 0x3e5   :  { %3721 = vmatprep.mubr.bf16.mxu0 %v3686_v0  ;;  %3766 = vmatprep.mubr.bf16.mxu1 %v3731_v36  ;;  %v7101_v0 = vld [vmem:[%s9636_s3 + $0x58] sm:$0xff]  }
 0x3e6   :  { %v7103_v36 = vld [vmem:[%s9636_s3 + $0x18] sm:$0xff]  }
 0x3e7   :  { %6807 = vmatpush3.bf16.msra.mxu0 %v8734_v58  ;;  %6829 = vmatpush3.bf16.msra.mxu1 %v8734_v58 }
 0x3e8   :  { %6808 = vmatprep.subr.bf16.mxu0 %v8741_v57  ;;  %6830 = vmatprep.subr.bf16.mxu1 %v8741_v57 }
 0x3eb   :  { %6809 = vmatpush3.bf16.msra.mxu0 %v8748_v60  ;;  %6831 = vmatpush3.bf16.msra.mxu1 %v8748_v60 }
 0x3ec   :  { %6810 = vmatprep.subr.bf16.mxu0 %v8755_v16  ;;  %6832 = vmatprep.subr.bf16.mxu1 %v8755_v16 }
 0x3ef   :  { %6811 = vmatpush3.bf16.msra.mxu0 %v8762_v12  ;;  %6833 = vmatpush3.bf16.msra.mxu1 %v8762_v12 }
 0x3f0   :  { %6812 = vmatprep.subr.bf16.mxu0 %v8769_v13  ;;  %6834 = vmatprep.subr.bf16.mxu1 %v8769_v13  ;;  %v9111_v13 = vld [vmem:[%s9635_s2] ss:$0 sm:$0xff] }
 0x3f1   :  { %v611_v4 = vadd.f32 %v9111_v13, %v610_v52  ;;  %v1967_v37 = vadd.f32 %v9111_v13, %v1966_v61  ;;  %v7123_v61 = vld [vmem:[%s9636_s3 + $0x100] sm:$0xff]   ;;  %v2871_v53 = vadd.f32 %v9111_v13, %v2870_v30 }
 0x3f3   :  { %6813 = vmatpush3.bf16.msra.mxu0 %v8781_v18  ;;  %6835 = vmatpush3.bf16.msra.mxu1 %v8781_v18  ;;  %v612_v52 = vmax.f32 %v611_v4, 0.0  ;;  %v7112_v4 = vld [vmem:[%s9636_s3 + $0xa8] sm:$0xff]   ;;  %v2872_v30 = vmax.f32 %v2871_v53, 0.0 }
 0x3f4   :  { %6814 = vmatprep.subr.bf16.mxu0 %v8837_v32  ;;  %6836 = vmatprep.subr.bf16.mxu1 %v8837_v32 }
 0x3f5   :  { %v6512_v33 = vpop.f32.mrb[96].mxu0  ;;  %v6534_v56 = vpop.f32.mrb[96].mxu1 }
 0x3f6   :  { %v6513_v8 = vpop.f32.mrb[97].mxu0  ;;  %v6535_v58 = vpop.f32.mrb[97].mxu1 }
 0x3f7   :  { %v9102_v57 = vadd.f32 %v6513_v8, %v6512_v33  ;;  %v9104_v60 = vadd.f32 %v6535_v58, %v6534_v56  ;;  %v6515_v16 = vpop.f32.mrb[98].mxu0  ;;  %v6537_v12 = vpop.f32.mrb[98].mxu1  ;;  %6815 = vmatpush3.bf16.msra.mxu0 %v8849_v34  ;;  %6837 = vmatpush3.bf16.msra.mxu1 %v8849_v34  ;;  %v1063_v34 = vadd.f32 %v9111_v13, %v1062_v31  ;;  %v7092_v31 = vld [vmem:[%s9636_s3 + $0x80] sm:$0xff]   ;;  %v7104_v33 = vld [vmem:[%s9636_s3 + $0x98] sm:$0xff]  }
 0x3f8   :  { %v6516_v18 = vpop.f32.mrb[99].mxu0  ;;  %v6538_v32 = vpop.f32.mrb[99].mxu1  ;;  %6816 = vmatprep.subr.bf16.mxu0 %v8856_v40  ;;  %6838 = vmatprep.subr.bf16.mxu1 %v8856_v40  ;;  %v613_v40 = vpack.c.bf16 %v612_v52, %v612_v52  ;;  %v7105_v56 = vld [vmem:[%s9636_s3 + $0x60] sm:$0xff]   ;;  %v7109_v12 = vld [vmem:[%s9636_s3 + $0x68] sm:$0xff]  }
 0x3f9   :  { %v2985_v14 = vmax.f32 %v9102_v57, %v9104_v60  ;;  %v1064_v28 = vmax.f32 %v1063_v34, 0.0  ;;  %v7106_v8 = vld [vmem:[%s9636_s3 + $0xe0] sm:$0xff]   ;;  %v7110_v18 = vld [vmem:[%s9636_s3 + $0xe8] sm:$0xff]   ;;  %v7113_v34 = vld [vmem:[%s9636_s3 + $0x70] sm:$0xff]   ;;  %v1968_v60 = vmax.f32 %v1967_v37, 0.0 }
 0x3fa   :  { %v7107_v58 = vld [vmem:[%s9636_s3 + $0x20] sm:$0xff]   ;;  %v7111_v32 = vld [vmem:[%s9636_s3 + $0x28] sm:$0xff]  }
 0x3fb   :  { %6817 = vmatpush3.bf16.msra.mxu0 %v8871_v50  ;;  %6839 = vmatpush3.bf16.msra.mxu1 %v8871_v50  ;;  %v7093_v50 = vld [vmem:[%s9636_s3 + $0x48] sm:$0xff]   ;;  %v7108_v16 = vld [vmem:[%s9636_s3 + $0xa0] sm:$0xff]  }
 0x3fc   :  { %6818 = vmatprep.subr.bf16.mxu0 %v8878_v17  ;;  %6840 = vmatprep.subr.bf16.mxu1 %v8878_v17  ;;  %v7094_v17 = vld [vmem:[%s9636_s3 + $0xc8] sm:$0xff]  }
 0x3ff   :  { %6819 = vmatpush3.bf16.msra.mxu0 %v8886_v2  ;;  %6841 = vmatpush3.bf16.msra.mxu1 %v8886_v2  ;;  %v1065_v2 = vpack.c.bf16 %v1064_v28, %v1064_v28 }
 0x400   :  { %6848 = vmatprep.subr.bf16.mxu0 %v7089_v44  ;;  %6870 = vmatprep.subr.bf16.mxu1 %v7090_v49  ;;  %v7114_v49 = vld [vmem:[%s9636_s3 + $0xf0] sm:$0xff]  }
 0x402   :  { %3722 = vmatmul.mubr.bf16.vlgmr.msra.gmra.mrb[124].mxu0 %v3679_v43  ;;  %3767 = vmatmul.mubr.bf16.vlgmr.msra.gmra.mrb[124].mxu1 %v3730_v5 }
 0x403   :  { %6849 = vmatpush3.bf16.msra.mxu0 %v7091_v21  ;;  %4841 = vmatprep.mubr.bf16.mxu0 %v613_v40 }
 0x404   :  { %6871 = vmatpush3.bf16.msra.mxu1 %v7092_v31  ;;  %4881 = vmatprep.mubr.bf16.mxu1 %v1065_v2 }
 0x405   :  { %6850 = vmatprep.subr.bf16.mxu0 %v7093_v50  ;;  %6872 = vmatprep.subr.bf16.mxu1 %v7094_v17  ;;  %v7115_v50 = vld [vmem:[%s9636_s3 + $0x30] sm:$0xff]   ;;  %v385_v17 = vadd.f32 %v9111_v13, %v378_v7  ;;  %v1515_v7 = vadd.f32 %v9111_v13, %v1514_v55 }
 0x407   :  { %6851 = vmatpush3.bf16.msra.mxu0 %v7095_v23  ;;  %v386_v57 = vmax.f32 %v385_v17, 0.0  ;;  %v1516_v15 = vmax.f32 %v1515_v7, 0.0  ;;  %v7145_v17 = vld [vmem:[%s9636_s3 + $0x170] sm:$0xff]  }
 0x408   :  { %6873 = vmatpush3.bf16.msra.mxu1 %v7096_v26  ;;  %6852 = vmatprep.subr.bf16.mxu0 %v7097_v39  ;;  %v7116_v26 = vld [vmem:[%s9636_s3 + $0xb0] sm:$0xff]   ;;  %v7117_v39 = vld [vmem:[%s9636_s3 + $0x78] sm:$0xff]  }
 0x409   :  { %6874 = vmatprep.subr.bf16.mxu1 %v7098_v51  ;;  %v837_v51 = vadd.f32 %v9111_v13, %v836_v46  ;;  %v7119_v46 = vld [vmem:[%s9636_s3 + $0x38] sm:$0xff]  }
 0x40b   :  { %6853 = vmatpush3.bf16.msra.mxu0 %v7099_v9  ;;  %v838_v55 = vmax.f32 %v837_v51, 0.0  ;;  %v7124_v9 = vld [vmem:[%s9636_s3 + $0x180] sm:$0xff]  }
 0x40c   :  { %6875 = vmatpush3.bf16.msra.mxu1 %v7100_v20  ;;  %6854 = vmatprep.subr.bf16.mxu0 %v7101_v0  ;;  %v7125_v0 = vld [vmem:[%s9636_s3 + $0x148] sm:$0xff]  }
 0x40d   :  { %6876 = vmatprep.subr.bf16.mxu1 %v7102_v47  ;;  %v839_v20 = vpack.c.bf16 %v838_v55, %v838_v55  ;;  %v1517_v47 = vpack.c.bf16 %v1516_v15, %v1516_v15  ;;  %v7149_v15 = vld [vmem:[%s9636_s3 + $0x178] sm:$0xff]  }
 0x40f   :  { %6855 = vmatpush3.bf16.msra.mxu0 %v7103_v36  ;;  %v7126_v36 = vld [vmem:[%s9636_s3 + $0x1c8] sm:$0xff]  }
 0x410   :  { %6877 = vmatpush3.bf16.msra.mxu1 %v7104_v33  ;;  %6856 = vmatprep.subr.bf16.mxu0 %v7105_v56  ;;  %v1969_v33 = vpack.c.bf16 %v1968_v60, %v1968_v60  ;;  %v7127_v56 = vld [vmem:[%s9636_s3 + $0x108] sm:$0xff]   ;;  %v7152_v60 = vld [vmem:[%s9636_s3 + $0x1b8] sm:$0xff]  }
 0x411   :  { %6878 = vmatprep.subr.bf16.mxu1 %v7106_v8  ;;  %v7128_v8 = vld [vmem:[%s9636_s3 + $0x188] sm:$0xff]  }
 0x413   :  { %6857 = vmatpush3.bf16.msra.mxu0 %v7107_v58  ;;  %v7129_v58 = vld [vmem:[%s9636_s3 + $0x150] sm:$0xff]  }
 0x414   :  { %6879 = vmatpush3.bf16.msra.mxu1 %v7108_v16  ;;  %6858 = vmatprep.subr.bf16.mxu0 %v7109_v12  ;;  %v7130_v16 = vld [vmem:[%s9636_s3 + $0x1d0] sm:$0xff]  }
 0x415   :  { %v6556_v43 = vpop.f32.mrb[100].mxu0  ;;  %v6578_v44 = vpop.f32.mrb[100].mxu1  ;;  %6880 = vmatprep.subr.bf16.mxu1 %v7110_v18  ;;  %v7131_v12 = vld [vmem:[%s9636_s3 + $0x110] sm:$0xff]  }
 0x416   :  { %v6557_v52 = vpop.f32.mrb[101].mxu0  ;;  %v6579_v5 = vpop.f32.mrb[101].mxu1  ;;  %v7132_v18 = vld [vmem:[%s9636_s3 + $0x190] sm:$0xff]  }
 0x417   :  { %v6558_v28 = vadd.f32 %v6557_v52, %v6556_v43  ;;  %v9211_v21 = vadd.f32 %v6579_v5, %v6578_v44  ;;  %v6559_v31 = vpop.f32.mrb[102].mxu0  ;;  %v6581_v40 = vpop.f32.mrb[102].mxu1  ;;  %6859 = vmatpush3.bf16.msra.mxu0 %v7111_v32  ;;  %v7133_v32 = vld [vmem:[%s9636_s3 + $0x158] sm:$0xff]   ;;  %v7137_v44 = vld [vmem:[%s9636_s3 + $0x160] sm:$0xff]  }
 0x418   :  { %6881 = vmatpush3.bf16.msra.mxu1 %v7112_v4  ;;  %v6560_v2 = vpop.f32.mrb[103].mxu0  ;;  %v6582_v23 = vpop.f32.mrb[103].mxu1  ;;  %6860 = vmatprep.subr.bf16.mxu0 %v7113_v34  ;;  %v7134_v4 = vld [vmem:[%s9636_s3 + $0x1d8] sm:$0xff]   ;;  %v7139_v52 = vld [vmem:[%s9636_s3 + $0x120] sm:$0xff]   ;;  %v7142_v31 = vld [vmem:[%s9636_s3 + $0x1e8] sm:$0xff]  }
 0x419   :  { %v9233_v54 = vmax.f32 %v2985_v14, %v6558_v28  ;;  %6882 = vmatprep.subr.bf16.mxu1 %v7114_v49  ;;  %v387_v14 = vpack.c.bf16 %v386_v57, %v386_v57  ;;  %v7135_v34 = vld [vmem:[%s9636_s3 + $0x118] sm:$0xff]   ;;  %v7138_v49 = vld [vmem:[%s9636_s3 + $0x1e0] sm:$0xff]   ;;  %v7141_v28 = vld [vmem:[%s9636_s3 + $0x168] sm:$0xff]  }
 0x41a   :  { %v7136_v43 = vld [vmem:[%s9636_s3 + $0x198] sm:$0xff]   ;;  %v7140_v5 = vld [vmem:[%s9636_s3 + $0x1a0] sm:$0xff]   ;;  %v7143_v40 = vld [vmem:[%s9636_s3 + $0x128] sm:$0xff]  }
 0x41b   :  { %v3096_v42 = vmax.f32 %v9233_v54, %v9211_v21  ;;  %6861 = vmatpush3.bf16.msra.mxu0 %v7115_v50  ;;  %v7144_v50 = vld [vmem:[%s9636_s3 + $0x1a8] sm:$0xff]   ;;  %v7147_v57 = vld [vmem:[%s9636_s3 + $0x130] sm:$0xff]   ;;  %v7215_v21 = vld [vmem:[%s9636_s3 + $0x3f8] sm:$0xff]  }
 0x41c   :  { %6883 = vmatpush3.bf16.msra.mxu1 %v7116_v26  ;;  %6862 = vmatprep.subr.bf16.mxu0 %v7117_v39  ;;  %v7146_v26 = vld [vmem:[%s9636_s3 + $0x1f0] sm:$0xff]   ;;  %v7200_v54 = vld [vmem:[%s9636_s3 + $0x338] sm:$0xff]  }
 0x41d   :  { %6884 = vmatprep.subr.bf16.mxu1 %v7118_v59 }
 0x41f   :  { %6863 = vmatpush3.bf16.msra.mxu0 %v7119_v46 }
 0x420   :  { %6885 = vmatpush3.bf16.msra.mxu1 %v7120_v3  ;;  %6892 = vmatprep.subr.bf16.mxu0 %v7121_v35  ;;  %v1289_v3 = vadd.f32 %v9111_v13, %v1288_v29  ;;  %v2419_v29 = vadd.f32 %v9111_v13, %v2418_v24  ;;  %v7154_v24 = vld [vmem:[%s9636_s3 + $0x2c0] sm:$0xff]  }
 0x421   :  { %6914 = vmatprep.subr.bf16.mxu1 %v7122_v10  ;;  %v7148_v10 = vld [vmem:[%s9636_s3 + $0x1b0] sm:$0xff]  }
 0x422   :  { %4842 = vmatmul.mubr.bf16.vlgmr.msra.gmra.mrb[128].mxu0 %v387_v14  ;;  %v2420_v48 = vmax.f32 %v2419_v29, 0.0  ;;  %v9641_v29 = vmax.f32 %v8970_v6, %v8964_v38  ;;  %v7184_v38 = vld [vmem:[%s9636_s3 + $0x2b8] sm:$0xff]   ;;  %v7185_v6 = vld [vmem:[%s9636_s3 + $0x340] sm:$0xff]  }
 0x423   :  { %4882 = vmatmul.mubr.bf16.vlgmr.msra.gmra.mrb[128].mxu1 %v839_v20  ;;  %6893 = vmatpush3.bf16.msra.mxu0 %v7123_v61  ;;  %v1741_v61 = vadd.f32 %v9111_v13, %v1740_v11  ;;  %v1290_v11 = vmax.f32 %v1289_v3, 0.0 }
 0x424   :  { %4921 = vmatprep.mubr.bf16.mxu0 %v1517_v47  ;;  %6915 = vmatpush3.bf16.msra.mxu1 %v7124_v9  ;;  %v7156_v9 = vld [vmem:[%s9636_s3 + $0x280] sm:$0xff]   ;;  %v2421_v47 = vpack.c.bf16 %v2420_v48, %v2420_v48  ;;  %v2645_v53 = vadd.f32 %v9111_v13, %v9641_v29 }
 0x425   :  { %4961 = vmatprep.mubr.bf16.mxu1 %v1969_v33  ;;  %6894 = vmatprep.subr.bf16.mxu0 %v7125_v0  ;;  %v1742_v41 = vmax.f32 %v1741_v61, 0.0  ;;  %v1291_v14 = vpack.c.bf16 %v1290_v11, %v1290_v11  ;;  %v7157_v0 = vld [vmem:[%s9636_s3 + $0x248] sm:$0xff]   ;;  %v2873_v33 = vpack.c.bf16 %v2872_v30, %v2872_v30  ;;  %v7180_v61 = vld [vmem:[%s9636_s3 + $0x2b0] sm:$0xff]   ;;  %v7202_v30 = vld [vmem:[%s9636_s3 + $0x380] sm:$0xff]  }
 0x426   :  { %6916 = vmatprep.subr.bf16.mxu1 %v7126_v36  ;;  %v7158_v36 = vld [vmem:[%s9636_s3 + $0x2c8] sm:$0xff]  }
 0x427   :  { %6895 = vmatpush3.bf16.msra.mxu0 %v7127_v56  ;;  %v1743_v20 = vpack.c.bf16 %v1742_v41, %v1742_v41  ;;  %v7159_v56 = vld [vmem:[%s9636_s3 + $0x208] sm:$0xff]  }
 0x428   :  { %6917 = vmatpush3.bf16.msra.mxu1 %v7128_v8  ;;  %6896 = vmatprep.subr.bf16.mxu0 %v7129_v58  ;;  %v7160_v8 = vld [vmem:[%s9636_s3 + $0x288] sm:$0xff]   ;;  %v7161_v58 = vld [vmem:[%s9636_s3 + $0x250] sm:$0xff]  }
 0x429   :  { %6918 = vmatprep.subr.bf16.mxu1 %v7130_v16  ;;  %v7162_v16 = vld [vmem:[%s9636_s3 + $0x2d0] sm:$0xff]  }
 0x42b   :  { %6897 = vmatpush3.bf16.msra.mxu0 %v7131_v12  ;;  %v7163_v12 = vld [vmem:[%s9636_s3 + $0x210] sm:$0xff]  }
 0x42c   :  { %6919 = vmatpush3.bf16.msra.mxu1 %v7132_v18  ;;  %6898 = vmatprep.subr.bf16.mxu0 %v7133_v32  ;;  %v7164_v18 = vld [vmem:[%s9636_s3 + $0x290] sm:$0xff]   ;;  %v7165_v32 = vld [vmem:[%s9636_s3 + $0x258] sm:$0xff]  }
 0x42d   :  { %6920 = vmatprep.subr.bf16.mxu1 %v7134_v4  ;;  %v7166_v4 = vld [vmem:[%s9636_s3 + $0x2d8] sm:$0xff]  }
 0x42f   :  { %6899 = vmatpush3.bf16.msra.mxu0 %v7135_v34  ;;  %v7167_v34 = vld [vmem:[%s9636_s3 + $0x218] sm:$0xff]  }
 0x430   :  { %6921 = vmatpush3.bf16.msra.mxu1 %v7136_v43  ;;  %6900 = vmatprep.subr.bf16.mxu0 %v7137_v44  ;;  %v7168_v43 = vld [vmem:[%s9636_s3 + $0x298] sm:$0xff]   ;;  %v7169_v44 = vld [vmem:[%s9636_s3 + $0x260] sm:$0xff]  }
 0x431   :  { %6922 = vmatprep.subr.bf16.mxu1 %v7138_v49  ;;  %v7170_v49 = vld [vmem:[%s9636_s3 + $0x2e0] sm:$0xff]  }
 0x433   :  { %6901 = vmatpush3.bf16.msra.mxu0 %v7139_v52  ;;  %v7171_v52 = vld [vmem:[%s9636_s3 + $0x220] sm:$0xff]  }
 0x434   :  { %6923 = vmatpush3.bf16.msra.mxu1 %v7140_v5  ;;  %6902 = vmatprep.subr.bf16.mxu0 %v7141_v28  ;;  %v7172_v5 = vld [vmem:[%s9636_s3 + $0x2a0] sm:$0xff]   ;;  %v7173_v28 = vld [vmem:[%s9636_s3 + $0x268] sm:$0xff]  }
 0x435   :  { %v6600_v2 = vpop.f32.mrb[104].mxu0  ;;  %v6622_v23 = vpop.f32.mrb[104].mxu1  ;;  %6924 = vmatprep.subr.bf16.mxu1 %v7142_v31  ;;  %v7174_v31 = vld [vmem:[%s9636_s3 + $0x2e8] sm:$0xff]  }
 0x436   :  { %v6601_v39 = vpop.f32.mrb[105].mxu0  ;;  %v6623_v51 = vpop.f32.mrb[105].mxu1 }
 0x437   :  { %v9332_v59 = vadd.f32 %v6601_v39, %v6600_v2  ;;  %v9334_v7 = vadd.f32 %v6623_v51, %v6622_v23  ;;  %v6603_v37 = vpop.f32.mrb[106].mxu0  ;;  %v6625_v46 = vpop.f32.mrb[106].mxu1  ;;  %6903 = vmatpush3.bf16.msra.mxu0 %v7143_v40  ;;  %v7175_v40 = vld [vmem:[%s9636_s3 + $0x228] sm:$0xff]  }
 0x438   :  { %6925 = vmatpush3.bf16.msra.mxu1 %v7144_v50  ;;  %v6604_v35 = vpop.f32.mrb[107].mxu0  ;;  %v6626_v55 = vpop.f32.mrb[107].mxu1  ;;  %6904 = vmatprep.subr.bf16.mxu0 %v7145_v17  ;;  %v7176_v50 = vld [vmem:[%s9636_s3 + $0x2a8] sm:$0xff]   ;;  %v7177_v17 = vld [vmem:[%s9636_s3 + $0x270] sm:$0xff]  }
 0x439   :  { %v3211_v63 = vmax.f32 %v9332_v59, %v9334_v7  ;;  %6926 = vmatprep.subr.bf16.mxu1 %v7146_v26  ;;  %v7178_v26 = vld [vmem:[%s9636_s3 + $0x2f0] sm:$0xff]   ;;  %v2193_v55 = vadd.f32 %v9111_v13, %v2192_v1  ;;  %v2646_v59 = vmax.f32 %v2645_v53, 0.0 }
 0x43a   :  { %v7179_v35 = vld [vmem:[%s9636_s3 + $0x230] sm:$0xff]  }
 0x43b   :  { %6905 = vmatpush3.bf16.msra.mxu0 %v7147_v57  ;;  %v2194_v11 = vmax.f32 %v2193_v55, 0.0  ;;  %v2647_v48 = vpack.c.bf16 %v2646_v59, %v2646_v59  ;;  %v7216_v55 = vld [vmem:[%s9636_s3 + $0x3b8] sm:$0xff]  }
 0x43c   :  { %6927 = vmatpush3.bf16.msra.mxu1 %v7148_v10  ;;  %6906 = vmatprep.subr.bf16.mxu0 %v7149_v15 }
 0x43d   :  { %6928 = vmatprep.subr.bf16.mxu1 %v7150_v25  ;;  %v7181_v25 = vld [vmem:[%s9636_s3 + $0x278] sm:$0xff]   ;;  %v2195_v41 = vpack.c.bf16 %v2194_v11, %v2194_v11 }
 0x43f   :  { %6907 = vmatpush3.bf16.msra.mxu0 %v7151_v62  ;;  %v7183_v62 = vld [vmem:[%s9636_s3 + $0x238] sm:$0xff]  }
 0x440   :  { %6929 = vmatpush3.bf16.msra.mxu1 %v7152_v60  ;;  %6936 = vmatprep.subr.bf16.mxu0 %v7153_v19  ;;  %v7186_v60 = vld [vmem:[%s9636_s3 + $0x300] sm:$0xff]  }
 0x441   :  { %6958 = vmatprep.subr.bf16.mxu1 %v7154_v24  ;;  %v7187_v24 = vld [vmem:[%s9636_s3 + $0x348] sm:$0xff]  }
 0x442   :  { %4922 = vmatmul.mubr.bf16.vlgmr.msra.gmra.mrb[132].mxu0 %v1291_v14  ;;  %v7203_v14 = vld [vmem:[%s9636_s3 + $0x3c8] sm:$0xff]  }
 0x443   :  { %4962 = vmatmul.mubr.bf16.vlgmr.msra.gmra.mrb[132].mxu1 %v1743_v20  ;;  %6937 = vmatpush3.bf16.msra.mxu0 %v7155_v27  ;;  %v7189_v20 = vld [vmem:[%s9636_s3 + $0x350] sm:$0xff]  }
 0x444   :  { %5001 = vmatprep.mubr.bf16.mxu0 %v2421_v47  ;;  %6959 = vmatpush3.bf16.msra.mxu1 %v7156_v9  ;;  %v7188_v9 = vld [vmem:[%s9636_s3 + $0x308] sm:$0xff]   ;;  %v7205_v47 = vld [vmem:[%s9636_s3 + $0x3d0] sm:$0xff]  }
 0x445   :  { %5041 = vmatprep.mubr.bf16.mxu1 %v2873_v33  ;;  %6938 = vmatprep.subr.bf16.mxu0 %v7157_v0  ;;  %v7204_v0 = vld [vmem:[%s9636_s3 + $0x388] sm:$0xff]   ;;  %v7191_v33 = vld [vmem:[%s9636_s3 + $0x358] sm:$0xff]  }
 0x446   :  { %6960 = vmatprep.subr.bf16.mxu1 %v7158_v36  ;;  %v7190_v36 = vld [vmem:[%s9636_s3 + $0x310] sm:$0xff]  }
 0x447   :  { %6939 = vmatpush3.bf16.msra.mxu0 %v7159_v56  ;;  %v7206_v56 = vld [vmem:[%s9636_s3 + $0x390] sm:$0xff]  }
 0x448   :  { %6961 = vmatpush3.bf16.msra.mxu1 %v7160_v8  ;;  %6940 = vmatprep.subr.bf16.mxu0 %v7161_v58  ;;  %v7207_v8 = vld [vmem:[%s9636_s3 + $0x3d8] sm:$0xff]  }
 0x449   :  { %6962 = vmatprep.subr.bf16.mxu1 %v7162_v16  ;;  %v7192_v58 = vld [vmem:[%s9636_s3 + $0x318] sm:$0xff]   ;;  %v7193_v16 = vld [vmem:[%s9636_s3 + $0x360] sm:$0xff]  }
 0x44b   :  { %6941 = vmatpush3.bf16.msra.mxu0 %v7163_v12  ;;  %v7208_v12 = vld [vmem:[%s9636_s3 + $0x398] sm:$0xff]  }
 0x44c   :  { %6963 = vmatpush3.bf16.msra.mxu1 %v7164_v18  ;;  %6942 = vmatprep.subr.bf16.mxu0 %v7165_v32  ;;  %v7209_v18 = vld [vmem:[%s9636_s3 + $0x3e0] sm:$0xff]  }
 0x44d   :  { %6964 = vmatprep.subr.bf16.mxu1 %v7166_v4  ;;  %v7194_v32 = vld [vmem:[%s9636_s3 + $0x320] sm:$0xff]   ;;  %v7195_v4 = vld [vmem:[%s9636_s3 + $0x368] sm:$0xff]  }
 0x44f   :  { %6943 = vmatpush3.bf16.msra.mxu0 %v7167_v34  ;;  %v7210_v34 = vld [vmem:[%s9636_s3 + $0x3a0] sm:$0xff]  }
 0x450   :  { %6965 = vmatpush3.bf16.msra.mxu1 %v7168_v43  ;;  %6944 = vmatprep.subr.bf16.mxu0 %v7169_v44  ;;  %v7211_v43 = vld [vmem:[%s9636_s3 + $0x3e8] sm:$0xff]  }
 0x451   :  { %6966 = vmatprep.subr.bf16.mxu1 %v7170_v49  ;;  %v7196_v44 = vld [vmem:[%s9636_s3 + $0x328] sm:$0xff]   ;;  %v7197_v49 = vld [vmem:[%s9636_s3 + $0x370] sm:$0xff]  }
 0x453   :  { %6945 = vmatpush3.bf16.msra.mxu0 %v7171_v52 }
 0x454   :  { %6967 = vmatpush3.bf16.msra.mxu1 %v7172_v5  ;;  %6946 = vmatprep.subr.bf16.mxu0 %v7173_v28  ;;  %v7212_v28 = vld [vmem:[%s9636_s3 + $0x3a8] sm:$0xff]  }
 0x455   :  { %v6644_v2 = vpop.f32.mrb[108].mxu0  ;;  %v6666_v23 = vpop.f32.mrb[108].mxu1  ;;  %6968 = vmatprep.subr.bf16.mxu1 %v7174_v31 }
 0x456   :  { %v6645_v39 = vpop.f32.mrb[109].mxu0  ;;  %v6667_v51 = vpop.f32.mrb[109].mxu1 }
 0x457   :  { %v6646_v37 = vadd.f32 %v6645_v39, %v6644_v2  ;;  %v6668_v46 = vadd.f32 %v6667_v51, %v6666_v23  ;;  %v6647_v57 = vpop.f32.mrb[110].mxu0  ;;  %v6669_v3 = vpop.f32.mrb[110].mxu1  ;;  %6947 = vmatpush3.bf16.msra.mxu0 %v7175_v40  ;;  %v7198_v39 = vld [vmem:[%s9636_s3 + $0x330] sm:$0xff]   ;;  %v3097_v51 = vadd.f32 %v9111_v13, %v3096_v42 }
 0x458   :  { %6969 = vmatpush3.bf16.msra.mxu1 %v7176_v50  ;;  %v6648_v10 = vpop.f32.mrb[111].mxu0  ;;  %v6670_v15 = vpop.f32.mrb[111].mxu1  ;;  %6948 = vmatprep.subr.bf16.mxu0 %v7177_v17  ;;  %v7213_v50 = vld [vmem:[%s9636_s3 + $0x3f0] sm:$0xff]   ;;  %v7199_v57 = vld [vmem:[%s9636_s3 + $0x378] sm:$0xff]  }
 0x459   :  { %v3277_v45 = vmax.f32 %v3211_v63, %v6646_v37  ;;  %6970 = vmatprep.subr.bf16.mxu1 %v7178_v26  ;;  %v7201_v63 = vld [vmem:[%s9636_s3 + $0x3c0] sm:$0xff]   ;;  %v3098_v42 = vmax.f32 %v3097_v51, 0.0 }
 0x45b   :  { %v3322_v1 = vmax.f32 %v3277_v45, %v6668_v46  ;;  %6949 = vmatpush3.bf16.msra.mxu0 %v7179_v35  ;;  %v7214_v35 = vld [vmem:[%s9636_s3 + $0x3b0] sm:$0xff]   ;;  %v3099_v10 = vpack.c.bf16 %v3098_v42, %v3098_v42 }
 0x45c   :  { %6971 = vmatpush3.bf16.msra.mxu1 %v7180_v61  ;;  %6950 = vmatprep.subr.bf16.mxu0 %v7181_v25 }
 0x45d   :  { %v3323_v7 = vadd.f32 %v9111_v13, %v3322_v1  ;;  %6972 = vmatprep.subr.bf16.mxu1 %v7182_v22 }
 0x45f   :  { %6951 = vmatpush3.bf16.msra.mxu0 %v7183_v62  ;;  %v3324_v19 = vmax.f32 %v3323_v7, 0.0 }
 0x460   :  { %6973 = vmatpush3.bf16.msra.mxu1 %v7184_v38  ;;  %6980 = vmatprep.subr.bf16.mxu0 %v7185_v6 }
 0x461   :  { %v3325_v27 = vpack.c.bf16 %v3324_v19, %v3324_v19  ;;  %7002 = vmatprep.subr.bf16.mxu1 %v7201_v63 }
 0x462   :  { %5002 = vmatmul.mubr.bf16.vlgmr.msra.gmra.mrb[136].mxu0 %v2195_v41 }
 0x463   :  { %5042 = vmatmul.mubr.bf16.vlgmr.msra.gmra.mrb[136].mxu1 %v2647_v48  ;;  %6981 = vmatpush3.bf16.msra.mxu0 %v7186_v60 }
 0x464   :  { %5081 = vmatprep.mubr.bf16.mxu0 %v3325_v27  ;;  %6982 = vmatprep.subr.bf16.mxu0 %v7187_v24 }
 0x465   :  { %7003 = vmatpush3.bf16.msra.mxu1 %v7202_v30 }
 0x466   :  { %7004 = vmatprep.subr.bf16.mxu1 %v7203_v14 }
 0x467   :  { %6983 = vmatpush3.bf16.msra.mxu0 %v7188_v9 }
 0x468   :  { %6984 = vmatprep.subr.bf16.mxu0 %v7189_v20 }
 0x469   :  { %7005 = vmatpush3.bf16.msra.mxu1 %v7204_v0 }
 0x46a   :  { %7006 = vmatprep.subr.bf16.mxu1 %v7205_v47 }
 0x46b   :  { %6985 = vmatpush3.bf16.msra.mxu0 %v7190_v36 }
 0x46c   :  { %6986 = vmatprep.subr.bf16.mxu0 %v7191_v33 }
 0x46d   :  { %7007 = vmatpush3.bf16.msra.mxu1 %v7206_v56 }
 0x46e   :  { %7008 = vmatprep.subr.bf16.mxu1 %v7207_v8 }
 0x46f   :  { %6987 = vmatpush3.bf16.msra.mxu0 %v7192_v58 }
 0x470   :  { %6988 = vmatprep.subr.bf16.mxu0 %v7193_v16 }
 0x471   :  { %7009 = vmatpush3.bf16.msra.mxu1 %v7208_v12 }
 0x472   :  { %7010 = vmatprep.subr.bf16.mxu1 %v7209_v18  ;;  %v7217_v18 = vld [vmem:[%s9638_s5] sm:$0xff]  }
 0x473   :  { %6989 = vmatpush3.bf16.msra.mxu0 %v7194_v32 }
 0x474   :  { %6990 = vmatprep.subr.bf16.mxu0 %v7195_v4  ;;  %v7302_v4 = vmov 0.0  }
 0x475   :  { %v6688_v52 = vpop.f32.mrb[112].mxu0  ;;  %v6710_v5 = vpop.f32.mrb[112].mxu1  ;;  %7011 = vmatpush3.bf16.msra.mxu1 %v7210_v34 }
 0x476   :  { %v6689_v31 = vpop.f32.mrb[113].mxu0  ;;  %v6711_v40 = vpop.f32.mrb[113].mxu1  ;;  %7012 = vmatprep.subr.bf16.mxu1 %v7211_v43  ;;  %v7218_v43 = vld [vmem:[%s9638_s5 + $0x8] sm:$0xff]  }
 0x477   :  { %v6690_v17 = vadd.f32 %v6689_v31, %v6688_v52  ;;  %v6712_v2 = vadd.f32 %v6711_v40, %v6710_v5  ;;  %v6691_v23 = vpop.f32.mrb[114].mxu0  ;;  %v6713_v26 = vpop.f32.mrb[114].mxu1  ;;  %6991 = vmatpush3.bf16.msra.mxu0 %v7196_v44  ;;  %v7219_v5 = vld [vmem:[%s9638_s5 + $0x10] sm:$0xff]   ;;  %v7220_v40 = vld [vmem:[%s9638_s5 + $0x18] sm:$0xff]  }
 0x478   :  { %v6692_v37 = vpop.f32.mrb[115].mxu0  ;;  %v6714_v46 = vpop.f32.mrb[115].mxu1  ;;  %6992 = vmatprep.subr.bf16.mxu0 %v7197_v49  ;;  %v5302_v23 = vld [vmem:[%s9637_s4] ss:$0 sm:$0xff] }
 0x479   :  { %v3437_v3 = vmax.f32 %v6690_v17, %v6712_v2  ;;  %7013 = vmatpush3.bf16.msra.mxu1 %v7212_v28 }
 0x47a   :  { %7014 = vmatprep.subr.bf16.mxu1 %v7213_v50  ;;  %v7222_v50 = vld [vmem:[%s9638_s5 + $0x28] sm:$0xff]  }
 0x47b   :  { %6993 = vmatpush3.bf16.msra.mxu0 %v7198_v39 }
 0x47c   :  { %6994 = vmatprep.subr.bf16.mxu0 %v7199_v57 }
 0x47d   :  { %7015 = vmatpush3.bf16.msra.mxu1 %v7214_v35 }
 0x47e   :  { %7016 = vmatprep.subr.bf16.mxu1 %v7215_v21 }
 0x47f   :  { %6995 = vmatpush3.bf16.msra.mxu0 %v7200_v54 }
 0x480   :  { %7033 = vmatprep.subr.bf16.mxu0 %v7302_v4 }
 0x481   :  { %7017 = vmatpush3.bf16.msra.mxu1 %v7216_v55 }
 0x482   :  { %5082 = vmatmul.mubr.bf16.vlgmr.msra.gmra.mrb[140].mxu0 %v3099_v10 }
 0x483   :  { %7034 = vmatpush3.bf16.msra.mxu0 %v7217_v18  ;;  %7049 = vmatprep.mubr.msk.bf16.mxu0 %vm7303_vm0, %v7302_v4 }
 0x484   :  { %7035 = vmatprep.subr.bf16.mxu0 %v7302_v4 }
 0x487   :  { %7036 = vmatpush3.bf16.msra.mxu0 %v7218_v43  ;;  %v5431_v43 = vld [vmem:[%s9639_s6] ss:$0 sm:$0xff]  ;;  %s5262_s6 = sshll.u32 %s7304_s12, 4  ;;  %s5263_s6 = int_to_ptr.vmem [resolvable:$true] %s5262_s6 }
 0x488   :  { %7037 = vmatprep.subr.bf16.mxu0 %v7302_v4  ;;  %s7277_s13 = scalar_lea.vmem %s5263_s6, 32  ;;  %p7282_p1 = scmp.lt.s32.totalorder %s5263_s6, %s5263_s6 }
 0x489   :  { %p7278_p0 = scmp.ne.s32.totalorder %s5263_s6, %s7277_s13  ;;  %p7283_p2 = scmp.lt.s32.totalorder %s7277_s13, %s7277_s13 }
 0x48b   :  { %7038 = vmatpush3.bf16.msra.mxu0 %v7219_v5  ;;  %p7284_p3 = por %p7283_p2, %p7282_p1 }
 0x48c   :  { %7039 = vmatprep.subr.bf16.mxu0 %v7302_v4 }
 0x48d   :  { %p7285_p4 = pnand %p7284_p3, %p7278_p0 }
 0x48f   :  { %7040 = vmatpush3.bf16.msra.mxu0 %v7220_v40 }
 0x490   :  { %7041 = vmatprep.subr.bf16.mxu0 %v7302_v4 }
 0x495   :  { %v6732_v15 = vpop.f32.mrb[116].mxu0  ;;  %v6754_v61 = vpop.f32.mrb[116].mxu1 }
 0x496   :  { %v6733_v25 = vpop.f32.mrb[117].mxu0  ;;  %v6755_v29 = vpop.f32.mrb[117].mxu1 }
 0x497   :  { %v6734_v53 = vadd.f32 %v6733_v25, %v6732_v15  ;;  %v6756_v45 = vadd.f32 %v6755_v29, %v6754_v61  ;;  %v6735_v22 = vpop.f32.mrb[118].mxu0  ;;  %v6757_v1 = vpop.f32.mrb[118].mxu1 }
 0x498   :  { %v6736_v62 = vpop.f32.mrb[119].mxu0  ;;  %v6758_v11 = vpop.f32.mrb[119].mxu1 }
 0x499   :  { %v3503_v38 = vmax.f32 %v3437_v3, %v6734_v53 }
 0x49b   :  { %v3548_v6 = vmax.f32 %v3503_v38, %v6756_v45 }
 0x49d   :  { %v3549_v32 = vadd.f32 %v9111_v13, %v3548_v6 }
 0x49f   :  { %v3550_v49 = vmax.f32 %v3549_v32, 0.0 }
 0x4a1   :  { %v3551_v31 = vpack.c.bf16 %v3550_v49, %v3550_v49 }
 0x4b5   :  { %v6776_v59 = vpop.f32.mrb[120].mxu0  ;;  %v6798_v7 = vpop.f32.mrb[120].mxu1 }
 0x4b6   :  { %v6777_v63 = vpop.f32.mrb[121].mxu0  ;;  %v6799_v60 = vpop.f32.mrb[121].mxu1 }
 0x4b7   :  { %v6778_v19 = vadd.f32 %v6777_v63, %v6776_v59  ;;  %v6800_v41 = vadd.f32 %v6799_v60, %v6798_v7  ;;  %v6779_v24 = vpop.f32.mrb[122].mxu0  ;;  %v6801_v48 = vpop.f32.mrb[122].mxu1 }
 0x4b8   :  { %v6780_v27 = vpop.f32.mrb[123].mxu0  ;;  %v6802_v30 = vpop.f32.mrb[123].mxu1 }
 0x4b9   :  { %v3663_v14 = vmax.f32 %v6778_v19, %v6800_v41  ;;  %v7223_v27 = vld [vmem:[%s9638_s5 + $0x30] sm:$0xff]  }
 0x4d5   :  { %v6820_v9 = vpop.f32.mrb[124].mxu0  ;;  %v6842_v20 = vpop.f32.mrb[124].mxu1 }
 0x4d6   :  { %v6821_v0 = vpop.f32.mrb[125].mxu0  ;;  %v6843_v47 = vpop.f32.mrb[125].mxu1 }
 0x4d7   :  { %v6822_v36 = vadd.f32 %v6821_v0, %v6820_v9  ;;  %v6844_v33 = vadd.f32 %v6843_v47, %v6842_v20  ;;  %v6823_v56 = vpop.f32.mrb[126].mxu0  ;;  %v6845_v8 = vpop.f32.mrb[126].mxu1 }
 0x4d8   :  { %v6824_v58 = vpop.f32.mrb[127].mxu0  ;;  %v6846_v16 = vpop.f32.mrb[127].mxu1 }
 0x4d9   :  { %v3729_v12 = vmax.f32 %v3663_v14, %v6822_v36  ;;  %v7224_v14 = vld [vmem:[%s9638_s5 + $0x38] sm:$0xff]  }
 0x4db   :  { %v3774_v34 = vmax.f32 %v3729_v12, %v6844_v33 }
 0x4dd   :  { %v3775_v44 = vadd.f32 %v9111_v13, %v3774_v34  ;;  %v7221_v13 = vld [vmem:[%s9638_s5 + $0x20] sm:$0xff]  }
 0x4de   :  { %7042 = vmatpush3.bf16.msra.mxu0 %v7221_v13 }
 0x4df   :  { %v3776_v52 = vmax.f32 %v3775_v44, 0.0  ;;  %7043 = vmatprep.subr.bf16.mxu0 %v7302_v4 }
 0x4e1   :  { %v3777_v28 = vpack.c.bf16 %v3776_v52, %v3776_v52 }
 0x4e2   :  { %7044 = vmatpush3.bf16.msra.mxu0 %v7222_v50 }
 0x4e3   :  { %5121 = vmatprep.mubr.bf16.mxu1 %v3777_v28  ;;  %7045 = vmatprep.subr.bf16.mxu0 %v7302_v4 }
 0x4e4   :  { %5122 = vmatmul.mubr.bf16.vlgmr.msra.gmra.mrb[140].mxu1 %v3551_v31 }
 0x4e6   :  { %7046 = vmatpush3.bf16.msra.mxu0 %v7223_v27 }
 0x4e7   :  { %7047 = vmatprep.subr.bf16.mxu0 %v7302_v4 }
 0x4ea   :  { %7048 = vmatpush3.bf16.msra.mxu0 %v7224_v14 }
 0x4f5   :  { %v6864_v17 = vpop.f32.mrb[128].mxu0 }
 0x4f6   :  { %v6886_v2 = vpop.f32.mrb[128].mxu1  ;;  %v6865_v26 = vpop.f32.mrb[129].mxu0 }
 0x4f7   :  { %v6866_v39 = vadd.f32 %v6865_v26, %v6864_v17  ;;  %v6887_v51 = vpop.f32.mrb[129].mxu1  ;;  %v6867_v37 = vpop.f32.mrb[130].mxu0 }
 0x4f8   :  { %v6888_v46 = vadd.f32 %v6887_v51, %v6886_v2  ;;  %v6889_v57 = vpop.f32.mrb[130].mxu1  ;;  %v6868_v3 = vpop.f32.mrb[131].mxu0 }
 0x4f9   :  { %v4844_v35 = vadd.f32 %v6866_v39, %v5302_v23  ;;  %v6890_v21 = vpop.f32.mrb[131].mxu1 }
 0x4fb   :  { %v4884_v54 = vadd.f32 %v6888_v46, %v4844_v35 }
 0x515   :  { %v6908_v42 = vpop.f32.mrb[132].mxu0 }
 0x516   :  { %v6930_v55 = vpop.f32.mrb[132].mxu1  ;;  %v6909_v10 = vpop.f32.mrb[133].mxu0 }
 0x517   :  { %v6910_v15 = vadd.f32 %v6909_v10, %v6908_v42  ;;  %v6931_v61 = vpop.f32.mrb[133].mxu1  ;;  %v6911_v25 = vpop.f32.mrb[134].mxu0 }
 0x518   :  { %v6932_v29 = vadd.f32 %v6931_v61, %v6930_v55  ;;  %v6933_v53 = vpop.f32.mrb[134].mxu1  ;;  %v6912_v45 = vpop.f32.mrb[135].mxu0 }
 0x519   :  { %v4924_v22 = vadd.f32 %v6910_v15, %v4884_v54  ;;  %v6934_v1 = vpop.f32.mrb[135].mxu1 }
 0x51b   :  { %v4964_v62 = vadd.f32 %v6932_v29, %v4924_v22 }
 0x535   :  { %v6952_v11 = vpop.f32.mrb[136].mxu0 }
 0x536   :  { %v6974_v38 = vpop.f32.mrb[136].mxu1  ;;  %v6953_v6 = vpop.f32.mrb[137].mxu0 }
 0x537   :  { %v6954_v59 = vadd.f32 %v6953_v6, %v6952_v11  ;;  %v6975_v7 = vpop.f32.mrb[137].mxu1  ;;  %v6955_v63 = vpop.f32.mrb[138].mxu0 }
 0x538   :  { %v6976_v60 = vadd.f32 %v6975_v7, %v6974_v38  ;;  %v6977_v19 = vpop.f32.mrb[138].mxu1  ;;  %v6956_v41 = vpop.f32.mrb[139].mxu0 }
 0x539   :  { %v5004_v24 = vadd.f32 %v6954_v59, %v4964_v62  ;;  %v6978_v48 = vpop.f32.mrb[139].mxu1 }
 0x53b   :  { %v5044_v30 = vadd.f32 %v6976_v60, %v5004_v24 }
 0x555   :  { %v6996_v9 = vpop.f32.mrb[140].mxu0 }
 0x556   :  { %v6997_v20 = vpop.f32.mrb[141].mxu0 }
 0x557   :  { %v6998_v0 = vadd.f32 %v6997_v20, %v6996_v9  ;;  %v6999_v47 = vpop.f32.mrb[142].mxu0 }
 0x558   :  { %v7000_v36 = vpop.f32.mrb[143].mxu0 }
 0x559   :  { %v5084_v33 = vadd.f32 %v6998_v0, %v5044_v30 }
 0x5b7   :  { %v7018_v56 = vpop.f32.mrb[140].mxu1 }
 0x5b8   :  { %v7019_v8 = vpop.f32.mrb[141].mxu1 }
 0x5b9   :  { %v7020_v58 = vadd.f32 %v7019_v8, %v7018_v56  ;;  %v7021_v16 = vpop.f32.mrb[142].mxu1 }
 0x5ba   :  { %v7022_v12 = vpop.f32.mrb[143].mxu1 }
 0x5bb   :  { %v5124_v18 = vadd.f32 %v7020_v58, %v5084_v33 }
 0x5bd   :  { %v5129_v32 = vmax.f32 %v5124_v18, 0.0 }
 0x5bf   :  { %v5130_v34 = vpack.c.bf16 %v5129_v32, %v5129_v32 }
 0x5c1   :  { %7050 = vmatmul.mubr.bf16.vlgmr.msra.gmra.mrb[144].mxu0 %v5130_v34 }
 0x694   :  { %v5236_v4 = vpop.f32.mrb[144].mxu0 }
 0x695   :  { %v5237_v44 = vadd.f32 %v5431_v43, %v5236_v4  ;;  %v7051_v49 = vpop.f32.mrb[145].mxu0 }
 0x696   :  { %v5239_v52 = vpop.f32.mrb[146].mxu0 }
 0x697   :  { %v7052_v5 = vpop.f32.mrb[147].mxu0  ;;  %v5243_v28 = vsel %vm5242_vm1, %v5237_v44, -inf }
 0x698   :  { %5244 = vmax.xlane.f32.xlu0 %v5243_v28 }
 0x725   :  { %v5245_v31 = vpop.xlane.xlu0 %5244 }
 0x726   :  { %v5246_v40 = vsub.f32 %v5237_v44, %v5245_v31 }
 0x728   :  { %v5247_v13 = vmul.f32 1.442695, %v5246_v40 }
 0x72a   :  { %7225 = vpow2.f32 %v5247_v13 }
 0x734   :  { %v7226_v50 = vpop.eup %7225 }
 0x735   :  { %v5249_v17 = vsel %vm5242_vm1, %v7226_v50, 0.0 }
 0x736   :  { %5250 = vadd.xlane.f32.xlu0 %v5249_v17 }
 0x7c3   :  { %v5251_v2 = vpop.xlane.xlu0 %5250 }
 0x7c4   :  { %7227 = vlog2.f32 %v5251_v2 }
 0x7ce   :  { %v7228_v23 = vpop.eup %7227 }
 0x7cf   :  { %v5253_v26 = vmul.f32 0.6931472, %v7228_v23 }
 0x7d1   :  { %v5254_v39 = vsub.f32 %v5246_v40, %v5253_v26 }
 0x7d3   :  { %5255 = vst [vmem:[#allocation2] sm:$0x3] %v5254_v39 }
 0x7d4   :  { %7288 = shalt.err (!%p7285_p4)
}
 0x7d5   :  { %s7289_s16 = scalar_lea.hbm %s9640_s7, 32 }
 0x7d6   :  { %p7290_p5 = scmp.ne.s32.totalorder %s9640_s7, %s7289_s16  ;;  %p7293_p6 = scmp.lt.u32.totalorder %s7289_s16, %s9640_s7 }
 0x7d8   :  { %p7295_p7 = pnand %p7293_p6, %p7290_p5 }
 0x7da   :  { %7298 = shalt.err (!%p7295_p7)
}
 0x7db   :  { %5265 = dma.vmem_to_hbm [thread:$0]  %s5263_s6, 32, %s9640_s7, [#allocation3]  }
 0x7dc   :  { %7299 = dma.done.wait [#allocation3], 32  }
 0x7dd   :  { %7300 = vsyncadd [#allocation3], 4294967264 }
 0x7de   :  { %5269 = vsyncpa [#allocation3], 1 }

</bundles_post_ra>
